<compile_context>
chip_gen: v7x
topology: tpu7x:2x2x1
jax: 0.10.0
libtpu: 0.0.40
codegen_flags: <defaults>
</compile_context>

<pallas_src>
import functools

import numpy as np

import jax
import jax.numpy as jnp
from jax import lax
from jax.experimental import pallas as pl
from jax.experimental.pallas import tpu as pltpu

_BN_EPS = 1e-3
_LANE = 128


# ----------------------------------------------------------------------------
# Pallas kernels
# ----------------------------------------------------------------------------
def _matmul_bias_relu_kernel(x_ref, w_ref, b_ref, o_ref, acc_ref):
    """Tiled (M,K)@(K,N) + bias + ReLU with a f32 VMEM accumulator over K."""

    @pl.when(pl.program_id(2) == 0)
    def _init():
        acc_ref[...] = jnp.zeros_like(acc_ref)

    acc_ref[...] += jnp.dot(x_ref[...], w_ref[...],
                            preferred_element_type=jnp.float32)

    @pl.when(pl.program_id(2) == pl.num_programs(2) - 1)
    def _finalize():
        o_ref[...] = jnp.maximum(acc_ref[...] + b_ref[...], 0.0).astype(o_ref.dtype)


def _make_s2_conv3x3_kernel(ow, with_pool):
    """3x3 / stride-2 conv (+folded BN, ReLU), optionally fused with the
    3x3/stride-2 max-pool over the *same* windows.

    Inputs are two rows of the space-to-depth repacked input with layout
    (1, 1, 4-phase, ww, cin): phase = 2*dr + dc.  The 9 taps are accumulated
    in registers with one small bf16 MXU matmul per tap; the pool is a running
    f32 maximum (VPU filler)."""

    def kernel(row0_ref, row1_ref, w_ref, b_ref, *out_refs):
        rows = (row0_ref, row1_ref)
        acc = None
        pool = None
        for i in range(3):            # kernel row offset
            for j in range(3):        # kernel col offset
                t = 3 * i + j
                phase = 2 * (i % 2) + (j % 2)
                c0 = j // 2
                tap = rows[i // 2][0, 0, phase, c0:c0 + ow, :]      # (ow, cin)
                part = jnp.dot(tap.astype(jnp.bfloat16), w_ref[t],
                               preferred_element_type=jnp.float32)  # (ow, cpad)
                acc = part if acc is None else acc + part
                if with_pool:
                    tap32 = tap.astype(jnp.float32)
                    pool = tap32 if pool is None else jnp.maximum(pool, tap32)
        y = jnp.maximum(acc + b_ref[...], 0.0)                      # bias + ReLU
        out_refs[0][0, 0, :, :] = y.astype(out_refs[0].dtype)
        if with_pool:
            out_refs[1][0, 0, :, :] = pool.astype(out_refs[1].dtype)

    return kernel


def _make_s1_conv3x3_kernel(w_out):
    """3x3 / stride-1 conv (+folded BN, ReLU); padding is pre-applied by the
    caller, so the three input rows are plain shifted windows."""

    def kernel(row0_ref, row1_ref, row2_ref, w_ref, b_ref, o_ref):
        rows = (row0_ref, row1_ref, row2_ref)
        acc = None
        for i in range(3):
            for j in range(3):
                tap = rows[i][0, 0, j:j + w_out, :]                 # (w_out, cin)
                part = jnp.dot(tap.astype(jnp.bfloat16), w_ref[3 * i + j],
                               preferred_element_type=jnp.float32)
                acc = part if acc is None else acc + part
        y = jnp.maximum(acc + b_ref[...], 0.0)
        o_ref[0, 0, :, :] = y.astype(o_ref.dtype)

    return kernel


# ----------------------------------------------------------------------------
# pallas_call wrappers
# ----------------------------------------------------------------------------
def _compiler_params(semantics):
    return pltpu.CompilerParams(dimension_semantics=semantics,
                                vmem_limit_bytes=32 * 1024 * 1024)


def _nbytes(*specs):
    return int(sum(int(np.prod(s.shape)) * np.dtype(s.dtype).itemsize
                   for s in specs))


def s2_conv3x3_bn_relu(x_s2d, w_packed, b_packed, *, with_pool):
    """3x3/stride-2 conv+BN+ReLU over a space-to-depth input of layout
    (N, hh, 4, ww, cin).  If `with_pool`, also emits the 3x3/stride-2
    max-pool of the same windows (shared reads)."""
    n, hh, nph, ww, cin = x_s2d.shape
    assert nph == 4
    oh, ow = hh - 1, ww - 1
    cout_pad = w_packed.shape[-1]

    kernel = _make_s2_conv3x3_kernel(ow=ow, with_pool=with_pool)

    conv_shape = jax.ShapeDtypeStruct((n, oh, ow, cout_pad), jnp.float32)
    conv_spec = pl.BlockSpec((1, 1, ow, cout_pad), lambda i, y: (i, y, 0, 0))
    if with_pool:
        pool_shape = jax.ShapeDtypeStruct((n, oh, ow, cin), jnp.float32)
        pool_spec = pl.BlockSpec((1, 1, ow, cin), lambda i, y: (i, y, 0, 0))
        out_shape, out_specs = (conv_shape, pool_shape), (conv_spec, pool_spec)
    else:
        out_shape, out_specs = conv_shape, conv_spec

    cost = pl.CostEstimate(
        flops=2 * n * oh * ow * 9 * cin * cout_pad,
        transcendentals=0,
        bytes_accessed=_nbytes(x_s2d, w_packed, b_packed, conv_shape))

    return pl.pallas_call(
        kernel,
        grid=(n, oh),
        in_specs=[
            # two overlapping row windows of the same s2d tensor
            pl.BlockSpec((1, 1, 4, ww, cin), lambda i, y: (i, y, 0, 0, 0)),
            pl.BlockSpec((1, 1, 4, ww, cin), lambda i, y: (i, y + 1, 0, 0, 0)),
            pl.BlockSpec(w_packed.shape, lambda i, y: (0, 0, 0)),
            pl.BlockSpec(b_packed.shape, lambda i, y: (0, 0)),
        ],
        out_shape=out_shape,
        out_specs=out_specs,
        compiler_params=_compiler_params(("parallel", "parallel")),
        cost_estimate=cost,
    )(x_s2d, x_s2d, w_packed, b_packed)


def s1_conv3x3_bn_relu(x_pad, w_packed, b_packed, *, out_dtype=jnp.bfloat16):
    """3x3/stride-1/pad-1 conv+BN+ReLU; `x_pad` is the zero-padded NHWC input."""
    n, hp, wp, cin = x_pad.shape
    h, w = hp - 2, wp - 2
    cout_pad = w_packed.shape[-1]
    kernel = _make_s1_conv3x3_kernel(w_out=w)

    cost = pl.CostEstimate(
        flops=2 * n * h * w * 9 * cin * cout_pad,
        transcendentals=0,
        bytes_accessed=_nbytes(x_pad, w_packed, b_packed)
        + n * h * w * cout_pad * np.dtype(out_dtype).itemsize)

    return pl.pallas_call(
        kernel,
        grid=(n, h),
        in_specs=[
            pl.BlockSpec((1, 1, wp, cin), lambda i, r: (i, r, 0, 0)),
            pl.BlockSpec((1, 1, wp, cin), lambda i, r: (i, r + 1, 0, 0)),
            pl.BlockSpec((1, 1, wp, cin), lambda i, r: (i, r + 2, 0, 0)),
            pl.BlockSpec(w_packed.shape, lambda i, r: (0, 0, 0)),
            pl.BlockSpec(b_packed.shape, lambda i, r: (0, 0)),
        ],
        out_shape=jax.ShapeDtypeStruct((n, h, w, cout_pad), out_dtype),
        out_specs=pl.BlockSpec((1, 1, w, cout_pad), lambda i, r: (i, r, 0, 0)),
        compiler_params=_compiler_params(("parallel", "parallel")),
        cost_estimate=cost,
    )(x_pad, x_pad, x_pad, w_packed, b_packed)


def matmul_bias_relu(x_mat, w_mat, b_mat, *, out_dtype=jnp.bfloat16):
    """1x1 conv as a tiled matmul (M/N/K grid + f32 VMEM accumulator)."""
    m, k = x_mat.shape
    _, nout = w_mat.shape
    tm = m
    for cand in (512, 256, 128):
        if m % cand == 0:
            tm = cand
            break
    tn, tk = nout, k
    grid = (m // tm, nout // tn, k // tk)

    cost = pl.CostEstimate(
        flops=2 * m * k * nout,
        transcendentals=0,
        bytes_accessed=_nbytes(x_mat, w_mat, b_mat)
        + m * nout * np.dtype(out_dtype).itemsize)

    return pl.pallas_call(
        _matmul_bias_relu_kernel,
        grid=grid,
        in_specs=[
            pl.BlockSpec((tm, tk), lambda i, j, kk: (i, kk)),
            pl.BlockSpec((tk, tn), lambda i, j, kk: (kk, j)),
            pl.BlockSpec((1, tn), lambda i, j, kk: (0, j)),
        ],
        out_shape=jax.ShapeDtypeStruct((m, nout), out_dtype),
        out_specs=pl.BlockSpec((tm, tn), lambda i, j, kk: (i, j)),
        scratch_shapes=[pltpu.VMEM((tm, tn), jnp.float32)],
        compiler_params=_compiler_params(("parallel", "parallel", "arbitrary")),
        cost_estimate=cost,
    )(x_mat, w_mat, b_mat)


# ----------------------------------------------------------------------------
# JAX-side layout glue (no im2col inflation)
# ----------------------------------------------------------------------------
def _space_to_depth2(x_nhwc):
    """(N,H,W,C) -> (N,ceil(H/2),4,ceil(W/2),C); phase axis ordered (dr,dc)
    row-major.  Same total byte count as the input; channels stay the lane dim."""
    n, h, w, c = x_nhwc.shape
    if h % 2:
        x_nhwc = jnp.pad(x_nhwc, ((0, 0), (0, 1), (0, 0), (0, 0)))
    if w % 2:
        x_nhwc = jnp.pad(x_nhwc, ((0, 0), (0, 0), (0, 1), (0, 0)))
    phases = [x_nhwc[:, dr::2, dc::2, :] for dr in (0, 1) for dc in (0, 1)]
    return jnp.stack(phases, axis=2)          # (N, hh, 4, ww, C)


# ----------------------------------------------------------------------------
# Parameters: deterministic init + BN folding + kernel-layout packing
# ----------------------------------------------------------------------------
def _init_basic_conv(key, cin, cout, k):
    fan_in = cin * k * k
    w = jax.random.normal(key, (cout, cin, k, k), jnp.float32) / jnp.sqrt(float(fan_in))
    gamma = jnp.ones((cout,), jnp.float32)
    beta = jnp.zeros((cout,), jnp.float32)
    rmean = 0.01 * jnp.arange(cout, dtype=jnp.float32)
    rvar = 1.0 + 0.05 * jnp.arange(cout, dtype=jnp.float32) / cout
    return dict(w=w, gamma=gamma, beta=beta, rmean=rmean, rvar=rvar)


def _fold_bn(p, eps=_BN_EPS):
    s = p["gamma"] / jnp.sqrt(p["rvar"] + eps)
    bias = p["beta"] - p["rmean"] * s
    return p["w"] * s[:, None, None, None], bias


def _pack_conv3x3(p, cout_pad):
    w_f, bias = _fold_bn(p)
    cout, cin = w_f.shape[0], w_f.shape[1]
    wk = jnp.transpose(w_f, (2, 3, 1, 0)).reshape(9, cin, cout)  # (tap, cin, cout)
    wk = jnp.pad(wk, ((0, 0), (0, 0), (0, cout_pad - cout)))
    bk = jnp.pad(bias, (0, cout_pad - cout)).reshape(1, cout_pad)
    return dict(w=wk.astype(jnp.bfloat16), b=bk.astype(jnp.float32), cout=cout)


def _pack_conv1x1(p):
    w_f, bias = _fold_bn(p)
    cout = w_f.shape[0]
    wk = jnp.transpose(w_f[:, :, 0, 0], (1, 0))                  # (cin, cout)
    return dict(w=wk.astype(jnp.bfloat16),
                b=bias.reshape(1, cout).astype(jnp.float32), cout=cout)


def init_inception_b_params(key, in_channels):
    k1, k2, k3, k4 = jax.random.split(key, 4)
    raw = {
        "branch3x3": _init_basic_conv(k1, in_channels, 32, 3),
        "dbl1": _init_basic_conv(k2, in_channels, 32, 1),
        "dbl2": _init_basic_conv(k3, 32, 64, 3),
        "dbl3": _init_basic_conv(k4, 64, 96, 3),
    }
    packed = {
        "branch3x3": _pack_conv3x3(raw["branch3x3"], cout_pad=_LANE),
        "dbl1": _pack_conv1x1(raw["dbl1"]),
        "dbl2": _pack_conv3x3(raw["dbl2"], cout_pad=64),
        "dbl3": _pack_conv3x3(raw["dbl3"], cout_pad=_LANE),
    }
    return raw, packed


# ----------------------------------------------------------------------------
# InceptionB forward (Pallas path)
# ----------------------------------------------------------------------------
def inception_b_forward(packed, x_nchw):
    x = jnp.transpose(x_nchw, (0, 2, 3, 1)).astype(jnp.float32)   # NCHW -> NHWC
    n, h, w, cin = x.shape

    # Shared stride-2 window source for branch3x3 conv AND max-pool (fused).
    x_s2d = _space_to_depth2(x)
    conv3, branch_pool = s2_conv3x3_bn_relu(
        x_s2d, packed["branch3x3"]["w"], packed["branch3x3"]["b"], with_pool=True)
    branch3x3 = conv3[..., :packed["branch3x3"]["cout"]]

    # Double-3x3 branch: 1x1 -> 3x3(pad 1) -> 3x3(stride 2); bf16 intermediates.
    d1 = matmul_bias_relu(
        x.reshape(n * h * w, cin).astype(jnp.bfloat16),
        packed["dbl1"]["w"], packed["dbl1"]["b"], out_dtype=jnp.bfloat16)
    d1 = d1.reshape(n, h, w, packed["dbl1"]["cout"])
    d1_pad = jnp.pad(d1, ((0, 0), (1, 1), (1, 1), (0, 0)))
    d2 = s1_conv3x3_bn_relu(d1_pad, packed["dbl2"]["w"], packed["dbl2"]["b"],
                            out_dtype=jnp.bfloat16)
    d3 = s2_conv3x3_bn_relu(_space_to_depth2(d2),
                            packed["dbl3"]["w"], packed["dbl3"]["b"],
                            with_pool=False)
    branch_dbl = d3[..., :packed["dbl3"]["cout"]]

    out = jnp.concatenate([branch3x3, branch_dbl, branch_pool], axis=-1)
    return jnp.transpose(out, (0, 3, 1, 2))   # back to NCHW (torch.cat dim=1)


# ----------------------------------------------------------------------------
# Pure-JAX reference (f32) for correctness checking
# ----------------------------------------------------------------------------
def _ref_conv_bn_relu(x_nhwc, p, stride, padding, eps=_BN_EPS):
    y = lax.conv_general_dilated(
        x_nhwc, p["w"], window_strides=(stride, stride),
        padding=[(padding, padding), (padding, padding)],
        dimension_numbers=("NHWC", "OIHW", "NHWC"))
    s = p["gamma"] / jnp.sqrt(p["rvar"] + eps)
    return jnp.maximum(y * s + (p["beta"] - p["rmean"] * s), 0.0)


def inception_b_reference(raw, x_nchw):
    x = jnp.transpose(x_nchw, (0, 2, 3, 1))
    b3 = _ref_conv_bn_relu(x, raw["branch3x3"], 2, 0)
    d = _ref_conv_bn_relu(x, raw["dbl1"], 1, 0)
    d = _ref_conv_bn_relu(d, raw["dbl2"], 1, 1)
    d = _ref_conv_bn_relu(d, raw["dbl3"], 2, 0)
    pool = lax.reduce_window(x, -jnp.inf, lax.max,
                             (1, 3, 3, 1), (1, 2, 2, 1), "VALID")
    out = jnp.concatenate([b3, d, pool], axis=-1)
    return jnp.transpose(out, (0, 3, 1, 2))


# ----------------------------------------------------------------------------
if __name__ == "__main__":
    key = jax.random.PRNGKey(0)
    k_param, k_data = jax.random.split(key)

    in_channels = 4
    x = jax.random.normal(k_data, (2, in_channels, 16, 16), jnp.float32)

    raw, packed = init_inception_b_params(k_param, in_channels)

    fwd = jax.jit(functools.partial(inception_b_forward, packed))
    out = jax.block_until_ready(fwd(x))

    # expected: (2, 32 + 96 + in_channels, 7, 7)
    assert out.shape == (2, 32 + 96 + in_channels, 7, 7), out.shape
    assert bool(jnp.all(jnp.isfinite(out)))

    # Correctness vs. a pure-JAX f32 reference (loose tolerance: the Pallas
    # path runs the MXU in bf16 with f32 accumulation and bf16 intermediates).
    ref = inception_b_reference(raw, x)
    max_err = float(jnp.max(jnp.abs(out - ref)))
    assert max_err < 0.3, f"max abs error vs reference: {max_err}"

    print("KERNEL_OK")
</pallas_src>

<mosaic_0001>
module attributes {stable_mosaic.version = 11 : i64} {
  func.func @kernel(%arg0: i32, %arg1: i32, %arg2: memref<1x1x4x8x4xf32, #tpu.memory_space<vmem>>, %arg3: memref<1x1x4x8x4xf32, #tpu.memory_space<vmem>>, %arg4: memref<9x4x128xbf16, #tpu.memory_space<vmem>>, %arg5: memref<1x128xf32, #tpu.memory_space<vmem>>, %arg6: memref<1x1x7x128xf32, #tpu.memory_space<vmem>>, %arg7: memref<1x1x7x4xf32, #tpu.memory_space<vmem>>) attributes {dimension_semantics = [#tpu.dimension_semantics<parallel>, #tpu.dimension_semantics<parallel>], iteration_bounds = array<i64: 2, 7>, scalar_prefetch = 0 : i64, scratch_operands = 0 : i64, tpu.core_type = #tpu.core_type<tc>, window_params = [{transform_indices = @transform_0, window_bounds = array<i64: 1, 1, 4, 8, 4>}, {transform_indices = @transform_1, window_bounds = array<i64: 1, 1, 4, 8, 4>}, {pipeline_mode = #tpu.pipeline_mode<synchronous>, transform_indices = @transform_2, window_bounds = array<i64: 9, 4, 128>}, {pipeline_mode = #tpu.pipeline_mode<synchronous>, transform_indices = @transform_3, window_bounds = array<i64: 1, 128>}, {transform_indices = @transform_4, window_bounds = array<i64: 1, 1, 7, 128>}, {transform_indices = @transform_5, window_bounds = array<i64: 1, 1, 7, 4>}]} {
    %c0 = arith.constant 0 : index
    %c0_0 = arith.constant 0 : index
    %c0_1 = arith.constant 0 : index
    %c0_2 = arith.constant 0 : index
    %c0_3 = arith.constant 0 : index
    %0 = vector.load %arg2[%c0, %c0_0, %c0_1, %c0_2, %c0_3] : memref<1x1x4x8x4xf32, #tpu.memory_space<vmem>>, vector<1x1x1x7x4xf32>
    %1 = vector.shape_cast %0 : vector<1x1x1x7x4xf32> to vector<7x4xf32>
    %2 = arith.truncf %1 : vector<7x4xf32> to vector<7x4xbf16>
    %c0_4 = arith.constant 0 : index
    %c0_5 = arith.constant 0 : index
    %c0_6 = arith.constant 0 : index
    %3 = vector.load %arg4[%c0_4, %c0_5, %c0_6] : memref<9x4x128xbf16, #tpu.memory_space<vmem>>, vector<1x4x128xbf16>
    %4 = vector.shape_cast %3 : vector<1x4x128xbf16> to vector<4x128xbf16>
    %cst = arith.constant dense<0.000000e+00> : vector<7x128xf32>
    %5 = tpu.matmul %2, %4, %cst {dimension_numbers = #tpu.dot_dimension_numbers<[1], [0], [0], [1], [0, 0, 1, 1], [], []>} : vector<7x4xbf16>, vector<4x128xbf16>, vector<7x128xf32> -> vector<7x128xf32>
    %c0_7 = arith.constant 0 : index
    %c0_8 = arith.constant 0 : index
    %c1 = arith.constant 1 : index
    %c0_9 = arith.constant 0 : index
    %c0_10 = arith.constant 0 : index
    %6 = vector.load %arg2[%c0_7, %c0_8, %c1, %c0_9, %c0_10] : memref<1x1x4x8x4xf32, #tpu.memory_space<vmem>>, vector<1x1x1x7x4xf32>
    %7 = vector.shape_cast %6 : vector<1x1x1x7x4xf32> to vector<7x4xf32>
    %8 = arith.truncf %7 : vector<7x4xf32> to vector<7x4xbf16>
    %c1_11 = arith.constant 1 : index
    %c0_12 = arith.constant 0 : index
    %c0_13 = arith.constant 0 : index
    %9 = vector.load %arg4[%c1_11, %c0_12, %c0_13] : memref<9x4x128xbf16, #tpu.memory_space<vmem>>, vector<1x4x128xbf16>
    %10 = vector.shape_cast %9 : vector<1x4x128xbf16> to vector<4x128xbf16>
    %cst_14 = arith.constant dense<0.000000e+00> : vector<7x128xf32>
    %11 = tpu.matmul %8, %10, %cst_14 {dimension_numbers = #tpu.dot_dimension_numbers<[1], [0], [0], [1], [0, 0, 1, 1], [], []>} : vector<7x4xbf16>, vector<4x128xbf16>, vector<7x128xf32> -> vector<7x128xf32>
    %12 = arith.addf %5, %11 : vector<7x128xf32>
    %13 = arith.maximumf %1, %7 : vector<7x4xf32>
    %c0_15 = arith.constant 0 : index
    %c0_16 = arith.constant 0 : index
    %c0_17 = arith.constant 0 : index
    %c1_18 = arith.constant 1 : index
    %c0_19 = arith.constant 0 : index
    %14 = vector.load %arg2[%c0_15, %c0_16, %c0_17, %c1_18, %c0_19] : memref<1x1x4x8x4xf32, #tpu.memory_space<vmem>>, vector<1x1x1x7x4xf32>
    %15 = vector.shape_cast %14 : vector<1x1x1x7x4xf32> to vector<7x4xf32>
    %16 = arith.truncf %15 : vector<7x4xf32> to vector<7x4xbf16>
    %c2 = arith.constant 2 : index
    %c0_20 = arith.constant 0 : index
    %c0_21 = arith.constant 0 : index
    %17 = vector.load %arg4[%c2, %c0_20, %c0_21] : memref<9x4x128xbf16, #tpu.memory_space<vmem>>, vector<1x4x128xbf16>
    %18 = vector.shape_cast %17 : vector<1x4x128xbf16> to vector<4x128xbf16>
    %cst_22 = arith.constant dense<0.000000e+00> : vector<7x128xf32>
    %19 = tpu.matmul %16, %18, %cst_22 {dimension_numbers = #tpu.dot_dimension_numbers<[1], [0], [0], [1], [0, 0, 1, 1], [], []>} : vector<7x4xbf16>, vector<4x128xbf16>, vector<7x128xf32> -> vector<7x128xf32>
    %20 = arith.addf %12, %19 : vector<7x128xf32>
    %21 = arith.maximumf %13, %15 : vector<7x4xf32>
    %c0_23 = arith.constant 0 : index
    %c0_24 = arith.constant 0 : index
    %c2_25 = arith.constant 2 : index
    %c0_26 = arith.constant 0 : index
    %c0_27 = arith.constant 0 : index
    %22 = vector.load %arg2[%c0_23, %c0_24, %c2_25, %c0_26, %c0_27] : memref<1x1x4x8x4xf32, #tpu.memory_space<vmem>>, vector<1x1x1x7x4xf32>
    %23 = vector.shape_cast %22 : vector<1x1x1x7x4xf32> to vector<7x4xf32>
    %24 = arith.truncf %23 : vector<7x4xf32> to vector<7x4xbf16>
    %c3 = arith.constant 3 : index
    %c0_28 = arith.constant 0 : index
    %c0_29 = arith.constant 0 : index
    %25 = vector.load %arg4[%c3, %c0_28, %c0_29] : memref<9x4x128xbf16, #tpu.memory_space<vmem>>, vector<1x4x128xbf16>
    %26 = vector.shape_cast %25 : vector<1x4x128xbf16> to vector<4x128xbf16>
    %cst_30 = arith.constant dense<0.000000e+00> : vector<7x128xf32>
    %27 = tpu.matmul %24, %26, %cst_30 {dimension_numbers = #tpu.dot_dimension_numbers<[1], [0], [0], [1], [0, 0, 1, 1], [], []>} : vector<7x4xbf16>, vector<4x128xbf16>, vector<7x128xf32> -> vector<7x128xf32>
    %28 = arith.addf %20, %27 : vector<7x128xf32>
    %29 = arith.maximumf %21, %23 : vector<7x4xf32>
    %c0_31 = arith.constant 0 : index
    %c0_32 = arith.constant 0 : index
    %c3_33 = arith.constant 3 : index
    %c0_34 = arith.constant 0 : index
    %c0_35 = arith.constant 0 : index
    %30 = vector.load %arg2[%c0_31, %c0_32, %c3_33, %c0_34, %c0_35] : memref<1x1x4x8x4xf32, #tpu.memory_space<vmem>>, vector<1x1x1x7x4xf32>
    %31 = vector.shape_cast %30 : vector<1x1x1x7x4xf32> to vector<7x4xf32>
    %32 = arith.truncf %31 : vector<7x4xf32> to vector<7x4xbf16>
    %c4 = arith.constant 4 : index
    %c0_36 = arith.constant 0 : index
    %c0_37 = arith.constant 0 : index
    %33 = vector.load %arg4[%c4, %c0_36, %c0_37] : memref<9x4x128xbf16, #tpu.memory_space<vmem>>, vector<1x4x128xbf16>
    %34 = vector.shape_cast %33 : vector<1x4x128xbf16> to vector<4x128xbf16>
    %cst_38 = arith.constant dense<0.000000e+00> : vector<7x128xf32>
    %35 = tpu.matmul %32, %34, %cst_38 {dimension_numbers = #tpu.dot_dimension_numbers<[1], [0], [0], [1], [0, 0, 1, 1], [], []>} : vector<7x4xbf16>, vector<4x128xbf16>, vector<7x128xf32> -> vector<7x128xf32>
    %36 = arith.addf %28, %35 : vector<7x128xf32>
    %37 = arith.maximumf %29, %31 : vector<7x4xf32>
    %c0_39 = arith.constant 0 : index
    %c0_40 = arith.constant 0 : index
    %c2_41 = arith.constant 2 : index
    %c1_42 = arith.constant 1 : index
    %c0_43 = arith.constant 0 : index
    %38 = vector.load %arg2[%c0_39, %c0_40, %c2_41, %c1_42, %c0_43] : memref<1x1x4x8x4xf32, #tpu.memory_space<vmem>>, vector<1x1x1x7x4xf32>
    %39 = vector.shape_cast %38 : vector<1x1x1x7x4xf32> to vector<7x4xf32>
    %40 = arith.truncf %39 : vector<7x4xf32> to vector<7x4xbf16>
    %c5 = arith.constant 5 : index
    %c0_44 = arith.constant 0 : index
    %c0_45 = arith.constant 0 : index
    %41 = vector.load %arg4[%c5, %c0_44, %c0_45] : memref<9x4x128xbf16, #tpu.memory_space<vmem>>, vector<1x4x128xbf16>
    %42 = vector.shape_cast %41 : vector<1x4x128xbf16> to vector<4x128xbf16>
    %cst_46 = arith.constant dense<0.000000e+00> : vector<7x128xf32>
    %43 = tpu.matmul %40, %42, %cst_46 {dimension_numbers = #tpu.dot_dimension_numbers<[1], [0], [0], [1], [0, 0, 1, 1], [], []>} : vector<7x4xbf16>, vector<4x128xbf16>, vector<7x128xf32> -> vector<7x128xf32>
    %44 = arith.addf %36, %43 : vector<7x128xf32>
    %45 = arith.maximumf %37, %39 : vector<7x4xf32>
    %c0_47 = arith.constant 0 : index
    %c0_48 = arith.constant 0 : index
    %c0_49 = arith.constant 0 : index
    %c0_50 = arith.constant 0 : index
    %c0_51 = arith.constant 0 : index
    %46 = vector.load %arg3[%c0_47, %c0_48, %c0_49, %c0_50, %c0_51] : memref<1x1x4x8x4xf32, #tpu.memory_space<vmem>>, vector<1x1x1x7x4xf32>
    %47 = vector.shape_cast %46 : vector<1x1x1x7x4xf32> to vector<7x4xf32>
    %48 = arith.truncf %47 : vector<7x4xf32> to vector<7x4xbf16>
    %c6 = arith.constant 6 : index
    %c0_52 = arith.constant 0 : index
    %c0_53 = arith.constant 0 : index
    %49 = vector.load %arg4[%c6, %c0_52, %c0_53] : memref<9x4x128xbf16, #tpu.memory_space<vmem>>, vector<1x4x128xbf16>
    %50 = vector.shape_cast %49 : vector<1x4x128xbf16> to vector<4x128xbf16>
    %cst_54 = arith.constant dense<0.000000e+00> : vector<7x128xf32>
    %51 = tpu.matmul %48, %50, %cst_54 {dimension_numbers = #tpu.dot_dimension_numbers<[1], [0], [0], [1], [0, 0, 1, 1], [], []>} : vector<7x4xbf16>, vector<4x128xbf16>, vector<7x128xf32> -> vector<7x128xf32>
    %52 = arith.addf %44, %51 : vector<7x128xf32>
    %53 = arith.maximumf %45, %47 : vector<7x4xf32>
    %c0_55 = arith.constant 0 : index
    %c0_56 = arith.constant 0 : index
    %c1_57 = arith.constant 1 : index
    %c0_58 = arith.constant 0 : index
    %c0_59 = arith.constant 0 : index
    %54 = vector.load %arg3[%c0_55, %c0_56, %c1_57, %c0_58, %c0_59] : memref<1x1x4x8x4xf32, #tpu.memory_space<vmem>>, vector<1x1x1x7x4xf32>
    %55 = vector.shape_cast %54 : vector<1x1x1x7x4xf32> to vector<7x4xf32>
    %56 = arith.truncf %55 : vector<7x4xf32> to vector<7x4xbf16>
    %c7 = arith.constant 7 : index
    %c0_60 = arith.constant 0 : index
    %c0_61 = arith.constant 0 : index
    %57 = vector.load %arg4[%c7, %c0_60, %c0_61] : memref<9x4x128xbf16, #tpu.memory_space<vmem>>, vector<1x4x128xbf16>
    %58 = vector.shape_cast %57 : vector<1x4x128xbf16> to vector<4x128xbf16>
    %cst_62 = arith.constant dense<0.000000e+00> : vector<7x128xf32>
    %59 = tpu.matmul %56, %58, %cst_62 {dimension_numbers = #tpu.dot_dimension_numbers<[1], [0], [0], [1], [0, 0, 1, 1], [], []>} : vector<7x4xbf16>, vector<4x128xbf16>, vector<7x128xf32> -> vector<7x128xf32>
    %60 = arith.addf %52, %59 : vector<7x128xf32>
    %61 = arith.maximumf %53, %55 : vector<7x4xf32>
    %c0_63 = arith.constant 0 : index
    %c0_64 = arith.constant 0 : index
    %c0_65 = arith.constant 0 : index
    %c1_66 = arith.constant 1 : index
    %c0_67 = arith.constant 0 : index
    %62 = vector.load %arg3[%c0_63, %c0_64, %c0_65, %c1_66, %c0_67] : memref<1x1x4x8x4xf32, #tpu.memory_space<vmem>>, vector<1x1x1x7x4xf32>
    %63 = vector.shape_cast %62 : vector<1x1x1x7x4xf32> to vector<7x4xf32>
    %64 = arith.truncf %63 : vector<7x4xf32> to vector<7x4xbf16>
    %c8 = arith.constant 8 : index
    %c0_68 = arith.constant 0 : index
    %c0_69 = arith.constant 0 : index
    %65 = vector.load %arg4[%c8, %c0_68, %c0_69] : memref<9x4x128xbf16, #tpu.memory_space<vmem>>, vector<1x4x128xbf16>
    %66 = vector.shape_cast %65 : vector<1x4x128xbf16> to vector<4x128xbf16>
    %cst_70 = arith.constant dense<0.000000e+00> : vector<7x128xf32>
    %67 = tpu.matmul %64, %66, %cst_70 {dimension_numbers = #tpu.dot_dimension_numbers<[1], [0], [0], [1], [0, 0, 1, 1], [], []>} : vector<7x4xbf16>, vector<4x128xbf16>, vector<7x128xf32> -> vector<7x128xf32>
    %68 = arith.addf %60, %67 : vector<7x128xf32>
    %69 = arith.maximumf %61, %63 : vector<7x4xf32>
    %c0_71 = arith.constant 0 : index
    %c0_72 = arith.constant 0 : index
    %70 = vector.load %arg5[%c0_71, %c0_72] : memref<1x128xf32, #tpu.memory_space<vmem>>, vector<1x128xf32>
    %71 = vector.broadcast %70 : vector<1x128xf32> to vector<7x128xf32>
    %72 = arith.addf %68, %71 : vector<7x128xf32>
    %cst_73 = arith.constant 0.000000e+00 : f32
    %73 = vector.broadcast %cst_73 : f32 to vector<7x128xf32>
    %74 = arith.maximumf %72, %73 : vector<7x128xf32>
    %c0_74 = arith.constant 0 : index
    %c0_75 = arith.constant 0 : index
    %c0_76 = arith.constant 0 : index
    %c0_77 = arith.constant 0 : index
    %75 = vector.load %arg6[%c0_74, %c0_75, %c0_76, %c0_77] : memref<1x1x7x128xf32, #tpu.memory_space<vmem>>, vector<1x1x7x128xf32>
    %76 = vector.shape_cast %75 : vector<1x1x7x128xf32> to vector<7x128xf32>
    %77 = vector.shape_cast %74 : vector<7x128xf32> to vector<1x1x7x128xf32>
    tpu.vector_store %arg6[%c0_74, %c0_75, %c0_76, %c0_77], %77 {strides = array<i32>} : memref<1x1x7x128xf32, #tpu.memory_space<vmem>>, vector<1x1x7x128xf32>,
    %c0_78 = arith.constant 0 : index
    %c0_79 = arith.constant 0 : index
    %c0_80 = arith.constant 0 : index
    %c0_81 = arith.constant 0 : index
    %78 = vector.load %arg7[%c0_78, %c0_79, %c0_80, %c0_81] : memref<1x1x7x4xf32, #tpu.memory_space<vmem>>, vector<1x1x7x4xf32>
    %79 = vector.shape_cast %78 : vector<1x1x7x4xf32> to vector<7x4xf32>
    %80 = vector.shape_cast %69 : vector<7x4xf32> to vector<1x1x7x4xf32>
    tpu.vector_store %arg7[%c0_78, %c0_79, %c0_80, %c0_81], %80 {strides = array<i32>} : memref<1x1x7x4xf32, #tpu.memory_space<vmem>>, vector<1x1x7x4xf32>,
    return
  }
  func.func @transform_0(%arg0: i32, %arg1: i32) -> (i32, i32, i32, i32, i32) {
    %c0_i32 = arith.constant 0 : i32
    %c0_i32_0 = arith.constant 0 : i32
    %c0_i32_1 = arith.constant 0 : i32
    %c0_i32_2 = arith.constant 0 : i32
    return %arg0, %arg1, %c0_i32, %c0_i32_0, %c0_i32_1 : i32, i32, i32, i32, i32
  }
  func.func @transform_1(%arg0: i32, %arg1: i32) -> (i32, i32, i32, i32, i32) {
    %c1_i32 = arith.constant 1 : i32
    %0 = arith.addi %arg1, %c1_i32 : i32
    %c0_i32 = arith.constant 0 : i32
    %c0_i32_0 = arith.constant 0 : i32
    %c0_i32_1 = arith.constant 0 : i32
    %c0_i32_2 = arith.constant 0 : i32
    return %arg0, %0, %c0_i32, %c0_i32_0, %c0_i32_1 : i32, i32, i32, i32, i32
  }
  func.func @transform_2(%arg0: i32, %arg1: i32) -> (i32, i32, i32) {
    %c0_i32 = arith.constant 0 : i32
    %c0_i32_0 = arith.constant 0 : i32
    %c0_i32_1 = arith.constant 0 : i32
    %c0_i32_2 = arith.constant 0 : i32
    return %c0_i32, %c0_i32_0, %c0_i32_1 : i32, i32, i32
  }
  func.func @transform_3(%arg0: i32, %arg1: i32) -> (i32, i32) {
    %c0_i32 = arith.constant 0 : i32
    %c0_i32_0 = arith.constant 0 : i32
    %c0_i32_1 = arith.constant 0 : i32
    return %c0_i32, %c0_i32_0 : i32, i32
  }
  func.func @transform_4(%arg0: i32, %arg1: i32) -> (i32, i32, i32, i32) {
    %c0_i32 = arith.constant 0 : i32
    %c0_i32_0 = arith.constant 0 : i32
    %c0_i32_1 = arith.constant 0 : i32
    return %arg0, %arg1, %c0_i32, %c0_i32_0 : i32, i32, i32, i32
  }
  func.func @transform_5(%arg0: i32, %arg1: i32) -> (i32, i32, i32, i32) {
    %c0_i32 = arith.constant 0 : i32
    %c0_i32_0 = arith.constant 0 : i32
    %c0_i32_1 = arith.constant 0 : i32
    return %arg0, %arg1, %c0_i32, %c0_i32_0 : i32, i32, i32, i32
  }
}

module attributes {stable_mosaic.version = 11 : i64} {
  func.func @_matmul_bias_relu_kernel(%arg0: i32, %arg1: i32, %arg2: i32, %arg3: memref<512x4xbf16, #tpu.memory_space<vmem>>, %arg4: memref<4x32xbf16, #tpu.memory_space<vmem>>, %arg5: memref<1x32xf32, #tpu.memory_space<vmem>>, %arg6: memref<512x32xbf16, #tpu.memory_space<vmem>>, %arg7: memref<512x32xf32, #tpu.memory_space<vmem>>) attributes {dimension_semantics = [#tpu.dimension_semantics<parallel>, #tpu.dimension_semantics<parallel>, #tpu.dimension_semantics<arbitrary>], iteration_bounds = array<i64: 1, 1, 1>, scalar_prefetch = 0 : i64, scratch_operands = 1 : i64, tpu.core_type = #tpu.core_type<tc>, window_params = [{transform_indices = @transform_0, window_bounds = array<i64: 512, 4>}, {transform_indices = @transform_1, window_bounds = array<i64: 4, 32>}, {transform_indices = @transform_2, window_bounds = array<i64: 1, 32>}, {transform_indices = @transform_3, window_bounds = array<i64: 512, 32>}]} {
    %c0_i32 = arith.constant 0 : i32
    %0 = arith.cmpi eq, %arg2, %c0_i32 : i32
    %1 = arith.extui %0 : i1 to i32
    %c0_i32_0 = arith.constant 0 : i32
    %2 = arith.cmpi ne, %1, %c0_i32_0 : i32
    scf.if %2 {
      %cst_10 = arith.constant 0.000000e+00 : f32
      %12 = vector.broadcast %cst_10 : f32 to vector<512x32xf32>
      %c0_11 = arith.constant 0 : index
      %c0_12 = arith.constant 0 : index
      %13 = vector.load %arg7[%c0_11, %c0_12] : memref<512x32xf32, #tpu.memory_space<vmem>>, vector<512x32xf32>
      tpu.vector_store %arg7[%c0_11, %c0_12], %12 {strides = array<i32>} : memref<512x32xf32, #tpu.memory_space<vmem>>, vector<512x32xf32>,
    } else {
    }
    %c0 = arith.constant 0 : index
    %c0_1 = arith.constant 0 : index
    %3 = vector.load %arg7[%c0, %c0_1] : memref<512x32xf32, #tpu.memory_space<vmem>>, vector<512x32xf32>
    %c0_2 = arith.constant 0 : index
    %c0_3 = arith.constant 0 : index
    %4 = vector.load %arg3[%c0_2, %c0_3] : memref<512x4xbf16, #tpu.memory_space<vmem>>, vector<512x4xbf16>
    %c0_4 = arith.constant 0 : index
    %c0_5 = arith.constant 0 : index
    %5 = vector.load %arg4[%c0_4, %c0_5] : memref<4x32xbf16, #tpu.memory_space<vmem>>, vector<4x32xbf16>
    %cst = arith.constant dense<0.000000e+00> : vector<512x32xf32>
    %6 = tpu.matmul %4, %5, %cst {dimension_numbers = #tpu.dot_dimension_numbers<[1], [0], [0], [1], [0, 0, 1, 1], [], []>} : vector<512x4xbf16>, vector<4x32xbf16>, vector<512x32xf32> -> vector<512x32xf32>
    %7 = arith.addf %3, %6 : vector<512x32xf32>
    %c0_6 = arith.constant 0 : index
    %c0_7 = arith.constant 0 : index
    %8 = vector.load %arg7[%c0_6, %c0_7] : memref<512x32xf32, #tpu.memory_space<vmem>>, vector<512x32xf32>
    tpu.vector_store %arg7[%c0_6, %c0_7], %7 {strides = array<i32>} : memref<512x32xf32, #tpu.memory_space<vmem>>, vector<512x32xf32>,
    %c0_i32_8 = arith.constant 0 : i32
    %9 = arith.cmpi eq, %arg2, %c0_i32_8 : i32
    %10 = arith.extui %9 : i1 to i32
    %c0_i32_9 = arith.constant 0 : i32
    %11 = arith.cmpi ne, %10, %c0_i32_9 : i32
    scf.if %11 {
      %c0_10 = arith.constant 0 : index
      %c0_11 = arith.constant 0 : index
      %12 = vector.load %arg7[%c0_10, %c0_11] : memref<512x32xf32, #tpu.memory_space<vmem>>, vector<512x32xf32>
      %c0_12 = arith.constant 0 : index
      %c0_13 = arith.constant 0 : index
      %13 = vector.load %arg5[%c0_12, %c0_13] : memref<1x32xf32, #tpu.memory_space<vmem>>, vector<1x32xf32>
      %14 = vector.broadcast %13 : vector<1x32xf32> to vector<512x32xf32>
      %15 = arith.addf %12, %14 : vector<512x32xf32>
      %cst_14 = arith.constant 0.000000e+00 : f32
      %16 = vector.broadcast %cst_14 : f32 to vector<512x32xf32>
      %17 = arith.maximumf %15, %16 : vector<512x32xf32>
      %18 = arith.truncf %17 : vector<512x32xf32> to vector<512x32xbf16>
      %c0_15 = arith.constant 0 : index
      %c0_16 = arith.constant 0 : index
      %19 = vector.load %arg6[%c0_15, %c0_16] : memref<512x32xbf16, #tpu.memory_space<vmem>>, vector<512x32xbf16>
      tpu.vector_store %arg6[%c0_15, %c0_16], %18 {strides = array<i32>} : memref<512x32xbf16, #tpu.memory_space<vmem>>, vector<512x32xbf16>,
    } else {
    }
    return
  }
  func.func @transform_0(%arg0: i32, %arg1: i32, %arg2: i32) -> (i32, i32) {
    %c0_i32 = arith.constant 0 : i32
    return %arg0, %arg2 : i32, i32
  }
  func.func @transform_1(%arg0: i32, %arg1: i32, %arg2: i32) -> (i32, i32) {
    %c0_i32 = arith.constant 0 : i32
    return %arg2, %arg1 : i32, i32
  }
  func.func @transform_2(%arg0: i32, %arg1: i32, %arg2: i32) -> (i32, i32) {
    %c0_i32 = arith.constant 0 : i32
    %c0_i32_0 = arith.constant 0 : i32
    return %c0_i32, %arg1 : i32, i32
  }
  func.func @transform_3(%arg0: i32, %arg1: i32, %arg2: i32) -> (i32, i32) {
    %c0_i32 = arith.constant 0 : i32
    return %arg0, %arg1 : i32, i32
  }
}

module attributes {stable_mosaic.version = 11 : i64} {
  func.func @kernel(%arg0: i32, %arg1: i32, %arg2: memref<1x1x18x32xbf16, #tpu.memory_space<vmem>>, %arg3: memref<1x1x18x32xbf16, #tpu.memory_space<vmem>>, %arg4: memref<1x1x18x32xbf16, #tpu.memory_space<vmem>>, %arg5: memref<9x32x64xbf16, #tpu.memory_space<vmem>>, %arg6: memref<1x64xf32, #tpu.memory_space<vmem>>, %arg7: memref<1x1x16x64xbf16, #tpu.memory_space<vmem>>) attributes {dimension_semantics = [#tpu.dimension_semantics<parallel>, #tpu.dimension_semantics<parallel>], iteration_bounds = array<i64: 2, 16>, scalar_prefetch = 0 : i64, scratch_operands = 0 : i64, tpu.core_type = #tpu.core_type<tc>, window_params = [{transform_indices = @transform_0, window_bounds = array<i64: 1, 1, 18, 32>}, {transform_indices = @transform_1, window_bounds = array<i64: 1, 1, 18, 32>}, {transform_indices = @transform_2, window_bounds = array<i64: 1, 1, 18, 32>}, {pipeline_mode = #tpu.pipeline_mode<synchronous>, transform_indices = @transform_3, window_bounds = array<i64: 9, 32, 64>}, {pipeline_mode = #tpu.pipeline_mode<synchronous>, transform_indices = @transform_4, window_bounds = array<i64: 1, 64>}, {transform_indices = @transform_5, window_bounds = array<i64: 1, 1, 16, 64>}]} {
    %c0 = arith.constant 0 : index
    %c0_0 = arith.constant 0 : index
    %c0_1 = arith.constant 0 : index
    %c0_2 = arith.constant 0 : index
    %0 = vector.load %arg2[%c0, %c0_0, %c0_1, %c0_2] : memref<1x1x18x32xbf16, #tpu.memory_space<vmem>>, vector<1x1x16x32xbf16>
    %1 = vector.shape_cast %0 : vector<1x1x16x32xbf16> to vector<16x32xbf16>
    %c0_3 = arith.constant 0 : index
    %c0_4 = arith.constant 0 : index
    %c0_5 = arith.constant 0 : index
    %2 = vector.load %arg5[%c0_3, %c0_4, %c0_5] : memref<9x32x64xbf16, #tpu.memory_space<vmem>>, vector<1x32x64xbf16>
    %3 = vector.shape_cast %2 : vector<1x32x64xbf16> to vector<32x64xbf16>
    %cst = arith.constant dense<0.000000e+00> : vector<16x64xf32>
    %4 = tpu.matmul %1, %3, %cst {dimension_numbers = #tpu.dot_dimension_numbers<[1], [0], [0], [1], [0, 0, 1, 1], [], []>} : vector<16x32xbf16>, vector<32x64xbf16>, vector<16x64xf32> -> vector<16x64xf32>
    %c0_6 = arith.constant 0 : index
    %c0_7 = arith.constant 0 : index
    %c1 = arith.constant 1 : index
    %c0_8 = arith.constant 0 : index
    %5 = vector.load %arg2[%c0_6, %c0_7, %c1, %c0_8] : memref<1x1x18x32xbf16, #tpu.memory_space<vmem>>, vector<1x1x16x32xbf16>
    %6 = vector.shape_cast %5 : vector<1x1x16x32xbf16> to vector<16x32xbf16>
    %c1_9 = arith.constant 1 : index
    %c0_10 = arith.constant 0 : index
    %c0_11 = arith.constant 0 : index
    %7 = vector.load %arg5[%c1_9, %c0_10, %c0_11] : memref<9x32x64xbf16, #tpu.memory_space<vmem>>, vector<1x32x64xbf16>
    %8 = vector.shape_cast %7 : vector<1x32x64xbf16> to vector<32x64xbf16>
    %cst_12 = arith.constant dense<0.000000e+00> : vector<16x64xf32>
    %9 = tpu.matmul %6, %8, %cst_12 {dimension_numbers = #tpu.dot_dimension_numbers<[1], [0], [0], [1], [0, 0, 1, 1], [], []>} : vector<16x32xbf16>, vector<32x64xbf16>, vector<16x64xf32> -> vector<16x64xf32>
    %10 = arith.addf %4, %9 : vector<16x64xf32>
    %c0_13 = arith.constant 0 : index
    %c0_14 = arith.constant 0 : index
    %c2 = arith.constant 2 : index
    %c0_15 = arith.constant 0 : index
    %11 = vector.load %arg2[%c0_13, %c0_14, %c2, %c0_15] : memref<1x1x18x32xbf16, #tpu.memory_space<vmem>>, vector<1x1x16x32xbf16>
    %12 = vector.shape_cast %11 : vector<1x1x16x32xbf16> to vector<16x32xbf16>
    %c2_16 = arith.constant 2 : index
    %c0_17 = arith.constant 0 : index
    %c0_18 = arith.constant 0 : index
    %13 = vector.load %arg5[%c2_16, %c0_17, %c0_18] : memref<9x32x64xbf16, #tpu.memory_space<vmem>>, vector<1x32x64xbf16>
    %14 = vector.shape_cast %13 : vector<1x32x64xbf16> to vector<32x64xbf16>
    %cst_19 = arith.constant dense<0.000000e+00> : vector<16x64xf32>
    %15 = tpu.matmul %12, %14, %cst_19 {dimension_numbers = #tpu.dot_dimension_numbers<[1], [0], [0], [1], [0, 0, 1, 1], [], []>} : vector<16x32xbf16>, vector<32x64xbf16>, vector<16x64xf32> -> vector<16x64xf32>
    %16 = arith.addf %10, %15 : vector<16x64xf32>
    %c0_20 = arith.constant 0 : index
    %c0_21 = arith.constant 0 : index
    %c0_22 = arith.constant 0 : index
    %c0_23 = arith.constant 0 : index
    %17 = vector.load %arg3[%c0_20, %c0_21, %c0_22, %c0_23] : memref<1x1x18x32xbf16, #tpu.memory_space<vmem>>, vector<1x1x16x32xbf16>
    %18 = vector.shape_cast %17 : vector<1x1x16x32xbf16> to vector<16x32xbf16>
    %c3 = arith.constant 3 : index
    %c0_24 = arith.constant 0 : index
    %c0_25 = arith.constant 0 : index
    %19 = vector.load %arg5[%c3, %c0_24, %c0_25] : memref<9x32x64xbf16, #tpu.memory_space<vmem>>, vector<1x32x64xbf16>
    %20 = vector.shape_cast %19 : vector<1x32x64xbf16> to vector<32x64xbf16>
    %cst_26 = arith.constant dense<0.000000e+00> : vector<16x64xf32>
    %21 = tpu.matmul %18, %20, %cst_26 {dimension_numbers = #tpu.dot_dimension_numbers<[1], [0], [0], [1], [0, 0, 1, 1], [], []>} : vector<16x32xbf16>, vector<32x64xbf16>, vector<16x64xf32> -> vector<16x64xf32>
    %22 = arith.addf %16, %21 : vector<16x64xf32>
    %c0_27 = arith.constant 0 : index
    %c0_28 = arith.constant 0 : index
    %c1_29 = arith.constant 1 : index
    %c0_30 = arith.constant 0 : index
    %23 = vector.load %arg3[%c0_27, %c0_28, %c1_29, %c0_30] : memref<1x1x18x32xbf16, #tpu.memory_space<vmem>>, vector<1x1x16x32xbf16>
    %24 = vector.shape_cast %23 : vector<1x1x16x32xbf16> to vector<16x32xbf16>
    %c4 = arith.constant 4 : index
    %c0_31 = arith.constant 0 : index
    %c0_32 = arith.constant 0 : index
    %25 = vector.load %arg5[%c4, %c0_31, %c0_32] : memref<9x32x64xbf16, #tpu.memory_space<vmem>>, vector<1x32x64xbf16>
    %26 = vector.shape_cast %25 : vector<1x32x64xbf16> to vector<32x64xbf16>
    %cst_33 = arith.constant dense<0.000000e+00> : vector<16x64xf32>
    %27 = tpu.matmul %24, %26, %cst_33 {dimension_numbers = #tpu.dot_dimension_numbers<[1], [0], [0], [1], [0, 0, 1, 1], [], []>} : vector<16x32xbf16>, vector<32x64xbf16>, vector<16x64xf32> -> vector<16x64xf32>
    %28 = arith.addf %22, %27 : vector<16x64xf32>
    %c0_34 = arith.constant 0 : index
    %c0_35 = arith.constant 0 : index
    %c2_36 = arith.constant 2 : index
    %c0_37 = arith.constant 0 : index
    %29 = vector.load %arg3[%c0_34, %c0_35, %c2_36, %c0_37] : memref<1x1x18x32xbf16, #tpu.memory_space<vmem>>, vector<1x1x16x32xbf16>
    %30 = vector.shape_cast %29 : vector<1x1x16x32xbf16> to vector<16x32xbf16>
    %c5 = arith.constant 5 : index
    %c0_38 = arith.constant 0 : index
    %c0_39 = arith.constant 0 : index
    %31 = vector.load %arg5[%c5, %c0_38, %c0_39] : memref<9x32x64xbf16, #tpu.memory_space<vmem>>, vector<1x32x64xbf16>
    %32 = vector.shape_cast %31 : vector<1x32x64xbf16> to vector<32x64xbf16>
    %cst_40 = arith.constant dense<0.000000e+00> : vector<16x64xf32>
    %33 = tpu.matmul %30, %32, %cst_40 {dimension_numbers = #tpu.dot_dimension_numbers<[1], [0], [0], [1], [0, 0, 1, 1], [], []>} : vector<16x32xbf16>, vector<32x64xbf16>, vector<16x64xf32> -> vector<16x64xf32>
    %34 = arith.addf %28, %33 : vector<16x64xf32>
    %c0_41 = arith.constant 0 : index
    %c0_42 = arith.constant 0 : index
    %c0_43 = arith.constant 0 : index
    %c0_44 = arith.constant 0 : index
    %35 = vector.load %arg4[%c0_41, %c0_42, %c0_43, %c0_44] : memref<1x1x18x32xbf16, #tpu.memory_space<vmem>>, vector<1x1x16x32xbf16>
    %36 = vector.shape_cast %35 : vector<1x1x16x32xbf16> to vector<16x32xbf16>
    %c6 = arith.constant 6 : index
    %c0_45 = arith.constant 0 : index
    %c0_46 = arith.constant 0 : index
    %37 = vector.load %arg5[%c6, %c0_45, %c0_46] : memref<9x32x64xbf16, #tpu.memory_space<vmem>>, vector<1x32x64xbf16>
    %38 = vector.shape_cast %37 : vector<1x32x64xbf16> to vector<32x64xbf16>
    %cst_47 = arith.constant dense<0.000000e+00> : vector<16x64xf32>
    %39 = tpu.matmul %36, %38, %cst_47 {dimension_numbers = #tpu.dot_dimension_numbers<[1], [0], [0], [1], [0, 0, 1, 1], [], []>} : vector<16x32xbf16>, vector<32x64xbf16>, vector<16x64xf32> -> vector<16x64xf32>
    %40 = arith.addf %34, %39 : vector<16x64xf32>
    %c0_48 = arith.constant 0 : index
    %c0_49 = arith.constant 0 : index
    %c1_50 = arith.constant 1 : index
    %c0_51 = arith.constant 0 : index
    %41 = vector.load %arg4[%c0_48, %c0_49, %c1_50, %c0_51] : memref<1x1x18x32xbf16, #tpu.memory_space<vmem>>, vector<1x1x16x32xbf16>
    %42 = vector.shape_cast %41 : vector<1x1x16x32xbf16> to vector<16x32xbf16>
    %c7 = arith.constant 7 : index
    %c0_52 = arith.constant 0 : index
    %c0_53 = arith.constant 0 : index
    %43 = vector.load %arg5[%c7, %c0_52, %c0_53] : memref<9x32x64xbf16, #tpu.memory_space<vmem>>, vector<1x32x64xbf16>
    %44 = vector.shape_cast %43 : vector<1x32x64xbf16> to vector<32x64xbf16>
    %cst_54 = arith.constant dense<0.000000e+00> : vector<16x64xf32>
    %45 = tpu.matmul %42, %44, %cst_54 {dimension_numbers = #tpu.dot_dimension_numbers<[1], [0], [0], [1], [0, 0, 1, 1], [], []>} : vector<16x32xbf16>, vector<32x64xbf16>, vector<16x64xf32> -> vector<16x64xf32>
    %46 = arith.addf %40, %45 : vector<16x64xf32>
    %c0_55 = arith.constant 0 : index
    %c0_56 = arith.constant 0 : index
    %c2_57 = arith.constant 2 : index
    %c0_58 = arith.constant 0 : index
    %47 = vector.load %arg4[%c0_55, %c0_56, %c2_57, %c0_58] : memref<1x1x18x32xbf16, #tpu.memory_space<vmem>>, vector<1x1x16x32xbf16>
    %48 = vector.shape_cast %47 : vector<1x1x16x32xbf16> to vector<16x32xbf16>
    %c8 = arith.constant 8 : index
    %c0_59 = arith.constant 0 : index
    %c0_60 = arith.constant 0 : index
    %49 = vector.load %arg5[%c8, %c0_59, %c0_60] : memref<9x32x64xbf16, #tpu.memory_space<vmem>>, vector<1x32x64xbf16>
    %50 = vector.shape_cast %49 : vector<1x32x64xbf16> to vector<32x64xbf16>
    %cst_61 = arith.constant dense<0.000000e+00> : vector<16x64xf32>
    %51 = tpu.matmul %48, %50, %cst_61 {dimension_numbers = #tpu.dot_dimension_numbers<[1], [0], [0], [1], [0, 0, 1, 1], [], []>} : vector<16x32xbf16>, vector<32x64xbf16>, vector<16x64xf32> -> vector<16x64xf32>
    %52 = arith.addf %46, %51 : vector<16x64xf32>
    %c0_62 = arith.constant 0 : index
    %c0_63 = arith.constant 0 : index
    %53 = vector.load %arg6[%c0_62, %c0_63] : memref<1x64xf32, #tpu.memory_space<vmem>>, vector<1x64xf32>
    %54 = vector.broadcast %53 : vector<1x64xf32> to vector<16x64xf32>
    %55 = arith.addf %52, %54 : vector<16x64xf32>
    %cst_64 = arith.constant 0.000000e+00 : f32
    %56 = vector.broadcast %cst_64 : f32 to vector<16x64xf32>
    %57 = arith.maximumf %55, %56 : vector<16x64xf32>
    %58 = arith.truncf %57 : vector<16x64xf32> to vector<16x64xbf16>
    %c0_65 = arith.constant 0 : index
    %c0_66 = arith.constant 0 : index
    %c0_67 = arith.constant 0 : index
    %c0_68 = arith.constant 0 : index
    %59 = vector.load %arg7[%c0_65, %c0_66, %c0_67, %c0_68] : memref<1x1x16x64xbf16, #tpu.memory_space<vmem>>, vector<1x1x16x64xbf16>
    %60 = vector.shape_cast %59 : vector<1x1x16x64xbf16> to vector<16x64xbf16>
    %61 = vector.shape_cast %58 : vector<16x64xbf16> to vector<1x1x16x64xbf16>
    tpu.vector_store %arg7[%c0_65, %c0_66, %c0_67, %c0_68], %61 {strides = array<i32>} : memref<1x1x16x64xbf16, #tpu.memory_space<vmem>>, vector<1x1x16x64xbf16>,
    return
  }
  func.func @transform_0(%arg0: i32, %arg1: i32) -> (i32, i32, i32, i32) {
    %c0_i32 = arith.constant 0 : i32
    %c0_i32_0 = arith.constant 0 : i32
    %c0_i32_1 = arith.constant 0 : i32
    return %arg0, %arg1, %c0_i32, %c0_i32_0 : i32, i32, i32, i32
  }
  func.func @transform_1(%arg0: i32, %arg1: i32) -> (i32, i32, i32, i32) {
    %c1_i32 = arith.constant 1 : i32
    %0 = arith.addi %arg1, %c1_i32 : i32
    %c0_i32 = arith.constant 0 : i32
    %c0_i32_0 = arith.constant 0 : i32
    %c0_i32_1 = arith.constant 0 : i32
    return %arg0, %0, %c0_i32, %c0_i32_0 : i32, i32, i32, i32
  }
  func.func @transform_2(%arg0: i32, %arg1: i32) -> (i32, i32, i32, i32) {
    %c2_i32 = arith.constant 2 : i32
    %0 = arith.addi %arg1, %c2_i32 : i32
    %c0_i32 = arith.constant 0 : i32
    %c0_i32_0 = arith.constant 0 : i32
    %c0_i32_1 = arith.constant 0 : i32
    return %arg0, %0, %c0_i32, %c0_i32_0 : i32, i32, i32, i32
  }
  func.func @transform_3(%arg0: i32, %arg1: i32) -> (i32, i32, i32) {
    %c0_i32 = arith.constant 0 : i32
    %c0_i32_0 = arith.constant 0 : i32
    %c0_i32_1 = arith.constant 0 : i32
    %c0_i32_2 = arith.constant 0 : i32
    return %c0_i32, %c0_i32_0, %c0_i32_1 : i32, i32, i32
  }
  func.func @transform_4(%arg0: i32, %arg1: i32) -> (i32, i32) {
    %c0_i32 = arith.constant 0 : i32
    %c0_i32_0 = arith.constant 0 : i32
    %c0_i32_1 = arith.constant 0 : i32
    return %c0_i32, %c0_i32_0 : i32, i32
  }
  func.func @transform_5(%arg0: i32, %arg1: i32) -> (i32, i32, i32, i32) {
    %c0_i32 = arith.constant 0 : i32
    %c0_i32_0 = arith.constant 0 : i32
    %c0_i32_1 = arith.constant 0 : i32
    return %arg0, %arg1, %c0_i32, %c0_i32_0 : i32, i32, i32, i32
  }
}

module attributes {stable_mosaic.version = 11 : i64} {
  func.func @kernel(%arg0: i32, %arg1: i32, %arg2: memref<1x1x4x8x64xbf16, #tpu.memory_space<vmem>>, %arg3: memref<1x1x4x8x64xbf16, #tpu.memory_space<vmem>>, %arg4: memref<9x64x128xbf16, #tpu.memory_space<vmem>>, %arg5: memref<1x128xf32, #tpu.memory_space<vmem>>, %arg6: memref<1x1x7x128xf32, #tpu.memory_space<vmem>>) attributes {dimension_semantics = [#tpu.dimension_semantics<parallel>, #tpu.dimension_semantics<parallel>], iteration_bounds = array<i64: 2, 7>, scalar_prefetch = 0 : i64, scratch_operands = 0 : i64, tpu.core_type = #tpu.core_type<tc>, window_params = [{transform_indices = @transform_0, window_bounds = array<i64: 1, 1, 4, 8, 64>}, {transform_indices = @transform_1, window_bounds = array<i64: 1, 1, 4, 8, 64>}, {pipeline_mode = #tpu.pipeline_mode<synchronous>, transform_indices = @transform_2, window_bounds = array<i64: 9, 64, 128>}, {pipeline_mode = #tpu.pipeline_mode<synchronous>, transform_indices = @transform_3, window_bounds = array<i64: 1, 128>}, {transform_indices = @transform_4, window_bounds = array<i64: 1, 1, 7, 128>}]} {
    %c0 = arith.constant 0 : index
    %c0_0 = arith.constant 0 : index
    %c0_1 = arith.constant 0 : index
    %c0_2 = arith.constant 0 : index
    %c0_3 = arith.constant 0 : index
    %0 = vector.load %arg2[%c0, %c0_0, %c0_1, %c0_2, %c0_3] : memref<1x1x4x8x64xbf16, #tpu.memory_space<vmem>>, vector<1x1x1x7x64xbf16>
    %1 = vector.shape_cast %0 : vector<1x1x1x7x64xbf16> to vector<7x64xbf16>
    %c0_4 = arith.constant 0 : index
    %c0_5 = arith.constant 0 : index
    %c0_6 = arith.constant 0 : index
    %2 = vector.load %arg4[%c0_4, %c0_5, %c0_6] : memref<9x64x128xbf16, #tpu.memory_space<vmem>>, vector<1x64x128xbf16>
    %3 = vector.shape_cast %2 : vector<1x64x128xbf16> to vector<64x128xbf16>
    %cst = arith.constant dense<0.000000e+00> : vector<7x128xf32>
    %4 = tpu.matmul %1, %3, %cst {dimension_numbers = #tpu.dot_dimension_numbers<[1], [0], [0], [1], [0, 0, 1, 1], [], []>} : vector<7x64xbf16>, vector<64x128xbf16>, vector<7x128xf32> -> vector<7x128xf32>
    %c0_7 = arith.constant 0 : index
    %c0_8 = arith.constant 0 : index
    %c1 = arith.constant 1 : index
    %c0_9 = arith.constant 0 : index
    %c0_10 = arith.constant 0 : index
    %5 = vector.load %arg2[%c0_7, %c0_8, %c1, %c0_9, %c0_10] : memref<1x1x4x8x64xbf16, #tpu.memory_space<vmem>>, vector<1x1x1x7x64xbf16>
    %6 = vector.shape_cast %5 : vector<1x1x1x7x64xbf16> to vector<7x64xbf16>
    %c1_11 = arith.constant 1 : index
    %c0_12 = arith.constant 0 : index
    %c0_13 = arith.constant 0 : index
    %7 = vector.load %arg4[%c1_11, %c0_12, %c0_13] : memref<9x64x128xbf16, #tpu.memory_space<vmem>>, vector<1x64x128xbf16>
    %8 = vector.shape_cast %7 : vector<1x64x128xbf16> to vector<64x128xbf16>
    %cst_14 = arith.constant dense<0.000000e+00> : vector<7x128xf32>
    %9 = tpu.matmul %6, %8, %cst_14 {dimension_numbers = #tpu.dot_dimension_numbers<[1], [0], [0], [1], [0, 0, 1, 1], [], []>} : vector<7x64xbf16>, vector<64x128xbf16>, vector<7x128xf32> -> vector<7x128xf32>
    %10 = arith.addf %4, %9 : vector<7x128xf32>
    %c0_15 = arith.constant 0 : index
    %c0_16 = arith.constant 0 : index
    %c0_17 = arith.constant 0 : index
    %c1_18 = arith.constant 1 : index
    %c0_19 = arith.constant 0 : index
    %11 = vector.load %arg2[%c0_15, %c0_16, %c0_17, %c1_18, %c0_19] : memref<1x1x4x8x64xbf16, #tpu.memory_space<vmem>>, vector<1x1x1x7x64xbf16>
    %12 = vector.shape_cast %11 : vector<1x1x1x7x64xbf16> to vector<7x64xbf16>
    %c2 = arith.constant 2 : index
    %c0_20 = arith.constant 0 : index
    %c0_21 = arith.constant 0 : index
    %13 = vector.load %arg4[%c2, %c0_20, %c0_21] : memref<9x64x128xbf16, #tpu.memory_space<vmem>>, vector<1x64x128xbf16>
    %14 = vector.shape_cast %13 : vector<1x64x128xbf16> to vector<64x128xbf16>
    %cst_22 = arith.constant dense<0.000000e+00> : vector<7x128xf32>
    %15 = tpu.matmul %12, %14, %cst_22 {dimension_numbers = #tpu.dot_dimension_numbers<[1], [0], [0], [1], [0, 0, 1, 1], [], []>} : vector<7x64xbf16>, vector<64x128xbf16>, vector<7x128xf32> -> vector<7x128xf32>
    %16 = arith.addf %10, %15 : vector<7x128xf32>
    %c0_23 = arith.constant 0 : index
    %c0_24 = arith.constant 0 : index
    %c2_25 = arith.constant 2 : index
    %c0_26 = arith.constant 0 : index
    %c0_27 = arith.constant 0 : index
    %17 = vector.load %arg2[%c0_23, %c0_24, %c2_25, %c0_26, %c0_27] : memref<1x1x4x8x64xbf16, #tpu.memory_space<vmem>>, vector<1x1x1x7x64xbf16>
    %18 = vector.shape_cast %17 : vector<1x1x1x7x64xbf16> to vector<7x64xbf16>
    %c3 = arith.constant 3 : index
    %c0_28 = arith.constant 0 : index
    %c0_29 = arith.constant 0 : index
    %19 = vector.load %arg4[%c3, %c0_28, %c0_29] : memref<9x64x128xbf16, #tpu.memory_space<vmem>>, vector<1x64x128xbf16>
    %20 = vector.shape_cast %19 : vector<1x64x128xbf16> to vector<64x128xbf16>
    %cst_30 = arith.constant dense<0.000000e+00> : vector<7x128xf32>
    %21 = tpu.matmul %18, %20, %cst_30 {dimension_numbers = #tpu.dot_dimension_numbers<[1], [0], [0], [1], [0, 0, 1, 1], [], []>} : vector<7x64xbf16>, vector<64x128xbf16>, vector<7x128xf32> -> vector<7x128xf32>
    %22 = arith.addf %16, %21 : vector<7x128xf32>
    %c0_31 = arith.constant 0 : index
    %c0_32 = arith.constant 0 : index
    %c3_33 = arith.constant 3 : index
    %c0_34 = arith.constant 0 : index
    %c0_35 = arith.constant 0 : index
    %23 = vector.load %arg2[%c0_31, %c0_32, %c3_33, %c0_34, %c0_35] : memref<1x1x4x8x64xbf16, #tpu.memory_space<vmem>>, vector<1x1x1x7x64xbf16>
    %24 = vector.shape_cast %23 : vector<1x1x1x7x64xbf16> to vector<7x64xbf16>
    %c4 = arith.constant 4 : index
    %c0_36 = arith.constant 0 : index
    %c0_37 = arith.constant 0 : index
    %25 = vector.load %arg4[%c4, %c0_36, %c0_37] : memref<9x64x128xbf16, #tpu.memory_space<vmem>>, vector<1x64x128xbf16>
    %26 = vector.shape_cast %25 : vector<1x64x128xbf16> to vector<64x128xbf16>
    %cst_38 = arith.constant dense<0.000000e+00> : vector<7x128xf32>
    %27 = tpu.matmul %24, %26, %cst_38 {dimension_numbers = #tpu.dot_dimension_numbers<[1], [0], [0], [1], [0, 0, 1, 1], [], []>} : vector<7x64xbf16>, vector<64x128xbf16>, vector<7x128xf32> -> vector<7x128xf32>
    %28 = arith.addf %22, %27 : vector<7x128xf32>
    %c0_39 = arith.constant 0 : index
    %c0_40 = arith.constant 0 : index
    %c2_41 = arith.constant 2 : index
    %c1_42 = arith.constant 1 : index
    %c0_43 = arith.constant 0 : index
    %29 = vector.load %arg2[%c0_39, %c0_40, %c2_41, %c1_42, %c0_43] : memref<1x1x4x8x64xbf16, #tpu.memory_space<vmem>>, vector<1x1x1x7x64xbf16>
    %30 = vector.shape_cast %29 : vector<1x1x1x7x64xbf16> to vector<7x64xbf16>
    %c5 = arith.constant 5 : index
    %c0_44 = arith.constant 0 : index
    %c0_45 = arith.constant 0 : index
    %31 = vector.load %arg4[%c5, %c0_44, %c0_45] : memref<9x64x128xbf16, #tpu.memory_space<vmem>>, vector<1x64x128xbf16>
    %32 = vector.shape_cast %31 : vector<1x64x128xbf16> to vector<64x128xbf16>
    %cst_46 = arith.constant dense<0.000000e+00> : vector<7x128xf32>
    %33 = tpu.matmul %30, %32, %cst_46 {dimension_numbers = #tpu.dot_dimension_numbers<[1], [0], [0], [1], [0, 0, 1, 1], [], []>} : vector<7x64xbf16>, vector<64x128xbf16>, vector<7x128xf32> -> vector<7x128xf32>
    %34 = arith.addf %28, %33 : vector<7x128xf32>
    %c0_47 = arith.constant 0 : index
    %c0_48 = arith.constant 0 : index
    %c0_49 = arith.constant 0 : index
    %c0_50 = arith.constant 0 : index
    %c0_51 = arith.constant 0 : index
    %35 = vector.load %arg3[%c0_47, %c0_48, %c0_49, %c0_50, %c0_51] : memref<1x1x4x8x64xbf16, #tpu.memory_space<vmem>>, vector<1x1x1x7x64xbf16>
    %36 = vector.shape_cast %35 : vector<1x1x1x7x64xbf16> to vector<7x64xbf16>
    %c6 = arith.constant 6 : index
    %c0_52 = arith.constant 0 : index
    %c0_53 = arith.constant 0 : index
    %37 = vector.load %arg4[%c6, %c0_52, %c0_53] : memref<9x64x128xbf16, #tpu.memory_space<vmem>>, vector<1x64x128xbf16>
    %38 = vector.shape_cast %37 : vector<1x64x128xbf16> to vector<64x128xbf16>
    %cst_54 = arith.constant dense<0.000000e+00> : vector<7x128xf32>
    %39 = tpu.matmul %36, %38, %cst_54 {dimension_numbers = #tpu.dot_dimension_numbers<[1], [0], [0], [1], [0, 0, 1, 1], [], []>} : vector<7x64xbf16>, vector<64x128xbf16>, vector<7x128xf32> -> vector<7x128xf32>
    %40 = arith.addf %34, %39 : vector<7x128xf32>
    %c0_55 = arith.constant 0 : index
    %c0_56 = arith.constant 0 : index
    %c1_57 = arith.constant 1 : index
    %c0_58 = arith.constant 0 : index
    %c0_59 = arith.constant 0 : index
    %41 = vector.load %arg3[%c0_55, %c0_56, %c1_57, %c0_58, %c0_59] : memref<1x1x4x8x64xbf16, #tpu.memory_space<vmem>>, vector<1x1x1x7x64xbf16>
    %42 = vector.shape_cast %41 : vector<1x1x1x7x64xbf16> to vector<7x64xbf16>
    %c7 = arith.constant 7 : index
    %c0_60 = arith.constant 0 : index
    %c0_61 = arith.constant 0 : index
    %43 = vector.load %arg4[%c7, %c0_60, %c0_61] : memref<9x64x128xbf16, #tpu.memory_space<vmem>>, vector<1x64x128xbf16>
    %44 = vector.shape_cast %43 : vector<1x64x128xbf16> to vector<64x128xbf16>
    %cst_62 = arith.constant dense<0.000000e+00> : vector<7x128xf32>
    %45 = tpu.matmul %42, %44, %cst_62 {dimension_numbers = #tpu.dot_dimension_numbers<[1], [0], [0], [1], [0, 0, 1, 1], [], []>} : vector<7x64xbf16>, vector<64x128xbf16>, vector<7x128xf32> -> vector<7x128xf32>
    %46 = arith.addf %40, %45 : vector<7x128xf32>
    %c0_63 = arith.constant 0 : index
    %c0_64 = arith.constant 0 : index
    %c0_65 = arith.constant 0 : index
    %c1_66 = arith.constant 1 : index
    %c0_67 = arith.constant 0 : index
    %47 = vector.load %arg3[%c0_63, %c0_64, %c0_65, %c1_66, %c0_67] : memref<1x1x4x8x64xbf16, #tpu.memory_space<vmem>>, vector<1x1x1x7x64xbf16>
    %48 = vector.shape_cast %47 : vector<1x1x1x7x64xbf16> to vector<7x64xbf16>
    %c8 = arith.constant 8 : index
    %c0_68 = arith.constant 0 : index
    %c0_69 = arith.constant 0 : index
    %49 = vector.load %arg4[%c8, %c0_68, %c0_69] : memref<9x64x128xbf16, #tpu.memory_space<vmem>>, vector<1x64x128xbf16>
    %50 = vector.shape_cast %49 : vector<1x64x128xbf16> to vector<64x128xbf16>
    %cst_70 = arith.constant dense<0.000000e+00> : vector<7x128xf32>
    %51 = tpu.matmul %48, %50, %cst_70 {dimension_numbers = #tpu.dot_dimension_numbers<[1], [0], [0], [1], [0, 0, 1, 1], [], []>} : vector<7x64xbf16>, vector<64x128xbf16>, vector<7x128xf32> -> vector<7x128xf32>
    %52 = arith.addf %46, %51 : vector<7x128xf32>
    %c0_71 = arith.constant 0 : index
    %c0_72 = arith.constant 0 : index
    %53 = vector.load %arg5[%c0_71, %c0_72] : memref<1x128xf32, #tpu.memory_space<vmem>>, vector<1x128xf32>
    %54 = vector.broadcast %53 : vector<1x128xf32> to vector<7x128xf32>
    %55 = arith.addf %52, %54 : vector<7x128xf32>
    %cst_73 = arith.constant 0.000000e+00 : f32
    %56 = vector.broadcast %cst_73 : f32 to vector<7x128xf32>
    %57 = arith.maximumf %55, %56 : vector<7x128xf32>
    %c0_74 = arith.constant 0 : index
    %c0_75 = arith.constant 0 : index
    %c0_76 = arith.constant 0 : index
    %c0_77 = arith.constant 0 : index
    %58 = vector.load %arg6[%c0_74, %c0_75, %c0_76, %c0_77] : memref<1x1x7x128xf32, #tpu.memory_space<vmem>>, vector<1x1x7x128xf32>
    %59 = vector.shape_cast %58 : vector<1x1x7x128xf32> to vector<7x128xf32>
    %60 = vector.shape_cast %57 : vector<7x128xf32> to vector<1x1x7x128xf32>
    tpu.vector_store %arg6[%c0_74, %c0_75, %c0_76, %c0_77], %60 {strides = array<i32>} : memref<1x1x7x128xf32, #tpu.memory_space<vmem>>, vector<1x1x7x128xf32>,
    return
  }
  func.func @transform_0(%arg0: i32, %arg1: i32) -> (i32, i32, i32, i32, i32) {
    %c0_i32 = arith.constant 0 : i32
    %c0_i32_0 = arith.constant 0 : i32
    %c0_i32_1 = arith.constant 0 : i32
    %c0_i32_2 = arith.constant 0 : i32
    return %arg0, %arg1, %c0_i32, %c0_i32_0, %c0_i32_1 : i32, i32, i32, i32, i32
  }
  func.func @transform_1(%arg0: i32, %arg1: i32) -> (i32, i32, i32, i32, i32) {
    %c1_i32 = arith.constant 1 : i32
    %0 = arith.addi %arg1, %c1_i32 : i32
    %c0_i32 = arith.constant 0 : i32
    %c0_i32_0 = arith.constant 0 : i32
    %c0_i32_1 = arith.constant 0 : i32
    %c0_i32_2 = arith.constant 0 : i32
    return %arg0, %0, %c0_i32, %c0_i32_0, %c0_i32_1 : i32, i32, i32, i32, i32
  }
  func.func @transform_2(%arg0: i32, %arg1: i32) -> (i32, i32, i32) {
    %c0_i32 = arith.constant 0 : i32
    %c0_i32_0 = arith.constant 0 : i32
    %c0_i32_1 = arith.constant 0 : i32
    %c0_i32_2 = arith.constant 0 : i32
    return %c0_i32, %c0_i32_0, %c0_i32_1 : i32, i32, i32
  }
  func.func @transform_3(%arg0: i32, %arg1: i32) -> (i32, i32) {
    %c0_i32 = arith.constant 0 : i32
    %c0_i32_0 = arith.constant 0 : i32
    %c0_i32_1 = arith.constant 0 : i32
    return %c0_i32, %c0_i32_0 : i32, i32
  }
  func.func @transform_4(%arg0: i32, %arg1: i32) -> (i32, i32, i32, i32) {
    %c0_i32 = arith.constant 0 : i32
    %c0_i32_0 = arith.constant 0 : i32
    %c0_i32_1 = arith.constant 0 : i32
    return %arg0, %arg1, %c0_i32, %c0_i32_0 : i32, i32, i32, i32
  }
}

</mosaic_0001>

<bundles_post_ra>
// kernel: inception_b_forward.4
= control target key start
LH: loop header
LB: loop body
LE: loop exit
PB: predicated region body
PF: predicated region fallthrough
CT: control target
= control target key end

     0   :  { %s1186_s18 = smov 0   ;;  %s1188_s19 = smov 0   ;;  %s1352_s0 = inlined_call_operand.vmem [shape: f32[2,8,4,8,4], index: 0, kind: input, shape index: {}, may-alias: {0,1}]   ;;  %s1353_s1 = inlined_call_operand.vmem [shape: f32[2,8,4,8,4], index: 1, kind: input, shape index: {}, may-alias: {0,1}]   ;;  %s1354_s2 = inlined_call_operand.vmem [shape: bf16[9,4,128], index: 2, kind: input, shape index: {}]   ;;  %s1355_s3 = inlined_call_operand.vmem [shape: f32[1,128], index: 3, kind: input, shape index: {}]   ;;  %s1356_s4 = inlined_call_operand.vmem [shape: f32[2,7,7,128], index: 4, kind: output, shape index: {0}]   ;;  %s1357_s5 = inlined_call_operand.vmem [shape: f32[2,7,7,4], index: 5, kind: output, shape index: {1}]  }
   0x1   :  { %s1190_s20 = smov 0   ;;  %s1192_s21 = smov 0  }
   0x2   :  { %s1194_s22 = smov 0  }
   0x3 LB: > { %s25_s23 = sadd.s32 1, %s1144_s20  ;;  %s28_s24 = sadd.s32 1, %s1148_s21  ;;  %s1152_s22 = sphi %s1194_s22, %s16_s22   ;;  %s1148_s21 = sphi %s1192_s21, %s1361_s21   ;;  %s1144_s20 = sphi %s1190_s20, %s1360_s20   ;;  %s1140_s19 = sphi %s1188_s19, %s1359_s19   ;;  %s1136_s18 = sphi %s1186_s18, %s1358_s18  }
   0x4   : > { %p26_p0 = scmp.ge.s32.totalorder %s25_s23, 7  ;;  %p965_p1 = scmp.ge.s32.totalorder %s1152_s22, 1 }
   0x5   : > { %p232_p2 = scmp.lt.s32.totalorder %s1152_s22, 15 }
   0x6   : > { %s1363_s23 = smov (%p26_p0, %s25_s23), 0  ;;  %s1365_s24 = smov (!%p26_p0, %s28_s24), %s1148_s21 }
   0x7   : > { %p233_p3 = pnand %p965_p1, %p232_p2  ;;  %p30_p4 = scmp.ge.s32.totalorder %s1365_s24, 2 }
   0x8   : > { %v975_v0 = vld [vmem:[%s1354_s2 + $0x2] sm:$0x3] (!%p233_p3)  ;;  %vm334_vm0 = vcmask (!%p233_p3), 1041408   ;;  %v324_v1 = vld [vmem:[%s1354_s2] sm:$0x3] (!%p233_p3)  ;;  %v1154_v2 = vmov (!%p233_p3), 0.0  }
   0x9   : > { %s1367_s24 = smov (%p30_p4, %s1365_s24), 0  ;;  %236 = sbr.rel (%p233_p3) target bundleno = 277 (0x115), region = 36 }
   0xa   : > { %1017 = vmatprep.subr.bf16.mxu0 (!%p233_p3), %v1154_v2  ;;  %v336_v3 = vsel (!%p233_p3), %vm334_vm0, %v975_v0, 0  ;;  %1023 = vmatprep.subr.bf16.mxu1 (!%p233_p3), %v1154_v2  ;;  %v382_v4 = vsel (!%p233_p3), %vm334_vm0, %v324_v1, 0  ;;  %p285_p5 = scmp.lt.s32.totalorder (!%p233_p3), %s1140_s19, 1  ;;  %p287_p6 = scmp.lt.s32.totalorder (!%p233_p3), %s1136_s18, 7  ;;  %vm1155_vm1 = vmmov (!%p233_p3), 0   ;;  %vm330_vm2 = vcmask (!%p233_p3), 31744  }
   0xb   : > { %1018 = vmatpush3.bf16.msra.mxu0 (!%p233_p3), %v336_v3  ;;  %1024 = vmatpush3.bf16.msra.mxu1 (!%p233_p3), %v382_v4  ;;  %s294_s6 = sadd.s32 (!%p233_p3), 1, %s1136_s18  ;;  %v978_v5 = vld [vmem:[%s1354_s2 + $0x4] sm:$0x3] (!%p233_p3)  ;;  %v981_v6 = vld [vmem:[%s1354_s2 + $0x6] sm:$0x3] (!%p233_p3)  ;;  %p307_p8 = scmp.lt.s32.totalorder (!%p233_p3), %s1136_s18, 6 }
   0xc   : > { %1019 = vmatprep.mubr.msk.bf16.mxu0 (!%p233_p3), %vm1155_vm1, %v1154_v2  ;;  %1025 = vmatprep.mubr.msk.bf16.mxu1 (!%p233_p3), %vm1155_vm1, %v1154_v2  ;;  %p297_p7 = scmp.lt.s32.totalorder (!%p233_p3), %s294_s6, 7  ;;  %v433_v9 = vsel (!%p233_p3), %vm334_vm0, %v978_v5, 0  ;;  %v486_v13 = vsel (!%p233_p3), %vm334_vm0, %v981_v6, 0  ;;  %v984_v17 = vld [vmem:[%s1354_s2 + $0x8] sm:$0x3] (!%p233_p3)  ;;  %vm802_vm3 = vcmask (!%p233_p3), 30720  }
   0xd   : > { %1029 = vmatprep.subr.bf16.mxu0 (!%p233_p3), %v1154_v2  ;;  %1035 = vmatprep.subr.bf16.mxu1 (!%p233_p3), %v1154_v2  ;;  %v987_v19 = vld [vmem:[%s1354_s2 + $0xa] sm:$0x3] (!%p233_p3)  ;;  %v539_v25 = vsel (!%p233_p3), %vm334_vm0, %v984_v17, 0  ;;  %v989_v32 = vld [vmem:[%s1354_s2 + $0xc] sm:$0x3] (!%p233_p3) }
   0xe   : > { %v591_v26 = vsel (!%p233_p3), %vm334_vm0, %v987_v19, 0  ;;  %v992_v33 = vld [vmem:[%s1354_s2 + $0xe] sm:$0x3] (!%p233_p3)  ;;  %v643_v38 = vsel (!%p233_p3), %vm334_vm0, %v989_v32, 0  ;;  %v994_v40 = vld [vmem:[%s1354_s2 + $0x10] sm:$0x3] (!%p233_p3) }
   0xf   : > { %v696_v39 = vsel (!%p233_p3), %vm334_vm0, %v992_v33, 0  ;;  %v748_v43 = vsel (!%p233_p3), %vm334_vm0, %v994_v40, 0 }
  0x10   : > { %s1369_s19 = smov (!%p285_p5, %s1140_s19), 1  ;;  %s1371_s6 = smov (!%p297_p7, %s294_s6), 7 }
  0x11   : > { %s288_s29 = scalar_select %p287_p6, %s1136_s18, 7 }
  0x12   : > { %s967_s30 = sshll.u32 %s1369_s19, 5  ;;  %s969_s17 = sshll.u32 %s1371_s6, 2 }
  0x13   : > { %s966_s7 = sshll.u32 %s288_s29, 2  ;;  %s301_s27 = sadd.s32 %s969_s17, %s967_s30 }
  0x14   : > { %s291_s8 = sadd.s32 %s967_s30, %s966_s7  ;;  %s971_s6 = sshll.u32 %s301_s27, 3 }
  0x15   : > { %s968_s11 = sshll.u32 %s291_s8, 3  ;;  %s303_s9 = scalar_lea.vmem %s1353_s1, %s971_s6 }
  0x16   : > { %s1255_s16 = scalar_lea.vmem %s1352_s0, %s968_s11  ;;  %v635_v28 = vld [vmem:[%s303_s9] sm:$0x7f]  ;;  %v991_v30 = vld [vmem:[%s303_s9 + $0x8] sm:$0x7f]  ;;  %s1071_s15 = smul.u32 7, %s1369_s19 }
  0x17   : > { %v974_v7 = vld [vmem:[%s1255_s16 + $0x8] sm:$0x7f]  ;;  %v322_v8 = vld [vmem:[%s1255_s16] sm:$0x7f]  ;;  %v980_v16 = vld [vmem:[%s1255_s16 + $0x10] sm:$0x7f]  ;;  %v636_v41 = vpack.c.bf16 %v635_v28, %v635_v28  ;;  %v689_v42 = vpack.c.bf16 %v991_v30, %v991_v30 }
  0x18   : > { %v327_v10 = vpack.c.bf16 %v974_v7, %v974_v7  ;;  %v323_v11 = vpack.c.bf16 %v322_v8, %v322_v8  ;;  %v424_v12 = vmax.f32 %v322_v8, %v974_v7  ;;  %v425_v14 = vld [vmem:[%s1255_s16 + $0x1] sm:$0x7f]  ;;  %v983_v20 = vld [vmem:[%s1255_s16 + $0x18] sm:$0x7f]  ;;  %v479_v22 = vpack.c.bf16 %v980_v16, %v980_v16  ;;  %v986_v24 = vld [vmem:[%s1255_s16 + $0x11] sm:$0x7f] }
  0x19   : > { %v426_v21 = vpack.c.bf16 %v425_v14, %v425_v14  ;;  %v740_v34 = vld [vmem:[%s303_s9 + $0x1] sm:$0x7f]  ;;  %v532_v35 = vpack.c.bf16 %v983_v20, %v983_v20  ;;  %v584_v36 = vpack.c.bf16 %v986_v24, %v986_v24  ;;  %s1373_s18 = smov (!%p307_p8, %s1136_s18), 6 }
  0x1a   : > { %1020 = vmatmul.mubr.msk.bf16.vlgmr.msra.gmra.mrb[0].mxu0 %vm330_vm2, %v327_v10  ;;  %1026 = vmatmul.mubr.msk.bf16.vlgmr.msra.gmra.mrb[0].mxu1 %vm330_vm2, %v323_v11  ;;  %v476_v15 = vmax.f32 %v424_v12, %v425_v14  ;;  %v741_v44 = vpack.c.bf16 %v740_v34, %v740_v34  ;;  %s1321_s16 = sadd.s32 %s1071_s15, %s1373_s18 }
  0x1b   : > { %1030 = vmatpush3.bf16.msra.mxu0 %v433_v9  ;;  %1036 = vmatpush3.bf16.msra.mxu1 %v486_v13  ;;  %s972_s17 = sshll.u32 %s1321_s16, 3 }
  0x1c   : > { %1031 = vmatprep.mubr.msk.bf16.mxu0 %vm1155_vm1, %v1154_v2  ;;  %1041 = vmatprep.subr.bf16.mxu0 %v1154_v2  ;;  %v529_v18 = vmax.f32 %v476_v15, %v980_v16  ;;  %s320_s27 = scalar_lea.vmem %s1357_s5, %s972_s17  ;;  %s312_s6 = scalar_lea.vmem %s1356_s4, %s972_s17 }
  0x1d   : > { %1037 = vmatprep.mubr.msk.bf16.mxu1 %vm1155_vm1, %v1154_v2  ;;  %1047 = vmatprep.subr.bf16.mxu1 %v1154_v2 }
  0x1e   : > { %v582_v23 = vmax.f32 %v529_v18, %v983_v20 }
  0x20   : > { %v634_v27 = vmax.f32 %v582_v23, %v986_v24 }
  0x22   : > { %1032 = vmatmul.mubr.msk.bf16.vlgmr.msra.gmra.mrb[4].mxu0 %vm330_vm2, %v426_v21  ;;  %1038 = vmatmul.mubr.msk.bf16.vlgmr.msra.gmra.mrb[4].mxu1 %vm330_vm2, %v479_v22  ;;  %v686_v29 = vmax.f32 %v634_v27, %v635_v28  ;;  %v996_v21 = vld [vmem:[%s1355_s3] ss:$0 sm:$0xff] }
  0x23   : > { %1042 = vmatpush3.bf16.msra.mxu0 %v539_v25  ;;  %1048 = vmatpush3.bf16.msra.mxu1 %v591_v26 }
  0x24   : > { %1043 = vmatprep.mubr.msk.bf16.mxu0 %vm1155_vm1, %v1154_v2  ;;  %1053 = vmatprep.subr.bf16.mxu0 %v1154_v2  ;;  %v739_v31 = vmax.f32 %v686_v29, %v991_v30 }
  0x25   : > { %1049 = vmatprep.mubr.msk.bf16.mxu1 %vm1155_vm1, %v1154_v2  ;;  %1059 = vmatprep.subr.bf16.mxu1 %v1154_v2 }
  0x26   : > { %v791_v37 = vmax.f32 %v739_v31, %v740_v34 }
  0x28   : > { %803 = vst.msk [vmem:[%s320_s27] sm:$0x7f] %vm802_vm3, %v791_v37 }
  0x2a   : > { %1044 = vmatmul.mubr.msk.bf16.vlgmr.msra.gmra.mrb[8].mxu0 %vm330_vm2, %v532_v35  ;;  %1050 = vmatmul.mubr.msk.bf16.vlgmr.msra.gmra.mrb[8].mxu1 %vm330_vm2, %v584_v36 }
  0x2b   : > { %1054 = vmatpush3.bf16.msra.mxu0 %v643_v38  ;;  %1060 = vmatpush3.bf16.msra.mxu1 %v696_v39 }
  0x2c   : > { %1055 = vmatprep.mubr.msk.bf16.mxu0 %vm1155_vm1, %v1154_v2  ;;  %1065 = vmatprep.subr.bf16.mxu0 %v1154_v2 }
  0x2d   : > { %1061 = vmatprep.mubr.msk.bf16.mxu1 %vm1155_vm1, %v1154_v2 }
  0x32   : > { %1056 = vmatmul.mubr.msk.bf16.vlgmr.msra.gmra.mrb[12].mxu0 %vm330_vm2, %v636_v41  ;;  %1062 = vmatmul.mubr.msk.bf16.vlgmr.msra.gmra.mrb[12].mxu1 %vm330_vm2, %v689_v42 }
  0x33   : > { %1066 = vmatpush3.bf16.msra.mxu0 %v748_v43  ;;  %1067 = vmatprep.mubr.msk.bf16.mxu0 %vm1155_vm1, %v1154_v2 }
  0x3a   : > { %1068 = vmatmul.mubr.msk.bf16.vlgmr.msra.gmra.mrb[16].mxu0 %vm330_vm2, %v741_v44 }
  0xed   : > { %v372_v45 = vpop.f32.mrb[0].mxu0  ;;  %v418_v46 = vpop.f32.mrb[0].mxu1 }
  0xee   : > { %v419_v47 = vadd.f32 %v418_v46, %v372_v45  ;;  %v1021_v48 = vpop.f32.mrb[1].mxu0  ;;  %v1027_v49 = vpop.f32.mrb[1].mxu1 }
  0xef   : > { %v375_v50 = vpop.f32.mrb[2].mxu0  ;;  %v421_v51 = vpop.f32.mrb[2].mxu1 }
  0xf0   : > { %v1022_v52 = vpop.f32.mrb[3].mxu0  ;;  %v1028_v53 = vpop.f32.mrb[3].mxu1 }
  0xf5   : > { %v469_v54 = vpop.f32.mrb[4].mxu0  ;;  %v522_v55 = vpop.f32.mrb[4].mxu1 }
  0xf6   : > { %v475_v56 = vadd.f32 %v469_v54, %v419_v47  ;;  %v1033_v57 = vpop.f32.mrb[5].mxu0  ;;  %v1039_v58 = vpop.f32.mrb[5].mxu1 }
  0xf7   : > { %v472_v59 = vpop.f32.mrb[6].mxu0  ;;  %v525_v60 = vpop.f32.mrb[6].mxu1 }
  0xf8   : > { %v528_v61 = vadd.f32 %v522_v55, %v475_v56  ;;  %v1034_v62 = vpop.f32.mrb[7].mxu0  ;;  %v1040_v63 = vpop.f32.mrb[7].mxu1 }
  0xfd   : > { %v575_v0 = vpop.f32.mrb[8].mxu0  ;;  %v627_v1 = vpop.f32.mrb[8].mxu1 }
  0xfe   : > { %v581_v2 = vadd.f32 %v575_v0, %v528_v61  ;;  %v1045_v3 = vpop.f32.mrb[9].mxu0  ;;  %v1051_v4 = vpop.f32.mrb[9].mxu1 }
  0xff   : > { %v578_v5 = vpop.f32.mrb[10].mxu0  ;;  %v630_v6 = vpop.f32.mrb[10].mxu1 }
 0x100   : > { %v633_v7 = vadd.f32 %v627_v1, %v581_v2  ;;  %v1046_v8 = vpop.f32.mrb[11].mxu0  ;;  %v1052_v9 = vpop.f32.mrb[11].mxu1 }
 0x105   : > { %v679_v10 = vpop.f32.mrb[12].mxu0  ;;  %v732_v11 = vpop.f32.mrb[12].mxu1 }
 0x106   : > { %v685_v12 = vadd.f32 %v679_v10, %v633_v7  ;;  %v1057_v13 = vpop.f32.mrb[13].mxu0  ;;  %v1063_v14 = vpop.f32.mrb[13].mxu1 }
 0x107   : > { %v682_v15 = vpop.f32.mrb[14].mxu0  ;;  %v735_v16 = vpop.f32.mrb[14].mxu1 }
 0x108   : > { %v738_v17 = vadd.f32 %v732_v11, %v685_v12  ;;  %v1058_v18 = vpop.f32.mrb[15].mxu0  ;;  %v1064_v19 = vpop.f32.mrb[15].mxu1 }
 0x10d   : > { %v784_v20 = vpop.f32.mrb[16].mxu0 }
 0x10e   : > { %v790_v22 = vadd.f32 %v784_v20, %v738_v17  ;;  %v1069_v23 = vpop.f32.mrb[17].mxu0 }
 0x10f   : > { %v787_v24 = vpop.f32.mrb[18].mxu0 }
 0x110   : > { %v799_v25 = vadd.f32 %v996_v21, %v790_v22  ;;  %v1070_v26 = vpop.f32.mrb[19].mxu0 }
 0x112   : > { %v800_v27 = vmax.f32 %v799_v25, 0.0 }
 0x114   : > { %801 = vst [vmem:[%s312_s6] sm:$0x7f] %v800_v27 }
 0x115 PF: > { %s16_s22 = sadd.s32 1, %s1152_s22   ;;  %s1358_s18 = smov %s1144_s20 }
 0x116   : > { %p13_p9 = scmp.ge.s32.totalorder %s16_s22, 16   ;;  %s1359_s19 = smov %s1148_s21 }
 0x117   : > { %s1360_s20 = smov %s1363_s23  ;;  %s1361_s21 = smov %s1367_s24 }
 0x118   :  { %15 = sbr.rel (!%p13_p9) target bundleno = 3 (0x3), region = 93 }

// kernel: inception_b_forward.6
= control target key start
LH: loop header
LB: loop body
LE: loop exit
PB: predicated region body
PF: predicated region fallthrough
CT: control target
= control target key end

     0   :  { %s1505_s18 = smov 0   ;;  %s1507_s19 = smov 0   ;;  %s1698_s0 = inlined_call_operand.vmem [shape: bf16[2,18,18,32], index: 0, kind: input, shape index: {}, may-alias: {0,1,2}]   ;;  %s1699_s1 = inlined_call_operand.vmem [shape: bf16[2,18,18,32], index: 1, kind: input, shape index: {}, may-alias: {0,1,2}]   ;;  %s1700_s2 = inlined_call_operand.vmem [shape: bf16[2,18,18,32], index: 2, kind: input, shape index: {}, may-alias: {0,1,2}]   ;;  %s1701_s3 = inlined_call_operand.vmem [shape: bf16[9,32,64], index: 3, kind: input, shape index: {}]   ;;  %s1702_s4 = inlined_call_operand.vmem [shape: f32[1,64], index: 4, kind: input, shape index: {}]   ;;  %s1703_s5 = inlined_call_operand.vmem [shape: bf16[2,16,16,64], index: 5, kind: output, shape index: {}]  }
   0x1   :  { %s1509_s20 = smov 0   ;;  %s1511_s21 = smov 0  }
   0x2   :  { %s1513_s22 = smov 0  }
   0x3 LB: > { %s24_s23 = sadd.s32 1, %s1463_s20  ;;  %s27_s24 = sadd.s32 1, %s1467_s21  ;;  %s1471_s22 = sphi %s1513_s22, %s15_s22   ;;  %s1467_s21 = sphi %s1511_s21, %s1707_s21   ;;  %s1463_s20 = sphi %s1509_s20, %s1706_s20   ;;  %s1459_s19 = sphi %s1507_s19, %s1705_s19   ;;  %s1455_s18 = sphi %s1505_s18, %s1704_s18  }
   0x4   : > { %p25_p0 = scmp.ge.s32.totalorder %s24_s23, 16  ;;  %p1175_p1 = scmp.ge.s32.totalorder %s1471_s22, 1 }
   0x5   : > { %p247_p2 = scmp.lt.s32.totalorder %s1471_s22, 33 }
   0x6   : > { %s1709_s23 = smov (%p25_p0, %s24_s23), 0  ;;  %s1711_s24 = smov (!%p25_p0, %s27_s24), %s1467_s21 }
   0x7   : > { %p248_p3 = pnand %p1175_p1, %p247_p2  ;;  %p29_p4 = scmp.ge.s32.totalorder %s1711_s24, 2 }
   0x8   : > { %v1404_v0 = vld [vmem:[%s1701_s3 + $0x10] sm:$0xff] (!%p248_p3)   ;;  %v1473_v1 = vmov (!%p248_p3), 0.0   ;;  %v1405_v2 = vld [vmem:[%s1701_s3] sm:$0xff] (!%p248_p3)   ;;  %v1406_v3 = vld [vmem:[%s1701_s3 + $0x18] sm:$0xff] (!%p248_p3)   ;;  %vm1474_vm0 = vmmov (!%p248_p3), 0   ;;  %p303_p5 = scmp.lt.s32.totalorder (!%p248_p3), %s1459_s19, 1 }
   0x9   : > { %s1713_s24 = smov (%p29_p4, %s1711_s24), 0  ;;  %251 = sbr.rel (%p248_p3) target bundleno = 289 (0x121), region = 40 }
   0xa   : > { %1286 = vmatprep.subr.bf16.mxu0 (!%p248_p3), %v1473_v1  ;;  %1294 = vmatprep.subr.bf16.mxu1 (!%p248_p3), %v1473_v1  ;;  %v1407_v4 = vld [vmem:[%s1701_s3 + $0x8] sm:$0xff] (!%p248_p3)   ;;  %p305_p6 = scmp.lt.s32.totalorder (!%p248_p3), %s1455_s18, 17  ;;  %s312_s12 = sadd.s32 (!%p248_p3), 1, %s1455_s18  ;;  %vm389_vm1 = vcmask (!%p248_p3), 261120   ;;  %v1411_v5 = vld [vmem:[%s1701_s3 + $0x30] sm:$0xff] (!%p248_p3)   ;;  %v1413_v14 = vld [vmem:[%s1701_s3 + $0x38] sm:$0xff] (!%p248_p3)  }
   0xb   : > { %1287 = vmatpush3.bf16.msra.mxu0 (!%p248_p3), %v1404_v0  ;;  %1290 = vmatprep.mubr.msk.bf16.mxu0 (!%p248_p3), %vm1474_vm0, %v1473_v1  ;;  %p315_p7 = scmp.lt.s32.totalorder (!%p248_p3), %s312_s12, 17  ;;  %vm364_vm2 = vsmask.f32 (!%p248_p3), 7424  ;;  %s323_s29 = sadd.s32 (!%p248_p3), 2, %s1455_s18  ;;  %v1410_v17 = vld [vmem:[%s1701_s3 + $0x20] sm:$0xff] (!%p248_p3)   ;;  %v1417_v20 = vld [vmem:[%s1701_s3 + $0x50] sm:$0xff] (!%p248_p3)  }
   0xc   : > { %1295 = vmatpush3.bf16.msra.mxu1 (!%p248_p3), %v1405_v2  ;;  %1288 = vmatprep.subr.bf16.mxu0 (!%p248_p3), %v1473_v1  ;;  %p326_p8 = scmp.lt.s32.totalorder (!%p248_p3), %s323_s29, 17  ;;  %v1412_v23 = vld [vmem:[%s1701_s3 + $0x28] sm:$0xff] (!%p248_p3)   ;;  %vm498_vm3 = vcmask (!%p248_p3), 1046528   ;;  %v1419_v33 = vld [vmem:[%s1701_s3 + $0x58] sm:$0xff] (!%p248_p3)   ;;  %v1415_v37 = vld [vmem:[%s1701_s3 + $0x40] sm:$0xff] (!%p248_p3)   ;;  %p336_p9 = scmp.lt.s32.totalorder (!%p248_p3), %s1455_s18, 15 }
   0xd   : > { %1296 = vmatprep.subr.bf16.mxu1 (!%p248_p3), %v1473_v1  ;;  %1298 = vmatprep.mubr.msk.bf16.mxu1 (!%p248_p3), %vm1474_vm0, %v1473_v1  ;;  %v1424_v42 = vld [vmem:[%s1701_s3 + $0x70] sm:$0xff] (!%p248_p3)   ;;  %v1418_v45 = vld [vmem:[%s1701_s3 + $0x48] sm:$0xff] (!%p248_p3)   ;;  %v1426_v50 = vld [vmem:[%s1701_s3 + $0x78] sm:$0xff] (!%p248_p3)   ;;  %vm1031_vm4 = vcmask (!%p248_p3), 519168  }
   0xe   : > { %v1422_v55 = vld [vmem:[%s1701_s3 + $0x60] sm:$0xff] (!%p248_p3)   ;;  %v1425_v59 = vld [vmem:[%s1701_s3 + $0x68] sm:$0xff] (!%p248_p3)  }
   0xf   : > { %1289 = vmatpush3.bf16.msra.mxu0 (!%p248_p3), %v1406_v3  ;;  %v1428_v63 = vld [vmem:[%s1701_s3 + $0x80] sm:$0xff] (!%p248_p3)   ;;  %v1431_v2 = vld [vmem:[%s1701_s3 + $0x88] sm:$0xff] (!%p248_p3)  }
  0x10   : > { %s1715_s19 = smov (!%p303_p5, %s1459_s19), 1  ;;  %1297 = vmatpush3.bf16.msra.mxu1 %v1407_v4  ;;  %1302 = vmatprep.subr.bf16.mxu0 %v1473_v1  ;;  %s1717_s12 = smov (!%p315_p7, %s312_s12), 17 }
  0x11   : > { %s306_s8 = scalar_select %p305_p6, %s1455_s18, 17  ;;  %1310 = vmatprep.subr.bf16.mxu1 %v1473_v1 }
  0x12   : > { %s1566_s9 = smul.u32 54, %s1715_s19  ;;  %s1719_s29 = smov (!%p326_p8, %s323_s29), 17 }
  0x13   : > { %s1358_s10 = smul.u32 3, %s306_s8  ;;  %s1721_s18 = smov (!%p336_p9, %s1455_s18), 15 }
  0x14   : > { %s1360_s26 = smul.u32 3, %s1717_s12  ;;  %s1180_s6 = sshll.u32 %s1715_s19, 5 }
  0x15   : > { %s309_s11 = sadd.s32 %s1566_s9, %s1358_s10  ;;  %s1361_s17 = smul.u32 3, %s1719_s29 }
  0x16   : > { %s1176_s13 = sshll.u32 %s309_s11, 2  ;;  %s319_s30 = sadd.s32 %s1360_s26, %s1566_s9 }
  0x17   : > { %s311_s25 = scalar_lea.vmem %s1698_s0, %s1176_s13  ;;  %s1177_s8 = sshll.u32 %s319_s30, 2 }
  0x18   : > { %v344_v6 = vld [vmem:[%s311_s25] sm:$0xf]  ;;  %v345_v7 = vld [vmem:[%s311_s25 + $0x4] sm:$0xf]  ;;  %s321_s12 = scalar_lea.vmem %s1699_s1, %s1177_s8  ;;  %s330_s27 = sadd.s32 %s1361_s17, %s1566_s9 }
  0x19   : > { %v1186_v8 = vcombine.low %v344_v6, %v345_v7  ;;  %v1409_v9 = vld [vmem:[%s311_s25 + $0x8] ss:$0 sps:$4 sm:$0x11]   ;;  %v489_v13 = vld [vmem:[%s311_s25] sm:$0xe]  ;;  %s1178_s29 = sshll.u32 %s330_s27, 2 }
  0x1a   : > { %v373_v12 = vshll.u32 %v1409_v9, 16  ;;  %v1198_v19 = vcombine.low %v489_v13, %v345_v7  ;;  %v1416_v21 = vld [vmem:[%s321_s12] sm:$0xff]   ;;  %v1421_v27 = vld [vmem:[%s321_s12 + $0x8] ss:$0 sps:$4 sm:$0x11]   ;;  %v500_v30 = vrot.slane %v1409_v9, 1  ;;  %s1621_s8 = scalar_lea.vmem %s1700_s2, %s1178_s29 }
  0x1b   : > { %v366_v10 = vshrl.u32 %v1186_v8, 16  ;;  %v368_v11 = vshll.u32 %v1186_v8, 16  ;;  %1299 = vmatmul.mubr.msk.bf16.vlgmr.msra.gmra.mrb[0].mxu1 %vm389_vm1, %v1186_v8  ;;  %v630_v24 = vld [vmem:[%s321_s12] sm:$0xf]  ;;  %v631_v25 = vld [vmem:[%s321_s12 + $0x4] sm:$0xf] }
  0x1c   : > { %1311 = vmatpush3.bf16.msra.mxu1 %v1411_v5  ;;  %1314 = vmatprep.mubr.msk.bf16.mxu1 %vm1474_vm0, %v1473_v1  ;;  %v375_v16 = vrot.slane %v373_v12, 1  ;;  %v1214_v26 = vcombine.low %v630_v24, %v631_v25  ;;  %v716_v28 = vld [vmem:[%s321_s12] sm:$0xe]  ;;  %v499_v29 = vrot.slane %v1198_v19, 1  ;;  %v726_v35 = vrot.slane %v1421_v27, 1  ;;  %s1179_s29 = sshll.u32 %s1721_s18, 1 }
  0x1d   : > { %v370_v15 = vrot.slane %v368_v11, 1  ;;  %1312 = vmatprep.subr.bf16.mxu1 %v1473_v1  ;;  %v1223_v31 = vcombine.low %v716_v28, %v631_v25  ;;  %v654_v40 = vshll.u32 %v1421_v27, 16  ;;  %v856_v43 = vld [vmem:[%s1621_s8] sm:$0xf]  ;;  %v857_v44 = vld [vmem:[%s1621_s8 + $0x4] sm:$0xf]  ;;  %s340_s7 = sadd.s32 %s1180_s6, %s1179_s29 }
  0x1e   : > { %v649_v32 = vshll.u32 %v1214_v26, 16  ;;  %v501_v36 = vsel %vm498_vm3, %v499_v29, %v500_v30  ;;  %v647_v38 = vshrl.u32 %v1214_v26, 16  ;;  %v1239_v48 = vcombine.low %v856_v43, %v857_v44  ;;  %v1430_v49 = vld [vmem:[%s1621_s8 + $0x8] ss:$0 sps:$4 sm:$0x11]   ;;  %v1427_v62 = vld [vmem:[%s1621_s8] sm:$0xff]  }
  0x1f   : > { %v371_v18 = vor.u32 %v370_v15, %v366_v10  ;;  %v725_v34 = vrot.slane %v1223_v31, 1  ;;  %v656_v47 = vrot.slane %v654_v40, 1  ;;  %v880_v53 = vshll.u32 %v1430_v49, 16  ;;  %v942_v61 = vld [vmem:[%s1621_s8] sm:$0xe]  ;;  %s1181_s10 = sshll.u32 %s340_s7, 2 }
  0x20   : > { %1313 = vmatpush3.bf16.msra.mxu1 %v1413_v14  ;;  %v651_v39 = vrot.slane %v649_v32, 1  ;;  %v873_v51 = vshrl.u32 %v1239_v48, 16  ;;  %v875_v52 = vshll.u32 %v1239_v48, 16  ;;  %v1248_v0 = vcombine.low %v942_v61, %v857_v44  ;;  %s342_s18 = scalar_lea.vmem %s1703_s5, %s1181_s10 }
  0x21   : > { %v376_v22 = vsel %vm364_vm2, %v371_v18, %v375_v16  ;;  %1326 = vmatprep.subr.bf16.mxu1 %v1473_v1  ;;  %v727_v41 = vsel %vm498_vm3, %v725_v34, %v726_v35  ;;  %v882_v57 = vrot.slane %v880_v53, 1  ;;  %v952_v4 = vrot.slane %v1430_v49, 1 }
  0x22   : > { %1291 = vmatmul.mubr.msk.bf16.vlgmr.msra.gmra.mrb[0].mxu0 %vm389_vm1, %v376_v22  ;;  %v652_v46 = vor.u32 %v651_v39, %v647_v38  ;;  %v877_v56 = vrot.slane %v875_v52, 1  ;;  %v951_v3 = vrot.slane %v1248_v0, 1  ;;  %v1252_v52 = vld [vmem:[%s1702_s4] ss:$0 sm:$0xff] }
  0x23   : > { %1303 = vmatpush3.bf16.msra.mxu0 %v1410_v17  ;;  %1306 = vmatprep.mubr.msk.bf16.mxu0 %vm1474_vm0, %v1473_v1 }
  0x24   : > { %1304 = vmatprep.subr.bf16.mxu0 %v1473_v1  ;;  %1315 = vmatmul.mubr.msk.bf16.vlgmr.msra.gmra.mrb[4].mxu1 %vm389_vm1, %v1416_v21  ;;  %v657_v54 = vsel %vm364_vm2, %v652_v46, %v656_v47  ;;  %v878_v58 = vor.u32 %v877_v56, %v873_v51  ;;  %v953_v5 = vsel %vm498_vm3, %v951_v3, %v952_v4 }
  0x25   : > { %1327 = vmatpush3.bf16.msra.mxu1 %v1417_v20  ;;  %1330 = vmatprep.mubr.msk.bf16.mxu1 %vm1474_vm0, %v1473_v1 }
  0x26   : > { %1328 = vmatprep.subr.bf16.mxu1 %v1473_v1  ;;  %v883_v60 = vsel %vm364_vm2, %v878_v58, %v882_v57 }
  0x27   : > { %1305 = vmatpush3.bf16.msra.mxu0 %v1412_v23 }
  0x28   : > { %1318 = vmatprep.subr.bf16.mxu0 %v1473_v1 }
  0x29   : > { %1329 = vmatpush3.bf16.msra.mxu1 %v1419_v33 }
  0x2a   : > { %1307 = vmatmul.mubr.msk.bf16.vlgmr.msra.gmra.mrb[4].mxu0 %vm389_vm1, %v501_v36  ;;  %1342 = vmatprep.subr.bf16.mxu1 %v1473_v1 }
  0x2b   : > { %1319 = vmatpush3.bf16.msra.mxu0 %v1415_v37  ;;  %1322 = vmatprep.mubr.msk.bf16.mxu0 %vm1474_vm0, %v1473_v1 }
  0x2c   : > { %1320 = vmatprep.subr.bf16.mxu0 %v1473_v1  ;;  %1331 = vmatmul.mubr.msk.bf16.vlgmr.msra.gmra.mrb[8].mxu1 %vm389_vm1, %v727_v41 }
  0x2d   : > { %1343 = vmatpush3.bf16.msra.mxu1 %v1424_v42  ;;  %1346 = vmatprep.mubr.msk.bf16.mxu1 %vm1474_vm0, %v1473_v1 }
  0x2e   : > { %1344 = vmatprep.subr.bf16.mxu1 %v1473_v1 }
  0x2f   : > { %1321 = vmatpush3.bf16.msra.mxu0 %v1418_v45 }
  0x30   : > { %1334 = vmatprep.subr.bf16.mxu0 %v1473_v1 }
  0x31   : > { %1345 = vmatpush3.bf16.msra.mxu1 %v1426_v50 }
  0x32   : > { %1323 = vmatmul.mubr.msk.bf16.vlgmr.msra.gmra.mrb[8].mxu0 %vm389_vm1, %v657_v54 }
  0x33   : > { %1335 = vmatpush3.bf16.msra.mxu0 %v1422_v55  ;;  %1338 = vmatprep.mubr.msk.bf16.mxu0 %vm1474_vm0, %v1473_v1 }
  0x34   : > { %1336 = vmatprep.subr.bf16.mxu0 %v1473_v1  ;;  %1347 = vmatmul.mubr.msk.bf16.vlgmr.msra.gmra.mrb[12].mxu1 %vm389_vm1, %v883_v60 }
  0x37   : > { %1337 = vmatpush3.bf16.msra.mxu0 %v1425_v59 }
  0x38   : > { %1350 = vmatprep.subr.bf16.mxu0 %v1473_v1 }
  0x3a   : > { %1339 = vmatmul.mubr.msk.bf16.vlgmr.msra.gmra.mrb[12].mxu0 %vm389_vm1, %v1427_v62 }
  0x3b   : > { %1351 = vmatpush3.bf16.msra.mxu0 %v1428_v63  ;;  %1354 = vmatprep.mubr.msk.bf16.mxu0 %vm1474_vm0, %v1473_v1 }
  0x3c   : > { %1352 = vmatprep.subr.bf16.mxu0 %v1473_v1 }
  0x3f   : > { %1353 = vmatpush3.bf16.msra.mxu0 %v1431_v2 }
  0x42   : > { %1355 = vmatmul.mubr.msk.bf16.vlgmr.msra.gmra.mrb[16].mxu0 %vm389_vm1, %v953_v5 }
  0xee   : > { %v482_v6 = vpop.f32.mrb[0].mxu1 }
  0xef   : > { %v1300_v7 = vpop.f32.mrb[1].mxu1 }
  0xf0   : > { %v485_v8 = vpop.f32.mrb[2].mxu1 }
  0xf1   : > { %v1301_v9 = vpop.f32.mrb[3].mxu1 }
  0xf5   : > { %v427_v10 = vpop.f32.mrb[0].mxu0 }
  0xf6   : > { %v483_v11 = vadd.f32 %v482_v6, %v427_v10  ;;  %v1292_v12 = vpop.f32.mrb[1].mxu0 }
  0xf7   : > { %v430_v13 = vpop.f32.mrb[2].mxu0  ;;  %v621_v14 = vpop.f32.mrb[4].mxu1 }
  0xf8   : > { %v486_v15 = vadd.f32 %v485_v8, %v430_v13  ;;  %v1293_v16 = vpop.f32.mrb[3].mxu0  ;;  %v1316_v17 = vpop.f32.mrb[5].mxu1 }
  0xf9   : > { %v624_v18 = vpop.f32.mrb[6].mxu1 }
  0xfa   : > { %v1317_v19 = vpop.f32.mrb[7].mxu1 }
  0xfd   : > { %v551_v1 = vpop.f32.mrb[4].mxu0 }
  0xfe   : > { %v558_v20 = vadd.f32 %v551_v1, %v483_v11  ;;  %v1308_v21 = vpop.f32.mrb[5].mxu0 }
  0xff   : > { %v554_v22 = vpop.f32.mrb[6].mxu0  ;;  %v777_v23 = vpop.f32.mrb[8].mxu1 }
 0x100   : > { %v559_v24 = vadd.f32 %v554_v22, %v486_v15  ;;  %v628_v25 = vadd.f32 %v621_v14, %v558_v20  ;;  %v1309_v26 = vpop.f32.mrb[7].mxu0  ;;  %v1332_v27 = vpop.f32.mrb[9].mxu1 }
 0x101   : > { %v780_v28 = vpop.f32.mrb[10].mxu1 }
 0x102   : > { %v629_v29 = vadd.f32 %v624_v18, %v559_v24  ;;  %v1333_v30 = vpop.f32.mrb[11].mxu1 }
 0x105   : > { %v707_v31 = vpop.f32.mrb[8].mxu0 }
 0x106   : > { %v714_v32 = vadd.f32 %v707_v31, %v628_v25  ;;  %v1324_v33 = vpop.f32.mrb[9].mxu0 }
 0x107   : > { %v710_v34 = vpop.f32.mrb[10].mxu0  ;;  %v933_v35 = vpop.f32.mrb[12].mxu1 }
 0x108   : > { %v715_v36 = vadd.f32 %v710_v34, %v629_v29  ;;  %v784_v37 = vadd.f32 %v777_v23, %v714_v32  ;;  %v1325_v38 = vpop.f32.mrb[11].mxu0  ;;  %v1348_v39 = vpop.f32.mrb[13].mxu1 }
 0x109   : > { %v936_v40 = vpop.f32.mrb[14].mxu1 }
 0x10a   : > { %v785_v41 = vadd.f32 %v780_v28, %v715_v36  ;;  %v1349_v42 = vpop.f32.mrb[15].mxu1 }
 0x10d   : > { %v847_v43 = vpop.f32.mrb[12].mxu0 }
 0x10e   : > { %v854_v44 = vadd.f32 %v847_v43, %v784_v37  ;;  %v1340_v45 = vpop.f32.mrb[13].mxu0 }
 0x10f   : > { %v850_v46 = vpop.f32.mrb[14].mxu0 }
 0x110   : > { %v855_v47 = vadd.f32 %v850_v46, %v785_v41  ;;  %v940_v48 = vadd.f32 %v933_v35, %v854_v44  ;;  %v1341_v49 = vpop.f32.mrb[15].mxu0 }
 0x112   : > { %v941_v50 = vadd.f32 %v936_v40, %v855_v47 }
 0x115   : > { %v1003_v51 = vpop.f32.mrb[16].mxu0 }
 0x116   : > { %v1010_v53 = vadd.f32 %v1003_v51, %v940_v48  ;;  %v1356_v54 = vpop.f32.mrb[17].mxu0 }
 0x117   : > { %v1006_v55 = vpop.f32.mrb[18].mxu0 }
 0x118   : > { %v1019_v56 = vadd.f32 %v1252_v52, %v1010_v53  ;;  %v1011_v57 = vadd.f32 %v1006_v55, %v941_v50  ;;  %v1357_v58 = vpop.f32.mrb[19].mxu0 }
 0x11a   : > { %v1021_v59 = vmax.f32 %v1019_v56, 0.0  ;;  %v1020_v60 = vadd.f32 %v1252_v52, %v1011_v57 }
 0x11c   : > { %v1257_v61 = vpack.c.bf16 %v1021_v59, %v1021_v59  ;;  %v1022_v62 = vmax.f32 %v1020_v60, 0.0 }
 0x11e   : > { %1032 = vst.msk [vmem:[%s342_s18] sm:$0xf] %vm1031_vm4, %v1257_v61  ;;  %v1258_v63 = vpack.c.bf16 %v1022_v62, %v1022_v62 }
 0x120   : > { %1033 = vst.msk [vmem:[%s342_s18 + $0x4] sm:$0xf] %vm1031_vm4, %v1258_v63 }
 0x121 PF: > { %s15_s22 = sadd.s32 1, %s1471_s22   ;;  %s1704_s18 = smov %s1463_s20 }
 0x122   : > { %p12_p10 = scmp.ge.s32.totalorder %s15_s22, 34   ;;  %s1705_s19 = smov %s1467_s21 }
 0x123   : > { %s1706_s20 = smov %s1709_s23  ;;  %s1707_s21 = smov %s1713_s24 }
 0x124   :  { %14 = sbr.rel (!%p12_p10) target bundleno = 3 (0x3), region = 84 }

// kernel: inception_b_forward.5
= control target key start
LH: loop header
LB: loop body
LE: loop exit
PB: predicated region body
PF: predicated region fallthrough
CT: control target
= control target key end

     0   :  { %vm470_vm0 = vcmask 1041408   ;;  %vm373_vm1 = vcmask 31744   ;;  %vm19_vm2 = vcmask 261120   ;;  %v1749_v1 = vmov 0.0   ;;  %s2424_s1 = inlined_call_operand.vmem [shape: bf16[4,32], index: 1, kind: input, shape index: {}]   ;;  %s2425_s0 = inlined_call_operand.vmem [shape: bf16[512,4], index: 0, kind: input, shape index: {}]   ;;  %s2426_s2 = inlined_call_operand.vmem [shape: f32[1,32], index: 2, kind: input, shape index: {}]   ;;  %s2427_s3 = inlined_call_operand.vmem [shape: bf16[512,32], index: 3, kind: output, shape index: {}]  }
   0x1   :  { %v1773_v0 = vld [vmem:[%s2424_s1] sm:$0x3]  ;;  %22 = vst.msk [vmem:[#allocation2 + $0x10] sm:$0xff] %vm19_vm2, %v1749_v1  ;;  %20 = vst.msk [vmem:[#allocation2] sm:$0xff] %vm19_vm2, %v1749_v1  ;;  %v1718_v5 = vld [vmem:[%s2425_s0 + $0x8] sm:$0xff]   ;;  %vm1350_vm3 = vcmask 257024  }
   0x2   :  { %21 = vst.msk [vmem:[#allocation2 + $0x8] sm:$0xff] %vm19_vm2, %v1749_v1  ;;  %23 = vst.msk [vmem:[#allocation2 + $0x18] sm:$0xff] %vm19_vm2, %v1749_v1  ;;  %1713 = vmatprep.subr.msk.bf16.mxu0 %vm470_vm0, %v1773_v0  ;;  %1714 = vmatprep.subr.msk.bf16.mxu1 %vm470_vm0, %v1773_v0  ;;  %v472_v2 = vsel %vm470_vm0, %v1773_v0, 0  ;;  %v1716_v3 = vld [vmem:[%s2425_s0] sm:$0xff]   ;;  %v1719_v6 = vld [vmem:[%s2425_s0 + $0x88] sm:$0xff]  }
   0x3   :  { %24 = vst.msk [vmem:[#allocation2 + $0x20] sm:$0xff] %vm19_vm2, %v1749_v1  ;;  %25 = vst.msk [vmem:[#allocation2 + $0x28] sm:$0xff] %vm19_vm2, %v1749_v1  ;;  %1646 = vmatpush3.bf16.msra.mxu0 %v472_v2  ;;  %1712 = vmatpush3.bf16.msra.mxu1 %v472_v2  ;;  %v1717_v4 = vld [vmem:[%s2425_s0 + $0x80] sm:$0xff]   ;;  %v1720_v7 = vld [vmem:[%s2425_s0 + $0x10] sm:$0xff]  }
   0x4   :  { %26 = vst.msk [vmem:[#allocation2 + $0x30] sm:$0xff] %vm19_vm2, %v1749_v1  ;;  %27 = vst.msk [vmem:[#allocation2 + $0x38] sm:$0xff] %vm19_vm2, %v1749_v1  ;;  %1647 = vmatprep.mubr.msk.bf16.mxu0 %vm373_vm1, %v1716_v3  ;;  %1679 = vmatprep.mubr.msk.bf16.mxu1 %vm373_vm1, %v1717_v4  ;;  %v1721_v8 = vld [vmem:[%s2425_s0 + $0x90] sm:$0xff]   ;;  %v1722_v9 = vld [vmem:[%s2425_s0 + $0x18] sm:$0xff]  }
   0x5   :  { %28 = vst.msk [vmem:[#allocation2 + $0x40] sm:$0xff] %vm19_vm2, %v1749_v1  ;;  %29 = vst.msk [vmem:[#allocation2 + $0x48] sm:$0xff] %vm19_vm2, %v1749_v1  ;;  %v1723_v10 = vld [vmem:[%s2425_s0 + $0x98] sm:$0xff]   ;;  %v1724_v11 = vld [vmem:[%s2425_s0 + $0x20] sm:$0xff]  }
   0x6   :  { %30 = vst.msk [vmem:[#allocation2 + $0x50] sm:$0xff] %vm19_vm2, %v1749_v1  ;;  %31 = vst.msk [vmem:[#allocation2 + $0x58] sm:$0xff] %vm19_vm2, %v1749_v1  ;;  %1648 = vmatmul.mubr.msk.bf16.vlgmr.msra.gmra.mrb[0].mxu0 %vm373_vm1, %v1718_v5  ;;  %1680 = vmatmul.mubr.msk.bf16.vlgmr.msra.gmra.mrb[0].mxu1 %vm373_vm1, %v1719_v6  ;;  %v1725_v12 = vld [vmem:[%s2425_s0 + $0xa0] sm:$0xff]   ;;  %v1726_v13 = vld [vmem:[%s2425_s0 + $0x28] sm:$0xff]  }
   0x7   :  { %32 = vst.msk [vmem:[#allocation2 + $0x60] sm:$0xff] %vm19_vm2, %v1749_v1  ;;  %33 = vst.msk [vmem:[#allocation2 + $0x68] sm:$0xff] %vm19_vm2, %v1749_v1  ;;  %1651 = vmatprep.mubr.msk.bf16.mxu0 %vm373_vm1, %v1720_v7  ;;  %1683 = vmatprep.mubr.msk.bf16.mxu1 %vm373_vm1, %v1721_v8  ;;  %v1727_v14 = vld [vmem:[%s2425_s0 + $0xa8] sm:$0xff]   ;;  %v1728_v15 = vld [vmem:[%s2425_s0 + $0x30] sm:$0xff]  }
   0x8   :  { %34 = vst.msk [vmem:[#allocation2 + $0x70] sm:$0xff] %vm19_vm2, %v1749_v1  ;;  %35 = vst.msk [vmem:[#allocation2 + $0x78] sm:$0xff] %vm19_vm2, %v1749_v1  ;;  %v1729_v16 = vld [vmem:[%s2425_s0 + $0xb0] sm:$0xff]   ;;  %v1730_v17 = vld [vmem:[%s2425_s0 + $0x38] sm:$0xff]  }
   0x9   :  { %36 = vst.msk [vmem:[#allocation2 + $0x80] sm:$0xff] %vm19_vm2, %v1749_v1  ;;  %37 = vst.msk [vmem:[#allocation2 + $0x88] sm:$0xff] %vm19_vm2, %v1749_v1  ;;  %v1731_v18 = vld [vmem:[%s2425_s0 + $0xb8] sm:$0xff]   ;;  %v1732_v19 = vld [vmem:[%s2425_s0 + $0x40] sm:$0xff]  }
   0xa   :  { %38 = vst.msk [vmem:[#allocation2 + $0x90] sm:$0xff] %vm19_vm2, %v1749_v1  ;;  %39 = vst.msk [vmem:[#allocation2 + $0x98] sm:$0xff] %vm19_vm2, %v1749_v1  ;;  %v1733_v20 = vld [vmem:[%s2425_s0 + $0xc0] sm:$0xff]   ;;  %v1734_v21 = vld [vmem:[%s2425_s0 + $0x48] sm:$0xff]  }
   0xb   :  { %40 = vst.msk [vmem:[#allocation2 + $0xa0] sm:$0xff] %vm19_vm2, %v1749_v1  ;;  %41 = vst.msk [vmem:[#allocation2 + $0xa8] sm:$0xff] %vm19_vm2, %v1749_v1  ;;  %v1735_v22 = vld [vmem:[%s2425_s0 + $0xc8] sm:$0xff]   ;;  %v1736_v23 = vld [vmem:[%s2425_s0 + $0x50] sm:$0xff]  }
   0xc   :  { %42 = vst.msk [vmem:[#allocation2 + $0xb0] sm:$0xff] %vm19_vm2, %v1749_v1  ;;  %43 = vst.msk [vmem:[#allocation2 + $0xb8] sm:$0xff] %vm19_vm2, %v1749_v1  ;;  %v1737_v24 = vld [vmem:[%s2425_s0 + $0xd0] sm:$0xff]   ;;  %v1738_v25 = vld [vmem:[%s2425_s0 + $0x58] sm:$0xff]  }
   0xd   :  { %44 = vst.msk [vmem:[#allocation2 + $0xc0] sm:$0xff] %vm19_vm2, %v1749_v1  ;;  %45 = vst.msk [vmem:[#allocation2 + $0xc8] sm:$0xff] %vm19_vm2, %v1749_v1  ;;  %v1739_v26 = vld [vmem:[%s2425_s0 + $0xd8] sm:$0xff]   ;;  %v1740_v27 = vld [vmem:[%s2425_s0 + $0x60] sm:$0xff]  }
   0xe   :  { %46 = vst.msk [vmem:[#allocation2 + $0xd0] sm:$0xff] %vm19_vm2, %v1749_v1  ;;  %47 = vst.msk [vmem:[#allocation2 + $0xd8] sm:$0xff] %vm19_vm2, %v1749_v1  ;;  %1652 = vmatmul.mubr.msk.bf16.gmra.mrb[4].mxu0 %vm373_vm1, %v1722_v9  ;;  %1684 = vmatmul.mubr.msk.bf16.gmra.mrb[4].mxu1 %vm373_vm1, %v1723_v10  ;;  %v1741_v28 = vld [vmem:[%s2425_s0 + $0xe0] sm:$0xff]   ;;  %v1742_v29 = vld [vmem:[%s2425_s0 + $0x68] sm:$0xff]  }
   0xf   :  { %48 = vst.msk [vmem:[#allocation2 + $0xe0] sm:$0xff] %vm19_vm2, %v1749_v1  ;;  %49 = vst.msk [vmem:[#allocation2 + $0xe8] sm:$0xff] %vm19_vm2, %v1749_v1  ;;  %1655 = vmatprep.mubr.msk.bf16.mxu0 %vm373_vm1, %v1724_v11  ;;  %1687 = vmatprep.mubr.msk.bf16.mxu1 %vm373_vm1, %v1725_v12  ;;  %v1743_v30 = vld [vmem:[%s2425_s0 + $0xe8] sm:$0xff]   ;;  %v1744_v31 = vld [vmem:[%s2425_s0 + $0x70] sm:$0xff]  }
  0x10   :  { %50 = vst.msk [vmem:[#allocation2 + $0xf0] sm:$0xff] %vm19_vm2, %v1749_v1  ;;  %51 = vst.msk [vmem:[#allocation2 + $0xf8] sm:$0xff] %vm19_vm2, %v1749_v1  ;;  %v1745_v32 = vld [vmem:[%s2425_s0 + $0xf0] sm:$0xff]   ;;  %v1746_v33 = vld [vmem:[%s2425_s0 + $0x78] sm:$0xff]  }
  0x11   :  { %52 = vst.msk [vmem:[#allocation2 + $0x100] sm:$0xff] %vm19_vm2, %v1749_v1  ;;  %53 = vst.msk [vmem:[#allocation2 + $0x108] sm:$0xff] %vm19_vm2, %v1749_v1  ;;  %v1747_v34 = vld [vmem:[%s2425_s0 + $0xf8] sm:$0xff]   ;;  %v86_v35 = vld [vmem:[#allocation2 + $0x10] sm:$0xff] }
  0x12   :  { %54 = vst.msk [vmem:[#allocation2 + $0x110] sm:$0xff] %vm19_vm2, %v1749_v1  ;;  %55 = vst.msk [vmem:[#allocation2 + $0x118] sm:$0xff] %vm19_vm2, %v1749_v1  ;;  %v84_v37 = vld [vmem:[#allocation2] sm:$0xff]  ;;  %v87_v40 = vld [vmem:[#allocation2 + $0x18] sm:$0xff] }
  0x13   :  { %56 = vst.msk [vmem:[#allocation2 + $0x120] sm:$0xff] %vm19_vm2, %v1749_v1  ;;  %57 = vst.msk [vmem:[#allocation2 + $0x128] sm:$0xff] %vm19_vm2, %v1749_v1  ;;  %v85_v45 = vld [vmem:[#allocation2 + $0x8] sm:$0xff]  ;;  %v90_v59 = vld [vmem:[#allocation2 + $0x30] sm:$0xff] }
  0x14   :  { %58 = vst.msk [vmem:[#allocation2 + $0x130] sm:$0xff] %vm19_vm2, %v1749_v1  ;;  %59 = vst.msk [vmem:[#allocation2 + $0x138] sm:$0xff] %vm19_vm2, %v1749_v1  ;;  %v88_v61 = vld [vmem:[#allocation2 + $0x20] sm:$0xff]  ;;  %v89_v6 = vld [vmem:[#allocation2 + $0x28] sm:$0xff] }
  0x15   :  { %60 = vst.msk [vmem:[#allocation2 + $0x140] sm:$0xff] %vm19_vm2, %v1749_v1  ;;  %61 = vst.msk [vmem:[#allocation2 + $0x148] sm:$0xff] %vm19_vm2, %v1749_v1  ;;  %v2048_v62 = vld [vmem:[%s2426_s2] ss:$0 sm:$0xff] }
  0x16   :  { %62 = vst.msk [vmem:[#allocation2 + $0x150] sm:$0xff] %vm19_vm2, %v1749_v1  ;;  %63 = vst.msk [vmem:[#allocation2 + $0x158] sm:$0xff] %vm19_vm2, %v1749_v1  ;;  %1656 = vmatmul.mubr.msk.bf16.gmra.mrb[8].mxu0 %vm373_vm1, %v1726_v13  ;;  %1688 = vmatmul.mubr.msk.bf16.gmra.mrb[8].mxu1 %vm373_vm1, %v1727_v14 }
  0x17   :  { %64 = vst.msk [vmem:[#allocation2 + $0x160] sm:$0xff] %vm19_vm2, %v1749_v1  ;;  %65 = vst.msk [vmem:[#allocation2 + $0x168] sm:$0xff] %vm19_vm2, %v1749_v1  ;;  %1659 = vmatprep.mubr.msk.bf16.mxu0 %vm373_vm1, %v1728_v15  ;;  %1691 = vmatprep.mubr.msk.bf16.mxu1 %vm373_vm1, %v1729_v16 }
  0x18   :  { %66 = vst.msk [vmem:[#allocation2 + $0x170] sm:$0xff] %vm19_vm2, %v1749_v1  ;;  %67 = vst.msk [vmem:[#allocation2 + $0x178] sm:$0xff] %vm19_vm2, %v1749_v1  ;;  %v116_v39 = vld [vmem:[#allocation2 + $0x100] sm:$0xff]  ;;  %v117_v50 = vld [vmem:[#allocation2 + $0x108] sm:$0xff] }
  0x19   :  { %68 = vst.msk [vmem:[#allocation2 + $0x180] sm:$0xff] %vm19_vm2, %v1749_v1  ;;  %69 = vst.msk [vmem:[#allocation2 + $0x188] sm:$0xff] %vm19_vm2, %v1749_v1  ;;  %v118_v36 = vld [vmem:[#allocation2 + $0x110] sm:$0xff]  ;;  %v119_v44 = vld [vmem:[#allocation2 + $0x118] sm:$0xff] }
  0x1a   :  { %70 = vst.msk [vmem:[#allocation2 + $0x190] sm:$0xff] %vm19_vm2, %v1749_v1  ;;  %71 = vst.msk [vmem:[#allocation2 + $0x198] sm:$0xff] %vm19_vm2, %v1749_v1  ;;  %v120_v0 = vld [vmem:[#allocation2 + $0x120] sm:$0xff]  ;;  %v121_v12 = vld [vmem:[#allocation2 + $0x128] sm:$0xff] }
  0x1b   :  { %72 = vst.msk [vmem:[#allocation2 + $0x1a0] sm:$0xff] %vm19_vm2, %v1749_v1  ;;  %73 = vst.msk [vmem:[#allocation2 + $0x1a8] sm:$0xff] %vm19_vm2, %v1749_v1  ;;  %v122_v60 = vld [vmem:[#allocation2 + $0x130] sm:$0xff]  ;;  %v123_v5 = vld [vmem:[#allocation2 + $0x138] sm:$0xff] }
  0x1c   :  { %74 = vst.msk [vmem:[#allocation2 + $0x1b0] sm:$0xff] %vm19_vm2, %v1749_v1  ;;  %75 = vst.msk [vmem:[#allocation2 + $0x1b8] sm:$0xff] %vm19_vm2, %v1749_v1 }
  0x1d   :  { %76 = vst.msk [vmem:[#allocation2 + $0x1c0] sm:$0xff] %vm19_vm2, %v1749_v1  ;;  %77 = vst.msk [vmem:[#allocation2 + $0x1c8] sm:$0xff] %vm19_vm2, %v1749_v1 }
  0x1e   :  { %78 = vst.msk [vmem:[#allocation2 + $0x1d0] sm:$0xff] %vm19_vm2, %v1749_v1  ;;  %79 = vst.msk [vmem:[#allocation2 + $0x1d8] sm:$0xff] %vm19_vm2, %v1749_v1  ;;  %1660 = vmatmul.mubr.msk.bf16.gmra.mrb[12].mxu0 %vm373_vm1, %v1730_v17  ;;  %1692 = vmatmul.mubr.msk.bf16.gmra.mrb[12].mxu1 %vm373_vm1, %v1731_v18 }
  0x1f   :  { %80 = vst.msk [vmem:[#allocation2 + $0x1e0] sm:$0xff] %vm19_vm2, %v1749_v1  ;;  %81 = vst.msk [vmem:[#allocation2 + $0x1e8] sm:$0xff] %vm19_vm2, %v1749_v1  ;;  %1663 = vmatprep.mubr.msk.bf16.mxu0 %vm373_vm1, %v1732_v19  ;;  %1695 = vmatprep.mubr.msk.bf16.mxu1 %vm373_vm1, %v1733_v20 }
  0x20   :  { %82 = vst.msk [vmem:[#allocation2 + $0x1f0] sm:$0xff] %vm19_vm2, %v1749_v1  ;;  %83 = vst.msk [vmem:[#allocation2 + $0x1f8] sm:$0xff] %vm19_vm2, %v1749_v1  ;;  %v91_v1 = vld [vmem:[#allocation2 + $0x38] sm:$0xff] }
  0x26   :  { %1664 = vmatmul.mubr.msk.bf16.gmra.mrb[16].mxu0 %vm373_vm1, %v1734_v21  ;;  %1696 = vmatmul.mubr.msk.bf16.gmra.mrb[16].mxu1 %vm373_vm1, %v1735_v22 }
  0x27   :  { %1667 = vmatprep.mubr.msk.bf16.mxu0 %vm373_vm1, %v1736_v23  ;;  %1699 = vmatprep.mubr.msk.bf16.mxu1 %vm373_vm1, %v1737_v24 }
  0x2e   :  { %1668 = vmatmul.mubr.msk.bf16.gmra.mrb[20].mxu0 %vm373_vm1, %v1738_v25  ;;  %1700 = vmatmul.mubr.msk.bf16.gmra.mrb[20].mxu1 %vm373_vm1, %v1739_v26 }
  0x2f   :  { %1671 = vmatprep.mubr.msk.bf16.mxu0 %vm373_vm1, %v1740_v27  ;;  %1703 = vmatprep.mubr.msk.bf16.mxu1 %vm373_vm1, %v1741_v28 }
  0x36   :  { %1672 = vmatmul.mubr.msk.bf16.gmra.mrb[24].mxu0 %vm373_vm1, %v1742_v29  ;;  %1704 = vmatmul.mubr.msk.bf16.gmra.mrb[24].mxu1 %vm373_vm1, %v1743_v30 }
  0x37   :  { %1675 = vmatprep.mubr.msk.bf16.mxu0 %vm373_vm1, %v1744_v31  ;;  %1707 = vmatprep.mubr.msk.bf16.mxu1 %vm373_vm1, %v1745_v32 }
  0x3e   :  { %1676 = vmatmul.mubr.msk.bf16.gmra.mrb[28].mxu0 %vm373_vm1, %v1746_v33  ;;  %1708 = vmatmul.mubr.msk.bf16.gmra.mrb[28].mxu1 %vm373_vm1, %v1747_v34 }
  0xd9   :  { %v1649_v38 = vpop.f32.mrb[0].mxu0  ;;  %v1681_v42 = vpop.f32.mrb[0].mxu1 }
  0xda   :  { %v765_v41 = vadd.f32 %v1649_v38, %v86_v35  ;;  %v508_v43 = vpop.f32.mrb[1].mxu0  ;;  %v797_v46 = vadd.f32 %v1681_v42, %v118_v36  ;;  %v636_v48 = vpop.f32.mrb[1].mxu1  ;;  %v94_v38 = vld [vmem:[#allocation2 + $0x50] sm:$0xff] }
  0xdb   :  { %v763_v47 = vadd.f32 %v508_v43, %v84_v37  ;;  %v1650_v49 = vpop.f32.mrb[2].mxu0  ;;  %v795_v51 = vadd.f32 %v636_v48, %v116_v39  ;;  %v1682_v53 = vpop.f32.mrb[2].mxu1  ;;  %v126_v43 = vld [vmem:[#allocation2 + $0x150] sm:$0xff] }
  0xdc   :  { %830 = vst.msk [vmem:[#allocation2 + $0x10] sm:$0xff] %vm19_vm2, %v765_v41  ;;  %v766_v52 = vadd.f32 %v1650_v49, %v87_v40  ;;  %v511_v54 = vpop.f32.mrb[3].mxu0  ;;  %862 = vst.msk [vmem:[#allocation2 + $0x110] sm:$0xff] %vm19_vm2, %v797_v46  ;;  %v798_v55 = vadd.f32 %v1682_v53, %v119_v44  ;;  %v639_v57 = vpop.f32.mrb[3].mxu1  ;;  %v92_v44 = vld [vmem:[#allocation2 + $0x40] sm:$0xff] }
  0xdd   :  { %828 = vst.msk [vmem:[#allocation2] sm:$0xff] %vm19_vm2, %v763_v47  ;;  %v764_v56 = vadd.f32 %v511_v54, %v85_v45  ;;  %860 = vst.msk [vmem:[#allocation2 + $0x100] sm:$0xff] %vm19_vm2, %v795_v51  ;;  %v796_v58 = vadd.f32 %v639_v57, %v117_v50  ;;  %v124_v50 = vld [vmem:[#allocation2 + $0x140] sm:$0xff]  ;;  %v95_v51 = vld [vmem:[#allocation2 + $0x58] sm:$0xff] }
  0xde   :  { %831 = vst.msk [vmem:[#allocation2 + $0x18] sm:$0xff] %vm19_vm2, %v766_v52  ;;  %863 = vst.msk [vmem:[#allocation2 + $0x118] sm:$0xff] %vm19_vm2, %v798_v55 }
  0xdf   :  { %829 = vst.msk [vmem:[#allocation2 + $0x8] sm:$0xff] %vm19_vm2, %v764_v56  ;;  %861 = vst.msk [vmem:[#allocation2 + $0x108] sm:$0xff] %vm19_vm2, %v796_v58  ;;  %v127_v58 = vld [vmem:[#allocation2 + $0x158] sm:$0xff] }
  0xe1   :  { %v1653_v63 = vpop.f32.mrb[4].mxu0  ;;  %v1685_v3 = vpop.f32.mrb[4].mxu1 }
  0xe2   :  { %v769_v2 = vadd.f32 %v1653_v63, %v90_v59  ;;  %v524_v4 = vpop.f32.mrb[5].mxu0  ;;  %v801_v8 = vadd.f32 %v1685_v3, %v122_v60  ;;  %v652_v10 = vpop.f32.mrb[5].mxu1  ;;  %v93_v59 = vld [vmem:[#allocation2 + $0x48] sm:$0xff] }
  0xe3   :  { %v897_v7 = vld [vmem:[#allocation2 + $0x10] sm:$0xff]  ;;  %v767_v9 = vadd.f32 %v524_v4, %v88_v61  ;;  %v1654_v11 = vpop.f32.mrb[6].mxu0  ;;  %v799_v16 = vadd.f32 %v652_v10, %v120_v0  ;;  %v1686_v18 = vpop.f32.mrb[6].mxu1  ;;  %v125_v4 = vld [vmem:[#allocation2 + $0x148] sm:$0xff] }
  0xe4   :  { %v968_v13 = vadd.f32 %v2048_v62, %v897_v7  ;;  %v929_v14 = vld [vmem:[#allocation2 + $0x110] sm:$0xff]  ;;  %v895_v15 = vld [vmem:[#allocation2] sm:$0xff]  ;;  %834 = vst.msk [vmem:[#allocation2 + $0x30] sm:$0xff] %vm19_vm2, %v769_v2  ;;  %v770_v17 = vadd.f32 %v1654_v11, %v91_v1  ;;  %v527_v19 = vpop.f32.mrb[7].mxu0  ;;  %866 = vst.msk [vmem:[#allocation2 + $0x130] sm:$0xff] %vm19_vm2, %v801_v8  ;;  %v802_v24 = vadd.f32 %v1686_v18, %v123_v5  ;;  %v655_v26 = vpop.f32.mrb[7].mxu1 }
  0xe5   :  { %v1000_v20 = vadd.f32 %v2048_v62, %v929_v14  ;;  %v966_v21 = vadd.f32 %v2048_v62, %v895_v15  ;;  %v927_v22 = vld [vmem:[#allocation2 + $0x100] sm:$0xff]  ;;  %v898_v23 = vld [vmem:[#allocation2 + $0x18] sm:$0xff]  ;;  %832 = vst.msk [vmem:[#allocation2 + $0x20] sm:$0xff] %vm19_vm2, %v767_v9  ;;  %v768_v25 = vadd.f32 %v527_v19, %v89_v6  ;;  %864 = vst.msk [vmem:[#allocation2 + $0x120] sm:$0xff] %vm19_vm2, %v799_v16 }
  0xe6   :  { %v1032_v27 = vmax.f32 %v968_v13, 0.0  ;;  %v998_v28 = vadd.f32 %v2048_v62, %v927_v22  ;;  %v969_v29 = vadd.f32 %v2048_v62, %v898_v23  ;;  %v930_v30 = vld [vmem:[#allocation2 + $0x118] sm:$0xff]  ;;  %v896_v31 = vld [vmem:[#allocation2 + $0x8] sm:$0xff]  ;;  %835 = vst.msk [vmem:[#allocation2 + $0x38] sm:$0xff] %vm19_vm2, %v770_v17  ;;  %v800_v32 = vadd.f32 %v655_v26, %v121_v12  ;;  %867 = vst.msk [vmem:[#allocation2 + $0x138] sm:$0xff] %vm19_vm2, %v802_v24 }
  0xe7   :  { %v1064_v33 = vmax.f32 %v1000_v20, 0.0  ;;  %v1030_v34 = vmax.f32 %v966_v21, 0.0  ;;  %v1001_v35 = vadd.f32 %v2048_v62, %v930_v30  ;;  %v967_v36 = vadd.f32 %v2048_v62, %v896_v31  ;;  %v928_v37 = vld [vmem:[#allocation2 + $0x108] sm:$0xff]  ;;  %833 = vst.msk [vmem:[#allocation2 + $0x28] sm:$0xff] %vm19_vm2, %v768_v25  ;;  %v98_v31 = vld [vmem:[#allocation2 + $0x70] sm:$0xff] }
  0xe8   :  { %v1550_v39 = vpack.c.bf16 %v1032_v27, %v1032_v27  ;;  %v1062_v40 = vmax.f32 %v998_v28, 0.0  ;;  %v1033_v41 = vmax.f32 %v969_v29, 0.0  ;;  %v999_v42 = vadd.f32 %v2048_v62, %v928_v37  ;;  %865 = vst.msk [vmem:[#allocation2 + $0x128] sm:$0xff] %vm19_vm2, %v800_v32  ;;  %v96_v37 = vld [vmem:[#allocation2 + $0x60] sm:$0xff] }
  0xe9   :  { %v1582_v45 = vpack.c.bf16 %v1064_v33, %v1064_v33  ;;  %v1548_v46 = vpack.c.bf16 %v1030_v34, %v1030_v34  ;;  %v1065_v47 = vmax.f32 %v1001_v35, 0.0  ;;  %v1031_v48 = vmax.f32 %v967_v36, 0.0  ;;  %v1657_v49 = vpop.f32.mrb[8].mxu0  ;;  %v1689_v56 = vpop.f32.mrb[8].mxu1  ;;  %v130_v36 = vld [vmem:[#allocation2 + $0x170] sm:$0xff] }
  0xea   :  { %1353 = vst.msk [vmem:[%s2427_s3 + $0x8] sm:$0xf] %vm1350_vm3, %v1550_v39  ;;  %v1580_v52 = vpack.c.bf16 %v1062_v40, %v1062_v40  ;;  %v1551_v53 = vpack.c.bf16 %v1033_v41, %v1033_v41  ;;  %v1063_v54 = vmax.f32 %v999_v42, 0.0  ;;  %v773_v55 = vadd.f32 %v1657_v49, %v94_v38  ;;  %v540_v57 = vpop.f32.mrb[9].mxu0  ;;  %v668_v2 = vpop.f32.mrb[9].mxu1 }
  0xeb   :  { %1385 = vst.msk [vmem:[%s2427_s3 + $0x88] sm:$0xf] %vm1350_vm3, %v1582_v45  ;;  %1351 = vst.msk [vmem:[%s2427_s3] sm:$0xf] %vm1350_vm3, %v1548_v46  ;;  %v1583_v60 = vpack.c.bf16 %v1065_v47, %v1065_v47  ;;  %v1549_v61 = vpack.c.bf16 %v1031_v48, %v1031_v48  ;;  %v901_v63 = vld [vmem:[#allocation2 + $0x30] sm:$0xff]  ;;  %v805_v0 = vadd.f32 %v1689_v56, %v126_v43  ;;  %v1658_v3 = vpop.f32.mrb[10].mxu0 }
  0xec   :  { %v771_v1 = vadd.f32 %v540_v57, %v92_v44  ;;  %1383 = vst.msk [vmem:[%s2427_s3 + $0x80] sm:$0xf] %vm1350_vm3, %v1580_v52  ;;  %1354 = vst.msk [vmem:[%s2427_s3 + $0xc] sm:$0xf] %vm1350_vm3, %v1551_v53  ;;  %v1581_v5 = vpack.c.bf16 %v1063_v54, %v1063_v54  ;;  %v972_v6 = vadd.f32 %v2048_v62, %v901_v63  ;;  %v933_v7 = vld [vmem:[#allocation2 + $0x130] sm:$0xff]  ;;  %v899_v8 = vld [vmem:[#allocation2 + $0x20] sm:$0xff] }
  0xed   :  { %838 = vst.msk [vmem:[#allocation2 + $0x50] sm:$0xff] %vm19_vm2, %v773_v55  ;;  %v803_v9 = vadd.f32 %v668_v2, %v124_v50  ;;  %v774_v10 = vadd.f32 %v1658_v3, %v95_v51  ;;  %v1690_v11 = vpop.f32.mrb[10].mxu1  ;;  %v543_v12 = vpop.f32.mrb[11].mxu0  ;;  %v1004_v13 = vadd.f32 %v2048_v62, %v933_v7  ;;  %v970_v14 = vadd.f32 %v2048_v62, %v899_v8  ;;  %v931_v15 = vld [vmem:[#allocation2 + $0x120] sm:$0xff]  ;;  %v902_v16 = vld [vmem:[#allocation2 + $0x38] sm:$0xff]  ;;  %v97_v52 = vld [vmem:[#allocation2 + $0x68] sm:$0xff] }
  0xee   :  { %1386 = vst.msk [vmem:[%s2427_s3 + $0x8c] sm:$0xf] %vm1350_vm3, %v1583_v60  ;;  %1352 = vst.msk [vmem:[%s2427_s3 + $0x4] sm:$0xf] %vm1350_vm3, %v1549_v61  ;;  %v806_v17 = vadd.f32 %v1690_v11, %v127_v58  ;;  %v772_v18 = vadd.f32 %v543_v12, %v93_v59  ;;  %v671_v19 = vpop.f32.mrb[11].mxu1  ;;  %v1036_v20 = vmax.f32 %v972_v6, 0.0  ;;  %v1002_v21 = vadd.f32 %v2048_v62, %v931_v15 }
  0xef   :  { %870 = vst.msk [vmem:[#allocation2 + $0x150] sm:$0xff] %vm19_vm2, %v805_v0  ;;  %836 = vst.msk [vmem:[#allocation2 + $0x40] sm:$0xff] %vm19_vm2, %v771_v1  ;;  %v973_v22 = vadd.f32 %v2048_v62, %v902_v16  ;;  %v934_v23 = vld [vmem:[#allocation2 + $0x138] sm:$0xff]  ;;  %v900_v24 = vld [vmem:[#allocation2 + $0x28] sm:$0xff]  ;;  %v804_v25 = vadd.f32 %v671_v19, %v125_v4  ;;  %v1068_v26 = vmax.f32 %v1004_v13, 0.0  ;;  %v1034_v27 = vmax.f32 %v970_v14, 0.0 }
  0xf0   :  { %1384 = vst.msk [vmem:[%s2427_s3 + $0x84] sm:$0xf] %vm1350_vm3, %v1581_v5  ;;  %v1005_v28 = vadd.f32 %v2048_v62, %v934_v23  ;;  %v971_v29 = vadd.f32 %v2048_v62, %v900_v24  ;;  %v932_v30 = vld [vmem:[#allocation2 + $0x128] sm:$0xff]  ;;  %v1554_v32 = vpack.c.bf16 %v1036_v20, %v1036_v20  ;;  %v1066_v33 = vmax.f32 %v1002_v21, 0.0  ;;  %v128_v43 = vld [vmem:[#allocation2 + $0x160] sm:$0xff]  ;;  %v99_v44 = vld [vmem:[#allocation2 + $0x78] sm:$0xff] }
  0xf1   :  { %868 = vst.msk [vmem:[#allocation2 + $0x140] sm:$0xff] %vm19_vm2, %v803_v9  ;;  %839 = vst.msk [vmem:[#allocation2 + $0x58] sm:$0xff] %vm19_vm2, %v774_v10  ;;  %v1037_v34 = vmax.f32 %v973_v22, 0.0  ;;  %v1003_v35 = vadd.f32 %v2048_v62, %v932_v30  ;;  %v1586_v38 = vpack.c.bf16 %v1068_v26, %v1068_v26  ;;  %v1552_v39 = vpack.c.bf16 %v1034_v27, %v1034_v27  ;;  %v1661_v42 = vpop.f32.mrb[12].mxu0  ;;  %v1693_v49 = vpop.f32.mrb[12].mxu1  ;;  %v131_v51 = vld [vmem:[#allocation2 + $0x178] sm:$0xff] }
  0xf2   :  { %871 = vst.msk [vmem:[#allocation2 + $0x158] sm:$0xff] %vm19_vm2, %v806_v17  ;;  %837 = vst.msk [vmem:[#allocation2 + $0x48] sm:$0xff] %vm19_vm2, %v772_v18  ;;  %v1069_v40 = vmax.f32 %v1005_v28, 0.0  ;;  %v1035_v41 = vmax.f32 %v971_v29, 0.0  ;;  %v1584_v45 = vpack.c.bf16 %v1066_v33, %v1066_v33  ;;  %v777_v48 = vadd.f32 %v1661_v42, %v98_v31  ;;  %v556_v50 = vpop.f32.mrb[13].mxu0  ;;  %v684_v58 = vpop.f32.mrb[13].mxu1 }
  0xf3   :  { %869 = vst.msk [vmem:[#allocation2 + $0x148] sm:$0xff] %vm19_vm2, %v804_v25  ;;  %v1555_v46 = vpack.c.bf16 %v1037_v34, %v1037_v34  ;;  %v1067_v47 = vmax.f32 %v1003_v35, 0.0  ;;  %v809_v56 = vadd.f32 %v1693_v49, %v130_v36  ;;  %v775_v57 = vadd.f32 %v556_v50, %v96_v37  ;;  %v1662_v59 = vpop.f32.mrb[14].mxu0  ;;  %v129_v60 = vld [vmem:[#allocation2 + $0x168] sm:$0xff]  ;;  %v1694_v4 = vpop.f32.mrb[14].mxu1  ;;  %v102_v24 = vld [vmem:[#allocation2 + $0x90] sm:$0xff] }
  0xf4   :  { %1357 = vst.msk [vmem:[%s2427_s3 + $0x18] sm:$0xf] %vm1350_vm3, %v1554_v32  ;;  %1389 = vst.msk [vmem:[%s2427_s3 + $0x98] sm:$0xf] %vm1350_vm3, %v1586_v38  ;;  %v1587_v53 = vpack.c.bf16 %v1069_v40, %v1069_v40  ;;  %v1553_v54 = vpack.c.bf16 %v1035_v41, %v1035_v41  ;;  %v905_v55 = vld [vmem:[#allocation2 + $0x50] sm:$0xff]  ;;  %v807_v2 = vadd.f32 %v684_v58, %v128_v43  ;;  %v559_v5 = vpop.f32.mrb[15].mxu0 }
  0xf5   :  { %1355 = vst.msk [vmem:[%s2427_s3 + $0x10] sm:$0xf] %vm1350_vm3, %v1552_v39  ;;  %1387 = vst.msk [vmem:[%s2427_s3 + $0x90] sm:$0xf] %vm1350_vm3, %v1584_v45  ;;  %v1585_v61 = vpack.c.bf16 %v1067_v47, %v1067_v47  ;;  %v976_v63 = vadd.f32 %v2048_v62, %v905_v55  ;;  %v778_v3 = vadd.f32 %v1662_v59, %v99_v44  ;;  %v687_v12 = vpop.f32.mrb[15].mxu1  ;;  %v134_v29 = vld [vmem:[#allocation2 + $0x190] sm:$0xff] }
  0xf6   :  { %1358 = vst.msk [vmem:[%s2427_s3 + $0x1c] sm:$0xf] %vm1350_vm3, %v1555_v46  ;;  %v937_v0 = vld [vmem:[#allocation2 + $0x150] sm:$0xff]  ;;  %v903_v1 = vld [vmem:[#allocation2 + $0x40] sm:$0xff]  ;;  %1390 = vst.msk [vmem:[%s2427_s3 + $0x9c] sm:$0xf] %vm1350_vm3, %v1587_v53  ;;  %v810_v10 = vadd.f32 %v1694_v4, %v131_v51  ;;  %v776_v11 = vadd.f32 %v559_v5, %v97_v52  ;;  %v808_v18 = vadd.f32 %v687_v12, %v129_v60 }
  0xf7   :  { %842 = vst.msk [vmem:[#allocation2 + $0x70] sm:$0xff] %vm19_vm2, %v777_v48  ;;  %v1008_v6 = vadd.f32 %v2048_v62, %v937_v0  ;;  %v974_v7 = vadd.f32 %v2048_v62, %v903_v1  ;;  %874 = vst.msk [vmem:[#allocation2 + $0x170] sm:$0xff] %vm19_vm2, %v809_v56  ;;  %v1040_v13 = vmax.f32 %v976_v63, 0.0  ;;  %v100_v30 = vld [vmem:[#allocation2 + $0x80] sm:$0xff]  ;;  %v103_v37 = vld [vmem:[#allocation2 + $0x98] sm:$0xff] }
  0xf8   :  { %1356 = vst.msk [vmem:[%s2427_s3 + $0x14] sm:$0xf] %vm1350_vm3, %v1553_v54  ;;  %v935_v8 = vld [vmem:[#allocation2 + $0x140] sm:$0xff]  ;;  %v906_v9 = vld [vmem:[#allocation2 + $0x58] sm:$0xff]  ;;  %1388 = vst.msk [vmem:[%s2427_s3 + $0x94] sm:$0xf] %vm1350_vm3, %v1585_v61 }
  0xf9   :  { %840 = vst.msk [vmem:[#allocation2 + $0x60] sm:$0xff] %vm19_vm2, %v775_v57  ;;  %v1006_v14 = vadd.f32 %v2048_v62, %v935_v8  ;;  %v977_v15 = vadd.f32 %v2048_v62, %v906_v9  ;;  %v938_v16 = vld [vmem:[#allocation2 + $0x158] sm:$0xff]  ;;  %v904_v17 = vld [vmem:[#allocation2 + $0x48] sm:$0xff]  ;;  %872 = vst.msk [vmem:[#allocation2 + $0x160] sm:$0xff] %vm19_vm2, %v807_v2  ;;  %v1072_v19 = vmax.f32 %v1008_v6, 0.0  ;;  %v1038_v20 = vmax.f32 %v974_v7, 0.0 }
  0xfa   :  { %843 = vst.msk [vmem:[#allocation2 + $0x78] sm:$0xff] %vm19_vm2, %v778_v3  ;;  %v1009_v21 = vadd.f32 %v2048_v62, %v938_v16  ;;  %v975_v22 = vadd.f32 %v2048_v62, %v904_v17  ;;  %v936_v23 = vld [vmem:[#allocation2 + $0x148] sm:$0xff]  ;;  %875 = vst.msk [vmem:[#allocation2 + $0x178] sm:$0xff] %vm19_vm2, %v810_v10  ;;  %v1558_v25 = vpack.c.bf16 %v1040_v13, %v1040_v13  ;;  %v1665_v35 = vpop.f32.mrb[16].mxu0  ;;  %v132_v36 = vld [vmem:[#allocation2 + $0x180] sm:$0xff]  ;;  %v1697_v42 = vpop.f32.mrb[16].mxu1 }
  0xfb   :  { %841 = vst.msk [vmem:[#allocation2 + $0x68] sm:$0xff] %vm19_vm2, %v776_v11  ;;  %v1070_v26 = vmax.f32 %v1006_v14, 0.0  ;;  %v1041_v27 = vmax.f32 %v977_v15, 0.0  ;;  %v1007_v28 = vadd.f32 %v2048_v62, %v936_v23  ;;  %873 = vst.msk [vmem:[#allocation2 + $0x168] sm:$0xff] %vm19_vm2, %v808_v18  ;;  %v1590_v31 = vpack.c.bf16 %v1072_v19, %v1072_v19  ;;  %v572_v43 = vpop.f32.mrb[17].mxu0  ;;  %v135_v44 = vld [vmem:[#allocation2 + $0x198] sm:$0xff] }
  0xfc   :  { %v1556_v32 = vpack.c.bf16 %v1038_v20, %v1038_v20  ;;  %v1073_v33 = vmax.f32 %v1009_v21, 0.0  ;;  %v1039_v34 = vmax.f32 %v975_v22, 0.0  ;;  %1361 = vst.msk [vmem:[%s2427_s3 + $0x28] sm:$0xf] %vm1350_vm3, %v1558_v25  ;;  %v781_v41 = vadd.f32 %v1665_v35, %v102_v24  ;;  %v101_v45 = vld [vmem:[#allocation2 + $0x88] sm:$0xff]  ;;  %v700_v51 = vpop.f32.mrb[17].mxu1 }
  0xfd   :  { %v1588_v38 = vpack.c.bf16 %v1070_v26, %v1070_v26  ;;  %v1559_v39 = vpack.c.bf16 %v1041_v27, %v1041_v27  ;;  %v1071_v40 = vmax.f32 %v1007_v28, 0.0  ;;  %1393 = vst.msk [vmem:[%s2427_s3 + $0xa8] sm:$0xf] %vm1350_vm3, %v1590_v31  ;;  %v813_v49 = vadd.f32 %v1697_v42, %v134_v29  ;;  %v1666_v52 = vpop.f32.mrb[18].mxu0  ;;  %v133_v53 = vld [vmem:[#allocation2 + $0x188] sm:$0xff]  ;;  %v1698_v60 = vpop.f32.mrb[18].mxu1 }
  0xfe   :  { %1359 = vst.msk [vmem:[%s2427_s3 + $0x20] sm:$0xf] %vm1350_vm3, %v1556_v32  ;;  %v1591_v46 = vpack.c.bf16 %v1073_v33, %v1073_v33  ;;  %v1557_v47 = vpack.c.bf16 %v1039_v34, %v1039_v34  ;;  %v909_v48 = vld [vmem:[#allocation2 + $0x70] sm:$0xff]  ;;  %v779_v50 = vadd.f32 %v572_v43, %v100_v30  ;;  %v811_v58 = vadd.f32 %v700_v51, %v132_v36  ;;  %v575_v61 = vpop.f32.mrb[19].mxu0  ;;  %v703_v5 = vpop.f32.mrb[19].mxu1  ;;  %v104_v23 = vld [vmem:[#allocation2 + $0xa0] sm:$0xff] }
  0xff   :  { %1391 = vst.msk [vmem:[%s2427_s3 + $0xa0] sm:$0xf] %vm1350_vm3, %v1588_v38  ;;  %1362 = vst.msk [vmem:[%s2427_s3 + $0x2c] sm:$0xf] %vm1350_vm3, %v1559_v39  ;;  %v1589_v54 = vpack.c.bf16 %v1071_v40, %v1071_v40  ;;  %v980_v55 = vadd.f32 %v2048_v62, %v909_v48  ;;  %v941_v56 = vld [vmem:[#allocation2 + $0x170] sm:$0xff]  ;;  %v782_v59 = vadd.f32 %v1666_v52, %v103_v37  ;;  %v136_v29 = vld [vmem:[#allocation2 + $0x1a0] sm:$0xff] }
 0x100   :  { %v907_v57 = vld [vmem:[#allocation2 + $0x60] sm:$0xff]  ;;  %846 = vst.msk [vmem:[#allocation2 + $0x90] sm:$0xff] %vm19_vm2, %v781_v41  ;;  %v1012_v63 = vadd.f32 %v2048_v62, %v941_v56  ;;  %878 = vst.msk [vmem:[#allocation2 + $0x190] sm:$0xff] %vm19_vm2, %v813_v49  ;;  %v814_v3 = vadd.f32 %v1698_v60, %v135_v44  ;;  %v780_v4 = vadd.f32 %v575_v61, %v101_v45  ;;  %v106_v17 = vld [vmem:[#allocation2 + $0xb0] sm:$0xff] }
 0x101   :  { %1394 = vst.msk [vmem:[%s2427_s3 + $0xac] sm:$0xf] %vm1350_vm3, %v1591_v46  ;;  %1360 = vst.msk [vmem:[%s2427_s3 + $0x24] sm:$0xf] %vm1350_vm3, %v1557_v47  ;;  %v978_v0 = vadd.f32 %v2048_v62, %v907_v57  ;;  %v939_v1 = vld [vmem:[#allocation2 + $0x160] sm:$0xff]  ;;  %v910_v2 = vld [vmem:[#allocation2 + $0x78] sm:$0xff]  ;;  %v812_v11 = vadd.f32 %v703_v5, %v133_v53 }
 0x102   :  { %844 = vst.msk [vmem:[#allocation2 + $0x80] sm:$0xff] %vm19_vm2, %v779_v50  ;;  %v1044_v6 = vmax.f32 %v980_v55, 0.0  ;;  %v1010_v7 = vadd.f32 %v2048_v62, %v939_v1  ;;  %v981_v8 = vadd.f32 %v2048_v62, %v910_v2  ;;  %v942_v9 = vld [vmem:[#allocation2 + $0x178] sm:$0xff]  ;;  %v908_v10 = vld [vmem:[#allocation2 + $0x68] sm:$0xff]  ;;  %876 = vst.msk [vmem:[#allocation2 + $0x180] sm:$0xff] %vm19_vm2, %v811_v58  ;;  %v1076_v12 = vmax.f32 %v1012_v63, 0.0 }
 0x103   :  { %1392 = vst.msk [vmem:[%s2427_s3 + $0xa4] sm:$0xf] %vm1350_vm3, %v1589_v54  ;;  %v1042_v13 = vmax.f32 %v978_v0, 0.0  ;;  %v1013_v14 = vadd.f32 %v2048_v62, %v942_v9  ;;  %v979_v15 = vadd.f32 %v2048_v62, %v908_v10  ;;  %v940_v16 = vld [vmem:[#allocation2 + $0x168] sm:$0xff]  ;;  %v138_v22 = vld [vmem:[#allocation2 + $0x1b0] sm:$0xff]  ;;  %v1669_v28 = vpop.f32.mrb[20].mxu0 }
 0x104   :  { %847 = vst.msk [vmem:[#allocation2 + $0x98] sm:$0xff] %vm19_vm2, %v782_v59  ;;  %879 = vst.msk [vmem:[#allocation2 + $0x198] sm:$0xff] %vm19_vm2, %v814_v3  ;;  %v1562_v18 = vpack.c.bf16 %v1044_v6, %v1044_v6  ;;  %v1074_v19 = vmax.f32 %v1010_v7, 0.0  ;;  %v1045_v20 = vmax.f32 %v981_v8, 0.0  ;;  %v1011_v21 = vadd.f32 %v2048_v62, %v940_v16  ;;  %v107_v30 = vld [vmem:[#allocation2 + $0xb8] sm:$0xff]  ;;  %v1701_v35 = vpop.f32.mrb[20].mxu1 }
 0x105   :  { %845 = vst.msk [vmem:[#allocation2 + $0x88] sm:$0xff] %vm19_vm2, %v780_v4  ;;  %877 = vst.msk [vmem:[#allocation2 + $0x188] sm:$0xff] %vm19_vm2, %v812_v11  ;;  %v1594_v24 = vpack.c.bf16 %v1076_v12, %v1076_v12  ;;  %v1560_v25 = vpack.c.bf16 %v1042_v13, %v1042_v13  ;;  %v1077_v26 = vmax.f32 %v1013_v14, 0.0  ;;  %v1043_v27 = vmax.f32 %v979_v15, 0.0  ;;  %v588_v36 = vpop.f32.mrb[21].mxu0  ;;  %v139_v37 = vld [vmem:[#allocation2 + $0x1b8] sm:$0xff] }
 0x106   :  { %1365 = vst.msk [vmem:[%s2427_s3 + $0x38] sm:$0xf] %vm1350_vm3, %v1562_v18  ;;  %v1592_v31 = vpack.c.bf16 %v1074_v19, %v1074_v19  ;;  %v1563_v32 = vpack.c.bf16 %v1045_v20, %v1045_v20  ;;  %v1075_v33 = vmax.f32 %v1011_v21, 0.0  ;;  %v785_v34 = vadd.f32 %v1669_v28, %v106_v17  ;;  %v105_v38 = vld [vmem:[#allocation2 + $0xa8] sm:$0xff]  ;;  %v716_v44 = vpop.f32.mrb[21].mxu1  ;;  %v1670_v45 = vpop.f32.mrb[22].mxu0 }
 0x107   :  { %1397 = vst.msk [vmem:[%s2427_s3 + $0xb8] sm:$0xf] %vm1350_vm3, %v1594_v24  ;;  %1363 = vst.msk [vmem:[%s2427_s3 + $0x30] sm:$0xf] %vm1350_vm3, %v1560_v25  ;;  %v1595_v39 = vpack.c.bf16 %v1077_v26, %v1077_v26  ;;  %v1561_v40 = vpack.c.bf16 %v1043_v27, %v1043_v27  ;;  %v913_v41 = vld [vmem:[#allocation2 + $0x90] sm:$0xff]  ;;  %v817_v42 = vadd.f32 %v1701_v35, %v138_v22  ;;  %v137_v46 = vld [vmem:[#allocation2 + $0x1a8] sm:$0xff] }
 0x108   :  { %v783_v43 = vadd.f32 %v588_v36, %v104_v23  ;;  %1395 = vst.msk [vmem:[%s2427_s3 + $0xb0] sm:$0xf] %vm1350_vm3, %v1592_v31  ;;  %1366 = vst.msk [vmem:[%s2427_s3 + $0x3c] sm:$0xf] %vm1350_vm3, %v1563_v32  ;;  %v1593_v47 = vpack.c.bf16 %v1075_v33, %v1075_v33  ;;  %v984_v48 = vadd.f32 %v2048_v62, %v913_v41  ;;  %v945_v49 = vld [vmem:[#allocation2 + $0x190] sm:$0xff]  ;;  %v1702_v53 = vpop.f32.mrb[22].mxu1 }
 0x109   :  { %v911_v50 = vld [vmem:[#allocation2 + $0x80] sm:$0xff]  ;;  %850 = vst.msk [vmem:[#allocation2 + $0xb0] sm:$0xff] %vm19_vm2, %v785_v34  ;;  %v815_v51 = vadd.f32 %v716_v44, %v136_v29  ;;  %v786_v52 = vadd.f32 %v1670_v45, %v107_v30  ;;  %v591_v54 = vpop.f32.mrb[23].mxu0  ;;  %v1016_v55 = vadd.f32 %v2048_v62, %v945_v49  ;;  %882 = vst.msk [vmem:[#allocation2 + $0x1b0] sm:$0xff] %vm19_vm2, %v817_v42  ;;  %v719_v61 = vpop.f32.mrb[23].mxu1  ;;  %v110_v10 = vld [vmem:[#allocation2 + $0xd0] sm:$0xff] }
 0x10a   :  { %1398 = vst.msk [vmem:[%s2427_s3 + $0xbc] sm:$0xf] %vm1350_vm3, %v1595_v39  ;;  %1364 = vst.msk [vmem:[%s2427_s3 + $0x34] sm:$0xf] %vm1350_vm3, %v1561_v40  ;;  %v982_v56 = vadd.f32 %v2048_v62, %v911_v50  ;;  %v943_v57 = vld [vmem:[#allocation2 + $0x180] sm:$0xff]  ;;  %v818_v59 = vadd.f32 %v1702_v53, %v139_v37  ;;  %v784_v60 = vadd.f32 %v591_v54, %v105_v38  ;;  %v1048_v63 = vmax.f32 %v984_v48, 0.0 }
 0x10b   :  { %v914_v58 = vld [vmem:[#allocation2 + $0x98] sm:$0xff]  ;;  %848 = vst.msk [vmem:[#allocation2 + $0xa0] sm:$0xff] %vm19_vm2, %v783_v43  ;;  %v1014_v0 = vadd.f32 %v2048_v62, %v943_v57  ;;  %880 = vst.msk [vmem:[#allocation2 + $0x1a0] sm:$0xff] %vm19_vm2, %v815_v51  ;;  %v816_v4 = vadd.f32 %v719_v61, %v137_v46  ;;  %v1080_v5 = vmax.f32 %v1016_v55, 0.0  ;;  %v142_v15 = vld [vmem:[#allocation2 + $0x1d0] sm:$0xff]  ;;  %v1673_v21 = vpop.f32.mrb[24].mxu0 }
 0x10c   :  { %1396 = vst.msk [vmem:[%s2427_s3 + $0xb4] sm:$0xf] %vm1350_vm3, %v1593_v47  ;;  %v985_v1 = vadd.f32 %v2048_v62, %v914_v58  ;;  %v946_v2 = vld [vmem:[#allocation2 + $0x198] sm:$0xff]  ;;  %v912_v3 = vld [vmem:[#allocation2 + $0x88] sm:$0xff]  ;;  %v1046_v6 = vmax.f32 %v982_v56, 0.0  ;;  %v1566_v11 = vpack.c.bf16 %v1048_v63, %v1048_v63  ;;  %v108_v16 = vld [vmem:[#allocation2 + $0xc0] sm:$0xff]  ;;  %v789_v27 = vadd.f32 %v1673_v21, %v110_v10 }
 0x10d   :  { %851 = vst.msk [vmem:[#allocation2 + $0xb8] sm:$0xff] %vm19_vm2, %v786_v52  ;;  %v1017_v7 = vadd.f32 %v2048_v62, %v946_v2  ;;  %v983_v8 = vadd.f32 %v2048_v62, %v912_v3  ;;  %v944_v9 = vld [vmem:[#allocation2 + $0x188] sm:$0xff]  ;;  %883 = vst.msk [vmem:[#allocation2 + $0x1b8] sm:$0xff] %vm19_vm2, %v818_v59  ;;  %v1078_v12 = vmax.f32 %v1014_v0, 0.0  ;;  %v1598_v17 = vpack.c.bf16 %v1080_v5, %v1080_v5  ;;  %v140_v22 = vld [vmem:[#allocation2 + $0x1c0] sm:$0xff]  ;;  %v1705_v28 = vpop.f32.mrb[24].mxu1 }
 0x10e   :  { %849 = vst.msk [vmem:[#allocation2 + $0xa8] sm:$0xff] %vm19_vm2, %v784_v60  ;;  %v1049_v13 = vmax.f32 %v985_v1, 0.0  ;;  %v1015_v14 = vadd.f32 %v2048_v62, %v944_v9  ;;  %881 = vst.msk [vmem:[#allocation2 + $0x1a8] sm:$0xff] %vm19_vm2, %v816_v4  ;;  %v1564_v18 = vpack.c.bf16 %v1046_v6, %v1046_v6  ;;  %v111_v23 = vld [vmem:[#allocation2 + $0xd8] sm:$0xff]  ;;  %v604_v29 = vpop.f32.mrb[25].mxu0  ;;  %v109_v31 = vld [vmem:[#allocation2 + $0xc8] sm:$0xff]  ;;  %v821_v35 = vadd.f32 %v1705_v28, %v142_v15 }
 0x10f   :  { %v1081_v19 = vmax.f32 %v1017_v7, 0.0  ;;  %v1047_v20 = vmax.f32 %v983_v8, 0.0  ;;  %1369 = vst.msk [vmem:[%s2427_s3 + $0x48] sm:$0xf] %vm1350_vm3, %v1566_v11  ;;  %v1596_v24 = vpack.c.bf16 %v1078_v12, %v1078_v12  ;;  %v143_v30 = vld [vmem:[#allocation2 + $0x1d8] sm:$0xff]  ;;  %v787_v36 = vadd.f32 %v604_v29, %v108_v16  ;;  %v732_v37 = vpop.f32.mrb[25].mxu1 }
 0x110   :  { %v1567_v25 = vpack.c.bf16 %v1049_v13, %v1049_v13  ;;  %v1079_v26 = vmax.f32 %v1015_v14, 0.0  ;;  %1401 = vst.msk [vmem:[%s2427_s3 + $0xc8] sm:$0xf] %vm1350_vm3, %v1598_v17  ;;  %1367 = vst.msk [vmem:[%s2427_s3 + $0x40] sm:$0xf] %vm1350_vm3, %v1564_v18  ;;  %v917_v34 = vld [vmem:[#allocation2 + $0xb0] sm:$0xff]  ;;  %v819_v44 = vadd.f32 %v732_v37, %v140_v22 }
 0x111   :  { %v1599_v32 = vpack.c.bf16 %v1081_v19, %v1081_v19  ;;  %v1565_v33 = vpack.c.bf16 %v1047_v20, %v1047_v20  ;;  %v1674_v38 = vpop.f32.mrb[26].mxu0  ;;  %v141_v39 = vld [vmem:[#allocation2 + $0x1c8] sm:$0xff]  ;;  %1399 = vst.msk [vmem:[%s2427_s3 + $0xc0] sm:$0xf] %vm1350_vm3, %v1596_v24  ;;  %v988_v41 = vadd.f32 %v2048_v62, %v917_v34  ;;  %v949_v42 = vld [vmem:[#allocation2 + $0x1b0] sm:$0xff]  ;;  %v1706_v46 = vpop.f32.mrb[26].mxu1 }
 0x112   :  { %1370 = vst.msk [vmem:[%s2427_s3 + $0x4c] sm:$0xf] %vm1350_vm3, %v1567_v25  ;;  %v1597_v40 = vpack.c.bf16 %v1079_v26, %v1079_v26  ;;  %v915_v43 = vld [vmem:[#allocation2 + $0xa0] sm:$0xff]  ;;  %v790_v45 = vadd.f32 %v1674_v38, %v111_v23  ;;  %v607_v47 = vpop.f32.mrb[27].mxu0  ;;  %v1020_v48 = vadd.f32 %v2048_v62, %v949_v42  ;;  %v822_v52 = vadd.f32 %v1706_v46, %v143_v30  ;;  %v735_v54 = vpop.f32.mrb[27].mxu1  ;;  %v114_v3 = vld [vmem:[#allocation2 + $0xf0] sm:$0xff] }
 0x113   :  { %854 = vst.msk [vmem:[#allocation2 + $0xd0] sm:$0xff] %vm19_vm2, %v789_v27  ;;  %v986_v49 = vadd.f32 %v2048_v62, %v915_v43  ;;  %v947_v50 = vld [vmem:[#allocation2 + $0x1a0] sm:$0xff]  ;;  %886 = vst.msk [vmem:[#allocation2 + $0x1d0] sm:$0xff] %vm19_vm2, %v821_v35  ;;  %v788_v53 = vadd.f32 %v607_v47, %v109_v31  ;;  %v1052_v55 = vmax.f32 %v988_v41, 0.0  ;;  %v820_v60 = vadd.f32 %v735_v54, %v141_v39  ;;  %v146_v8 = vld [vmem:[#allocation2 + $0x1f0] sm:$0xff]  ;;  %v1677_v14 = vpop.f32.mrb[28].mxu0 }
 0x114   :  { %1402 = vst.msk [vmem:[%s2427_s3 + $0xcc] sm:$0xf] %vm1350_vm3, %v1599_v32  ;;  %1368 = vst.msk [vmem:[%s2427_s3 + $0x44] sm:$0xf] %vm1350_vm3, %v1565_v33  ;;  %v918_v51 = vld [vmem:[#allocation2 + $0xb8] sm:$0xff]  ;;  %v1018_v56 = vadd.f32 %v2048_v62, %v947_v50  ;;  %v1084_v61 = vmax.f32 %v1020_v48, 0.0  ;;  %v793_v20 = vadd.f32 %v1677_v14, %v114_v3 }
 0x115   :  { %852 = vst.msk [vmem:[#allocation2 + $0xc0] sm:$0xff] %vm19_vm2, %v787_v36  ;;  %v989_v57 = vadd.f32 %v2048_v62, %v918_v51  ;;  %v950_v58 = vld [vmem:[#allocation2 + $0x1b8] sm:$0xff]  ;;  %v916_v59 = vld [vmem:[#allocation2 + $0xa8] sm:$0xff]  ;;  %884 = vst.msk [vmem:[#allocation2 + $0x1c0] sm:$0xff] %vm19_vm2, %v819_v44  ;;  %v1050_v63 = vmax.f32 %v986_v49, 0.0  ;;  %v1570_v4 = vpack.c.bf16 %v1052_v55, %v1052_v55  ;;  %v1709_v21 = vpop.f32.mrb[28].mxu1 }
 0x116   :  { %1400 = vst.msk [vmem:[%s2427_s3 + $0xc4] sm:$0xf] %vm1350_vm3, %v1597_v40  ;;  %v1021_v0 = vadd.f32 %v2048_v62, %v950_v58  ;;  %v987_v1 = vadd.f32 %v2048_v62, %v916_v59  ;;  %v948_v2 = vld [vmem:[#allocation2 + $0x1a8] sm:$0xff]  ;;  %v1082_v5 = vmax.f32 %v1018_v56, 0.0  ;;  %v112_v9 = vld [vmem:[#allocation2 + $0xe0] sm:$0xff]  ;;  %v1602_v10 = vpack.c.bf16 %v1084_v61, %v1084_v61  ;;  %v115_v16 = vld [vmem:[#allocation2 + $0xf8] sm:$0xff] }
 0x117   :  { %855 = vst.msk [vmem:[#allocation2 + $0xd8] sm:$0xff] %vm19_vm2, %v790_v45  ;;  %887 = vst.msk [vmem:[#allocation2 + $0x1d8] sm:$0xff] %vm19_vm2, %v822_v52  ;;  %v1053_v6 = vmax.f32 %v989_v57, 0.0  ;;  %v1019_v7 = vadd.f32 %v2048_v62, %v948_v2  ;;  %v1568_v11 = vpack.c.bf16 %v1050_v63, %v1050_v63  ;;  %v144_v15 = vld [vmem:[#allocation2 + $0x1e0] sm:$0xff]  ;;  %v620_v22 = vpop.f32.mrb[29].mxu0  ;;  %v147_v23 = vld [vmem:[#allocation2 + $0x1f8] sm:$0xff]  ;;  %v825_v28 = vadd.f32 %v1709_v21, %v146_v8 }
 0x118   :  { %853 = vst.msk [vmem:[#allocation2 + $0xc8] sm:$0xff] %vm19_vm2, %v788_v53  ;;  %885 = vst.msk [vmem:[#allocation2 + $0x1c8] sm:$0xff] %vm19_vm2, %v820_v60  ;;  %v1085_v12 = vmax.f32 %v1021_v0, 0.0  ;;  %v1051_v13 = vmax.f32 %v987_v1, 0.0  ;;  %v1600_v17 = vpack.c.bf16 %v1082_v5, %v1082_v5  ;;  %v113_v24 = vld [vmem:[#allocation2 + $0xe8] sm:$0xff]  ;;  %v791_v29 = vadd.f32 %v620_v22, %v112_v9  ;;  %v748_v30 = vpop.f32.mrb[29].mxu1 }
 0x119   :  { %1373 = vst.msk [vmem:[%s2427_s3 + $0x58] sm:$0xf] %vm1350_vm3, %v1570_v4  ;;  %v1571_v18 = vpack.c.bf16 %v1053_v6, %v1053_v6  ;;  %v1083_v19 = vmax.f32 %v1019_v7, 0.0  ;;  %1405 = vst.msk [vmem:[%s2427_s3 + $0xd8] sm:$0xf] %vm1350_vm3, %v1602_v10  ;;  %v1678_v31 = vpop.f32.mrb[30].mxu0  ;;  %v823_v37 = vadd.f32 %v748_v30, %v144_v15 }
 0x11a   :  { %1371 = vst.msk [vmem:[%s2427_s3 + $0x50] sm:$0xf] %vm1350_vm3, %v1568_v11  ;;  %v1603_v25 = vpack.c.bf16 %v1085_v12, %v1085_v12  ;;  %v1569_v26 = vpack.c.bf16 %v1051_v13, %v1051_v13  ;;  %v921_v27 = vld [vmem:[#allocation2 + $0xd0] sm:$0xff]  ;;  %v145_v32 = vld [vmem:[#allocation2 + $0x1e8] sm:$0xff]  ;;  %1403 = vst.msk [vmem:[%s2427_s3 + $0xd0] sm:$0xf] %vm1350_vm3, %v1600_v17  ;;  %v794_v38 = vadd.f32 %v1678_v31, %v115_v16 }
 0x11b   :  { %1374 = vst.msk [vmem:[%s2427_s3 + $0x5c] sm:$0xf] %vm1350_vm3, %v1571_v18  ;;  %v1601_v33 = vpack.c.bf16 %v1083_v19, %v1083_v19  ;;  %v992_v34 = vadd.f32 %v2048_v62, %v921_v27  ;;  %v953_v35 = vld [vmem:[#allocation2 + $0x1d0] sm:$0xff]  ;;  %v1710_v39 = vpop.f32.mrb[30].mxu1  ;;  %v623_v40 = vpop.f32.mrb[31].mxu0 }
 0x11c   :  { %v919_v36 = vld [vmem:[#allocation2 + $0xc0] sm:$0xff]  ;;  %858 = vst.msk [vmem:[#allocation2 + $0xf0] sm:$0xff] %vm19_vm2, %v793_v20  ;;  %v1024_v41 = vadd.f32 %v2048_v62, %v953_v35  ;;  %890 = vst.msk [vmem:[#allocation2 + $0x1f0] sm:$0xff] %vm19_vm2, %v825_v28  ;;  %v826_v45 = vadd.f32 %v1710_v39, %v147_v23  ;;  %v792_v46 = vadd.f32 %v623_v40, %v113_v24  ;;  %v751_v47 = vpop.f32.mrb[31].mxu1 }
 0x11d   :  { %1406 = vst.msk [vmem:[%s2427_s3 + $0xdc] sm:$0xf] %vm1350_vm3, %v1603_v25  ;;  %1372 = vst.msk [vmem:[%s2427_s3 + $0x54] sm:$0xf] %vm1350_vm3, %v1569_v26  ;;  %v990_v42 = vadd.f32 %v2048_v62, %v919_v36  ;;  %v951_v43 = vld [vmem:[#allocation2 + $0x1c0] sm:$0xff]  ;;  %v1056_v48 = vmax.f32 %v992_v34, 0.0  ;;  %v824_v53 = vadd.f32 %v751_v47, %v145_v32 }
 0x11e   :  { %v922_v44 = vld [vmem:[#allocation2 + $0xd8] sm:$0xff]  ;;  %856 = vst.msk [vmem:[#allocation2 + $0xe0] sm:$0xff] %vm19_vm2, %v791_v29  ;;  %v1022_v49 = vadd.f32 %v2048_v62, %v951_v43  ;;  %888 = vst.msk [vmem:[#allocation2 + $0x1e0] sm:$0xff] %vm19_vm2, %v823_v37  ;;  %v1088_v54 = vmax.f32 %v1024_v41, 0.0  ;;  %v1748_v19 = vld [vmem:[%s2426_s2] ss:$0 sm:$0xff] }
 0x11f   :  { %1404 = vst.msk [vmem:[%s2427_s3 + $0xd4] sm:$0xf] %vm1350_vm3, %v1601_v33  ;;  %v993_v50 = vadd.f32 %v2048_v62, %v922_v44  ;;  %v954_v51 = vld [vmem:[#allocation2 + $0x1d8] sm:$0xff]  ;;  %v920_v52 = vld [vmem:[#allocation2 + $0xc8] sm:$0xff]  ;;  %v1054_v55 = vmax.f32 %v990_v42, 0.0  ;;  %v1574_v59 = vpack.c.bf16 %v1056_v48, %v1056_v48 }
 0x120   :  { %859 = vst.msk [vmem:[#allocation2 + $0xf8] sm:$0xff] %vm19_vm2, %v794_v38  ;;  %v1025_v56 = vadd.f32 %v2048_v62, %v954_v51  ;;  %v991_v57 = vadd.f32 %v2048_v62, %v920_v52  ;;  %v952_v58 = vld [vmem:[#allocation2 + $0x1c8] sm:$0xff]  ;;  %891 = vst.msk [vmem:[#allocation2 + $0x1f8] sm:$0xff] %vm19_vm2, %v826_v45  ;;  %v1086_v60 = vmax.f32 %v1022_v49, 0.0  ;;  %v1606_v0 = vpack.c.bf16 %v1088_v54, %v1088_v54 }
 0x121   :  { %857 = vst.msk [vmem:[#allocation2 + $0xe8] sm:$0xff] %vm19_vm2, %v792_v46  ;;  %v1057_v61 = vmax.f32 %v993_v50, 0.0  ;;  %v1023_v63 = vadd.f32 %v2048_v62, %v952_v58  ;;  %889 = vst.msk [vmem:[#allocation2 + $0x1e8] sm:$0xff] %vm19_vm2, %v824_v53  ;;  %v1572_v1 = vpack.c.bf16 %v1054_v55, %v1054_v55 }
 0x122   :  { %v1089_v2 = vmax.f32 %v1025_v56, 0.0  ;;  %v1055_v3 = vmax.f32 %v991_v57, 0.0  ;;  %1377 = vst.msk [vmem:[%s2427_s3 + $0x68] sm:$0xf] %vm1350_vm3, %v1574_v59  ;;  %v1604_v4 = vpack.c.bf16 %v1086_v60, %v1086_v60  ;;  %1409 = vst.msk [vmem:[%s2427_s3 + $0xe8] sm:$0xf] %vm1350_vm3, %v1606_v0 }
 0x123   :  { %v1575_v5 = vpack.c.bf16 %v1057_v61, %v1057_v61  ;;  %v1087_v6 = vmax.f32 %v1023_v63, 0.0  ;;  %1375 = vst.msk [vmem:[%s2427_s3 + $0x60] sm:$0xf] %vm1350_vm3, %v1572_v1  ;;  %v925_v9 = vld [vmem:[#allocation2 + $0xf0] sm:$0xff] }
 0x124   :  { %v1607_v7 = vpack.c.bf16 %v1089_v2, %v1089_v2  ;;  %v1573_v8 = vpack.c.bf16 %v1055_v3, %v1055_v3  ;;  %1407 = vst.msk [vmem:[%s2427_s3 + $0xe0] sm:$0xf] %vm1350_vm3, %v1604_v4  ;;  %v996_v11 = vadd.f32 %v2048_v62, %v925_v9  ;;  %v957_v12 = vld [vmem:[#allocation2 + $0x1f0] sm:$0xff] }
 0x125   :  { %1378 = vst.msk [vmem:[%s2427_s3 + $0x6c] sm:$0xf] %vm1350_vm3, %v1575_v5  ;;  %v1605_v10 = vpack.c.bf16 %v1087_v6, %v1087_v6  ;;  %v923_v13 = vld [vmem:[#allocation2 + $0xe0] sm:$0xff]  ;;  %v1028_v14 = vadd.f32 %v2048_v62, %v957_v12 }
 0x126   :  { %1410 = vst.msk [vmem:[%s2427_s3 + $0xec] sm:$0xf] %vm1350_vm3, %v1607_v7  ;;  %1376 = vst.msk [vmem:[%s2427_s3 + $0x64] sm:$0xf] %vm1350_vm3, %v1573_v8  ;;  %v994_v15 = vadd.f32 %v2048_v62, %v923_v13  ;;  %v955_v16 = vld [vmem:[#allocation2 + $0x1e0] sm:$0xff]  ;;  %v1060_v18 = vmax.f32 %v996_v11, 0.0 }
 0x127   :  { %v926_v17 = vld [vmem:[#allocation2 + $0xf8] sm:$0xff]  ;;  %1408 = vst.msk [vmem:[%s2427_s3 + $0xe4] sm:$0xf] %vm1350_vm3, %v1605_v10  ;;  %v1026_v20 = vadd.f32 %v1748_v19, %v955_v16  ;;  %v1092_v24 = vmax.f32 %v1028_v14, 0.0 }
 0x128   :  { %v997_v21 = vadd.f32 %v1748_v19, %v926_v17  ;;  %v958_v22 = vld [vmem:[#allocation2 + $0x1f8] sm:$0xff]  ;;  %v924_v23 = vld [vmem:[#allocation2 + $0xe8] sm:$0xff]  ;;  %v1058_v25 = vmax.f32 %v994_v15, 0.0  ;;  %v1578_v28 = vpack.c.bf16 %v1060_v18, %v1060_v18 }
 0x129   :  { %v1029_v26 = vadd.f32 %v1748_v19, %v958_v22  ;;  %v995_v62 = vadd.f32 %v1748_v19, %v924_v23  ;;  %v956_v27 = vld [vmem:[#allocation2 + $0x1e8] sm:$0xff]  ;;  %v1090_v29 = vmax.f32 %v1026_v20, 0.0  ;;  %v1610_v32 = vpack.c.bf16 %v1092_v24, %v1092_v24 }
 0x12a   :  { %v1061_v30 = vmax.f32 %v997_v21, 0.0  ;;  %v1027_v31 = vadd.f32 %v1748_v19, %v956_v27  ;;  %v1576_v33 = vpack.c.bf16 %v1058_v25, %v1058_v25  ;;  %1381 = vst.msk [vmem:[%s2427_s3 + $0x78] sm:$0xf] %vm1350_vm3, %v1578_v28 }
 0x12b   :  { %v1093_v34 = vmax.f32 %v1029_v26, 0.0  ;;  %v1059_v35 = vmax.f32 %v995_v62, 0.0  ;;  %v1608_v36 = vpack.c.bf16 %v1090_v29, %v1090_v29  ;;  %1413 = vst.msk [vmem:[%s2427_s3 + $0xf8] sm:$0xf] %vm1350_vm3, %v1610_v32 }
 0x12c   :  { %v1579_v37 = vpack.c.bf16 %v1061_v30, %v1061_v30  ;;  %v1091_v38 = vmax.f32 %v1027_v31, 0.0  ;;  %1379 = vst.msk [vmem:[%s2427_s3 + $0x70] sm:$0xf] %vm1350_vm3, %v1576_v33 }
 0x12d   :  { %v1611_v39 = vpack.c.bf16 %v1093_v34, %v1093_v34  ;;  %v1577_v40 = vpack.c.bf16 %v1059_v35, %v1059_v35  ;;  %1411 = vst.msk [vmem:[%s2427_s3 + $0xf0] sm:$0xf] %vm1350_vm3, %v1608_v36 }
 0x12e   :  { %1382 = vst.msk [vmem:[%s2427_s3 + $0x7c] sm:$0xf] %vm1350_vm3, %v1579_v37  ;;  %v1609_v41 = vpack.c.bf16 %v1091_v38, %v1091_v38 }
 0x12f   :  { %1414 = vst.msk [vmem:[%s2427_s3 + $0xfc] sm:$0xf] %vm1350_vm3, %v1611_v39  ;;  %1380 = vst.msk [vmem:[%s2427_s3 + $0x74] sm:$0xf] %vm1350_vm3, %v1577_v40 }
 0x130   :  { %1412 = vst.msk [vmem:[%s2427_s3 + $0xf4] sm:$0xf] %vm1350_vm3, %v1609_v41 }

// kernel: inception_b_forward.7
= control target key start
LH: loop header
LB: loop body
LE: loop exit
PB: predicated region body
PF: predicated region fallthrough
CT: control target
= control target key end

     0   :  { %s1558_s15 = smov 0   ;;  %s1560_s16 = smov 0   ;;  %s1811_s0 = inlined_call_operand.vmem [shape: bf16[2,8,4,8,64], index: 0, kind: input, shape index: {}, may-alias: {0,1}]   ;;  %s1812_s1 = inlined_call_operand.vmem [shape: bf16[2,8,4,8,64], index: 1, kind: input, shape index: {}, may-alias: {0,1}]   ;;  %s1813_s2 = inlined_call_operand.vmem [shape: bf16[9,64,128], index: 2, kind: input, shape index: {}]   ;;  %s1814_s3 = inlined_call_operand.vmem [shape: f32[1,128], index: 3, kind: input, shape index: {}]   ;;  %s1815_s4 = inlined_call_operand.vmem [shape: f32[2,7,7,128], index: 4, kind: output, shape index: {}]  }
   0x1   :  { %s1562_s17 = smov 0   ;;  %s1564_s18 = smov 0  }
   0x2   :  { %s1566_s19 = smov 0  }
   0x3 LB: > { %s23_s20 = sadd.s32 1, %s1521_s17  ;;  %s26_s21 = sadd.s32 1, %s1525_s18  ;;  %s1529_s19 = sphi %s1566_s19, %s14_s19   ;;  %s1525_s18 = sphi %s1564_s18, %s1819_s18   ;;  %s1521_s17 = sphi %s1562_s17, %s1818_s17   ;;  %s1517_s16 = sphi %s1560_s16, %s1817_s16   ;;  %s1513_s15 = sphi %s1558_s15, %s1816_s15  }
   0x4   : > { %p24_p0 = scmp.ge.s32.totalorder %s23_s20, 7  ;;  %p1129_p1 = scmp.ge.s32.totalorder %s1529_s19, 1 }
   0x5   : > { %p202_p2 = scmp.lt.s32.totalorder %s1529_s19, 15 }
   0x6   : > { %s1821_s20 = smov (%p24_p0, %s23_s20), 0  ;;  %s1823_s21 = smov (!%p24_p0, %s26_s21), %s1525_s18 }
   0x7   : > { %p203_p3 = pnand %p1129_p1, %p202_p2  ;;  %p28_p4 = scmp.ge.s32.totalorder %s1823_s21, 2 }
   0x8   : > { %v1452_v0 = vld [vmem:[%s1813_s2 + $0x20] sm:$0xff] (!%p203_p3)   ;;  %v1531_v1 = vmov (!%p203_p3), 0.0   ;;  %v1454_v3 = vld [vmem:[%s1813_s2 + $0x28] sm:$0xff] (!%p203_p3)   ;;  %vm1532_vm0 = vmmov (!%p203_p3), 0   ;;  %p245_p5 = scmp.lt.s32.totalorder (!%p203_p3), %s1517_s16, 1  ;;  %p247_p6 = scmp.lt.s32.totalorder (!%p203_p3), %s1513_s15, 7 }
   0x9   : > { %s1825_s21 = smov (%p28_p4, %s1823_s21), 0  ;;  %206 = sbr.rel (%p203_p3) target bundleno = 309 (0x135), region = 36 }
   0xa   : > { %1301 = vmatprep.subr.bf16.mxu0 (!%p203_p3), %v1531_v1  ;;  %1313 = vmatprep.subr.bf16.mxu1 (!%p203_p3), %v1531_v1  ;;  %v1453_v2 = vld [vmem:[%s1813_s2] sm:$0xff] (!%p203_p3)   ;;  %v1455_v4 = vld [vmem:[%s1813_s2 + $0x8] sm:$0xff] (!%p203_p3)   ;;  %v1456_v5 = vld [vmem:[%s1813_s2 + $0x30] sm:$0xff] (!%p203_p3)   ;;  %vm318_vm1 = vcmask (!%p203_p3), 523264   ;;  %s254_s13 = sadd.s32 (!%p203_p3), 1, %s1513_s15  ;;  %p267_p8 = scmp.lt.s32.totalorder (!%p203_p3), %s1513_s15, 6 }
   0xb   : > { %1302 = vmatpush3.bf16.msra.mxu0 (!%p203_p3), %v1452_v0  ;;  %1309 = vmatprep.mubr.msk.bf16.mxu0 (!%p203_p3), %vm1532_vm0, %v1531_v1  ;;  %v1457_v6 = vld [vmem:[%s1813_s2 + $0x10] sm:$0xff] (!%p203_p3)   ;;  %v1458_v7 = vld [vmem:[%s1813_s2 + $0x38] sm:$0xff] (!%p203_p3)   ;;  %v1461_v9 = vld [vmem:[%s1813_s2 + $0x40] sm:$0xff] (!%p203_p3)   ;;  %p257_p7 = scmp.lt.s32.totalorder (!%p203_p3), %s254_s13, 7 }
   0xc   : > { %1314 = vmatpush3.bf16.msra.mxu1 (!%p203_p3), %v1453_v2  ;;  %1303 = vmatprep.subr.bf16.mxu0 (!%p203_p3), %v1531_v1  ;;  %v1459_v8 = vld [vmem:[%s1813_s2 + $0x18] sm:$0xff] (!%p203_p3)   ;;  %v1462_v10 = vld [vmem:[%s1813_s2 + $0x60] sm:$0xff] (!%p203_p3)   ;;  %v1463_v14 = vld [vmem:[%s1813_s2 + $0x48] sm:$0xff] (!%p203_p3)  }
   0xd   : > { %1315 = vmatprep.subr.bf16.mxu1 (!%p203_p3), %v1531_v1  ;;  %1321 = vmatprep.mubr.msk.bf16.mxu1 (!%p203_p3), %vm1532_vm0, %v1531_v1  ;;  %v1464_v15 = vld [vmem:[%s1813_s2 + $0x68] sm:$0xff] (!%p203_p3)   ;;  %v1465_v17 = vld [vmem:[%s1813_s2 + $0x50] sm:$0xff] (!%p203_p3)   ;;  %v1467_v21 = vld [vmem:[%s1813_s2 + $0x58] sm:$0xff] (!%p203_p3)  }
   0xe   : > { %v1466_v18 = vld [vmem:[%s1813_s2 + $0x70] sm:$0xff] (!%p203_p3)   ;;  %v1468_v22 = vld [vmem:[%s1813_s2 + $0x78] sm:$0xff] (!%p203_p3)   ;;  %v1469_v24 = vld [vmem:[%s1813_s2 + $0x80] sm:$0xff] (!%p203_p3)  }
   0xf   : > { %1304 = vmatpush3.bf16.msra.mxu0 (!%p203_p3), %v1454_v3  ;;  %v1471_v26 = vld [vmem:[%s1813_s2 + $0xa0] sm:$0xff] (!%p203_p3)   ;;  %v1472_v28 = vld [vmem:[%s1813_s2 + $0x88] sm:$0xff] (!%p203_p3)   ;;  %v1474_v31 = vld [vmem:[%s1813_s2 + $0x90] sm:$0xff] (!%p203_p3)  }
  0x10   : > { %s1827_s16 = smov (!%p245_p5, %s1517_s16), 1  ;;  %1316 = vmatpush3.bf16.msra.mxu1 %v1455_v4  ;;  %1305 = vmatprep.subr.bf16.mxu0 %v1531_v1  ;;  %v1473_v29 = vld [vmem:[%s1813_s2 + $0xa8] sm:$0xff]   ;;  %v1475_v32 = vld [vmem:[%s1813_s2 + $0xb0] sm:$0xff]   ;;  %v1476_v35 = vld [vmem:[%s1813_s2 + $0x98] sm:$0xff]   ;;  %s1829_s13 = smov (!%p257_p7, %s254_s13), 7 }
  0x11   : > { %s248_s30 = scalar_select %p247_p6, %s1513_s15, 7  ;;  %1317 = vmatprep.subr.bf16.mxu1 %v1531_v1  ;;  %v1477_v36 = vld [vmem:[%s1813_s2 + $0xb8] sm:$0xff]   ;;  %v1478_v39 = vld [vmem:[%s1813_s2 + $0xc0] sm:$0xff]   ;;  %v1480_v41 = vld [vmem:[%s1813_s2 + $0xc8] sm:$0xff]  }
  0x12   : > { %s1131_s7 = sshll.u32 %s1827_s16, 5  ;;  %v1479_v40 = vld [vmem:[%s1813_s2 + $0xe0] sm:$0xff]   ;;  %s1133_s5 = sshll.u32 %s1829_s13, 2  ;;  %v1481_v42 = vld [vmem:[%s1813_s2 + $0xe8] sm:$0xff]   ;;  %v1482_v43 = vld [vmem:[%s1813_s2 + $0xd0] sm:$0xff]  }
  0x13   : > { %s1130_s10 = sshll.u32 %s248_s30, 2  ;;  %1306 = vmatpush3.bf16.msra.mxu0 %v1456_v5  ;;  %s261_s9 = sadd.s32 %s1133_s5, %s1131_s7  ;;  %v1483_v44 = vld [vmem:[%s1813_s2 + $0xf0] sm:$0xff]   ;;  %v1484_v45 = vld [vmem:[%s1813_s2 + $0xd8] sm:$0xff]   ;;  %v1487_v48 = vld [vmem:[%s1813_s2 + $0x100] sm:$0xff]  }
  0x14   : > { %s251_s11 = sadd.s32 %s1131_s7, %s1130_s10  ;;  %1318 = vmatpush3.bf16.msra.mxu1 %v1457_v6  ;;  %1307 = vmatprep.subr.bf16.mxu0 %v1531_v1  ;;  %s1135_s14 = sshll.u32 %s261_s9, 2  ;;  %v1485_v46 = vld [vmem:[%s1813_s2 + $0xf8] sm:$0xff]   ;;  %v1488_v51 = vld [vmem:[%s1813_s2 + $0x108] sm:$0xff]   ;;  %v1489_v53 = vld [vmem:[%s1813_s2 + $0x110] sm:$0xff]  }
  0x15   : > { %s1132_s12 = sshll.u32 %s251_s11, 2  ;;  %1319 = vmatprep.subr.bf16.mxu1 %v1531_v1  ;;  %s263_s28 = scalar_lea.vmem %s1812_s1, %s1135_s14  ;;  %v1490_v56 = vld [vmem:[%s1813_s2 + $0x118] sm:$0xff]  }
  0x16   : > { %s1639_s26 = scalar_lea.vmem %s1811_s0, %s1132_s12  ;;  %v761_v47 = vld [vmem:[%s263_s28] sm:$0xf]  ;;  %v1225_v49 = vld [vmem:[%s263_s28 + $0x4] sm:$0xf]  ;;  %s1409_s11 = smul.u32 7, %s1827_s16 }
  0x17   : > { %1308 = vmatpush3.bf16.msra.mxu0 %v1458_v7  ;;  %v1137_v11 = vld [vmem:[%s1639_s26 + $0x4] sm:$0xf]  ;;  %v274_v12 = vld [vmem:[%s1639_s26] sm:$0xf]  ;;  %v1170_v25 = vld [vmem:[%s1639_s26 + $0x8] sm:$0xf]  ;;  %v1247_v50 = vcombine.low %v761_v47, %v761_v47 }
  0x18   : > { %1320 = vmatpush3.bf16.msra.mxu1 %v1459_v8  ;;  %1325 = vmatprep.subr.bf16.mxu0 %v1531_v1  ;;  %v1164_v13 = vcombine.low %v274_v12, %v274_v12  ;;  %v1206_v27 = vcombine.low %v1170_v25, %v1170_v25  ;;  %v1184_v38 = vld [vmem:[%s1639_s26 + $0xc] sm:$0xf]  ;;  %s1831_s15 = smov (!%p267_p8, %s1513_s15), 6 }
  0x19   : > { %1337 = vmatprep.subr.bf16.mxu1 %v1531_v1  ;;  %v933_v52 = vshll.u32 %v1247_v50, 16  ;;  %v931_v54 = vshrl.u32 %v1247_v50, 16  ;;  %s270_s12 = sadd.s32 %s1409_s11, %s1831_s15 }
  0x1a   : > { %1310 = vmatmul.mubr.msk.bf16.vlgmr.msra.gmra.mrb[0].mxu0 %vm318_vm1, %v1137_v11  ;;  %v444_v16 = vshll.u32 %v1164_v13, 16  ;;  %v442_v19 = vshrl.u32 %v1164_v13, 16  ;;  %v689_v30 = vshll.u32 %v1206_v27, 16  ;;  %v687_v33 = vshrl.u32 %v1206_v27, 16  ;;  %s1136_s7 = sshll.u32 %s270_s12, 3 }
  0x1b   : > { %1322 = vmatmul.mubr.msk.bf16.vlgmr.msra.gmra.mrb[0].mxu1 %vm318_vm1, %v274_v12  ;;  %1326 = vmatpush3.bf16.msra.mxu0 %v1461_v9  ;;  %v935_v55 = vrot.slane %v933_v52, 1  ;;  %s272_s24 = scalar_lea.vmem %s1815_s4, %s1136_s7 }
  0x1c   : > { %1338 = vmatpush3.bf16.msra.mxu1 %v1462_v10  ;;  %1327 = vmatprep.subr.bf16.mxu0 %v1531_v1  ;;  %v446_v20 = vrot.slane %v444_v16, 1  ;;  %v691_v34 = vrot.slane %v689_v30, 1 }
  0x1d   : > { %1339 = vmatprep.subr.bf16.mxu1 %v1531_v1  ;;  %1333 = vmatprep.mubr.msk.bf16.mxu0 %vm1532_vm0, %v1531_v1  ;;  %v936_v57 = vor.u32 %v935_v55, %v931_v54 }
  0x1e   : > { %1345 = vmatprep.mubr.msk.bf16.mxu1 %vm1532_vm0, %v1531_v1  ;;  %v447_v23 = vor.u32 %v446_v20, %v442_v19  ;;  %v692_v37 = vor.u32 %v691_v34, %v687_v33  ;;  %v1253_v34 = vld [vmem:[%s1814_s3] ss:$0 sm:$0xff] }
  0x1f   : > { %1328 = vmatpush3.bf16.msra.mxu0 %v1463_v14 }
  0x20   : > { %1340 = vmatpush3.bf16.msra.mxu1 %v1464_v15  ;;  %1329 = vmatprep.subr.bf16.mxu0 %v1531_v1 }
  0x21   : > { %1341 = vmatprep.subr.bf16.mxu1 %v1531_v1 }
  0x23   : > { %1330 = vmatpush3.bf16.msra.mxu0 %v1465_v17 }
  0x24   : > { %1342 = vmatpush3.bf16.msra.mxu1 %v1466_v18  ;;  %1331 = vmatprep.subr.bf16.mxu0 %v1531_v1 }
  0x25   : > { %1343 = vmatprep.subr.bf16.mxu1 %v1531_v1 }
  0x27   : > { %1332 = vmatpush3.bf16.msra.mxu0 %v1467_v21 }
  0x28   : > { %1344 = vmatpush3.bf16.msra.mxu1 %v1468_v22  ;;  %1349 = vmatprep.subr.bf16.mxu0 %v1531_v1 }
  0x29   : > { %1361 = vmatprep.subr.bf16.mxu1 %v1531_v1 }
  0x2a   : > { %1334 = vmatmul.mubr.msk.bf16.vlgmr.msra.gmra.mrb[4].mxu0 %vm318_vm1, %v447_v23 }
  0x2b   : > { %1350 = vmatpush3.bf16.msra.mxu0 %v1469_v24  ;;  %1346 = vmatmul.mubr.msk.bf16.vlgmr.msra.gmra.mrb[4].mxu1 %vm318_vm1, %v1170_v25 }
  0x2c   : > { %1362 = vmatpush3.bf16.msra.mxu1 %v1471_v26  ;;  %1351 = vmatprep.subr.bf16.mxu0 %v1531_v1 }
  0x2d   : > { %1363 = vmatprep.subr.bf16.mxu1 %v1531_v1  ;;  %1357 = vmatprep.mubr.msk.bf16.mxu0 %vm1532_vm0, %v1531_v1 }
  0x2e   : > { %1369 = vmatprep.mubr.msk.bf16.mxu1 %vm1532_vm0, %v1531_v1 }
  0x2f   : > { %1352 = vmatpush3.bf16.msra.mxu0 %v1472_v28 }
  0x30   : > { %1364 = vmatpush3.bf16.msra.mxu1 %v1473_v29  ;;  %1353 = vmatprep.subr.bf16.mxu0 %v1531_v1 }
  0x31   : > { %1365 = vmatprep.subr.bf16.mxu1 %v1531_v1 }
  0x33   : > { %1354 = vmatpush3.bf16.msra.mxu0 %v1474_v31 }
  0x34   : > { %1366 = vmatpush3.bf16.msra.mxu1 %v1475_v32  ;;  %1355 = vmatprep.subr.bf16.mxu0 %v1531_v1 }
  0x35   : > { %1367 = vmatprep.subr.bf16.mxu1 %v1531_v1 }
  0x37   : > { %1356 = vmatpush3.bf16.msra.mxu0 %v1476_v35 }
  0x38   : > { %1368 = vmatpush3.bf16.msra.mxu1 %v1477_v36  ;;  %1373 = vmatprep.subr.bf16.mxu0 %v1531_v1 }
  0x39   : > { %1385 = vmatprep.subr.bf16.mxu1 %v1531_v1 }
  0x3a   : > { %1358 = vmatmul.mubr.msk.bf16.vlgmr.msra.gmra.mrb[8].mxu0 %vm318_vm1, %v1184_v38 }
  0x3b   : > { %1374 = vmatpush3.bf16.msra.mxu0 %v1478_v39  ;;  %1370 = vmatmul.mubr.msk.bf16.vlgmr.msra.gmra.mrb[8].mxu1 %vm318_vm1, %v692_v37 }
  0x3c   : > { %1386 = vmatpush3.bf16.msra.mxu1 %v1479_v40  ;;  %1375 = vmatprep.subr.bf16.mxu0 %v1531_v1 }
  0x3d   : > { %1387 = vmatprep.subr.bf16.mxu1 %v1531_v1  ;;  %1381 = vmatprep.mubr.msk.bf16.mxu0 %vm1532_vm0, %v1531_v1 }
  0x3e   : > { %1393 = vmatprep.mubr.msk.bf16.mxu1 %vm1532_vm0, %v1531_v1 }
  0x3f   : > { %1376 = vmatpush3.bf16.msra.mxu0 %v1480_v41 }
  0x40   : > { %1388 = vmatpush3.bf16.msra.mxu1 %v1481_v42  ;;  %1377 = vmatprep.subr.bf16.mxu0 %v1531_v1 }
  0x41   : > { %1389 = vmatprep.subr.bf16.mxu1 %v1531_v1 }
  0x43   : > { %1378 = vmatpush3.bf16.msra.mxu0 %v1482_v43 }
  0x44   : > { %1390 = vmatpush3.bf16.msra.mxu1 %v1483_v44  ;;  %1379 = vmatprep.subr.bf16.mxu0 %v1531_v1 }
  0x45   : > { %1391 = vmatprep.subr.bf16.mxu1 %v1531_v1 }
  0x47   : > { %1380 = vmatpush3.bf16.msra.mxu0 %v1484_v45 }
  0x48   : > { %1392 = vmatpush3.bf16.msra.mxu1 %v1485_v46  ;;  %1397 = vmatprep.subr.bf16.mxu0 %v1531_v1 }
  0x4a   : > { %1382 = vmatmul.mubr.msk.bf16.vlgmr.msra.gmra.mrb[12].mxu0 %vm318_vm1, %v761_v47 }
  0x4b   : > { %1398 = vmatpush3.bf16.msra.mxu0 %v1487_v48  ;;  %1394 = vmatmul.mubr.msk.bf16.vlgmr.msra.gmra.mrb[12].mxu1 %vm318_vm1, %v1225_v49 }
  0x4c   : > { %1399 = vmatprep.subr.bf16.mxu0 %v1531_v1  ;;  %1405 = vmatprep.mubr.msk.bf16.mxu0 %vm1532_vm0, %v1531_v1 }
  0x4f   : > { %1400 = vmatpush3.bf16.msra.mxu0 %v1488_v51 }
  0x50   : > { %1401 = vmatprep.subr.bf16.mxu0 %v1531_v1 }
  0x53   : > { %1402 = vmatpush3.bf16.msra.mxu0 %v1489_v53 }
  0x54   : > { %1403 = vmatprep.subr.bf16.mxu0 %v1531_v1 }
  0x57   : > { %1404 = vmatpush3.bf16.msra.mxu0 %v1490_v56 }
  0x5a   : > { %1406 = vmatmul.mubr.msk.bf16.vlgmr.msra.gmra.mrb[16].mxu0 %vm318_vm1, %v936_v57 }
  0xed   : > { %v356_v58 = vpop.f32.mrb[0].mxu0 }
  0xee   : > { %v1311_v59 = vpop.f32.mrb[1].mxu0  ;;  %v423_v60 = vpop.f32.mrb[0].mxu1 }
  0xef   : > { %v424_v61 = vadd.f32 %v423_v60, %v356_v58  ;;  %v359_v62 = vpop.f32.mrb[2].mxu0  ;;  %v1323_v63 = vpop.f32.mrb[1].mxu1 }
  0xf0   : > { %v1312_v0 = vpop.f32.mrb[3].mxu0  ;;  %v426_v2 = vpop.f32.mrb[2].mxu1 }
  0xf1   : > { %v1324_v3 = vpop.f32.mrb[3].mxu1 }
  0xfd   : > { %v509_v4 = vpop.f32.mrb[4].mxu0 }
  0xfe   : > { %v515_v5 = vadd.f32 %v509_v4, %v424_v61  ;;  %v1335_v6 = vpop.f32.mrb[5].mxu0  ;;  %v588_v7 = vpop.f32.mrb[4].mxu1 }
  0xff   : > { %v512_v8 = vpop.f32.mrb[6].mxu0  ;;  %v1347_v9 = vpop.f32.mrb[5].mxu1 }
 0x100   : > { %v594_v1 = vadd.f32 %v588_v7, %v515_v5  ;;  %v1336_v10 = vpop.f32.mrb[7].mxu0  ;;  %v591_v11 = vpop.f32.mrb[6].mxu1 }
 0x101   : > { %v1348_v12 = vpop.f32.mrb[7].mxu1 }
 0x10d   : > { %v667_v13 = vpop.f32.mrb[8].mxu0 }
 0x10e   : > { %v673_v14 = vadd.f32 %v667_v13, %v594_v1  ;;  %v1359_v15 = vpop.f32.mrb[9].mxu0  ;;  %v754_v16 = vpop.f32.mrb[8].mxu1 }
 0x10f   : > { %v670_v17 = vpop.f32.mrb[10].mxu0  ;;  %v1371_v18 = vpop.f32.mrb[9].mxu1 }
 0x110   : > { %v760_v19 = vadd.f32 %v754_v16, %v673_v14  ;;  %v1360_v20 = vpop.f32.mrb[11].mxu0  ;;  %v757_v21 = vpop.f32.mrb[10].mxu1 }
 0x111   : > { %v1372_v22 = vpop.f32.mrb[11].mxu1 }
 0x11d   : > { %v832_v23 = vpop.f32.mrb[12].mxu0 }
 0x11e   : > { %v838_v24 = vadd.f32 %v832_v23, %v760_v19  ;;  %v1383_v25 = vpop.f32.mrb[13].mxu0  ;;  %v911_v26 = vpop.f32.mrb[12].mxu1 }
 0x11f   : > { %v835_v27 = vpop.f32.mrb[14].mxu0  ;;  %v1395_v28 = vpop.f32.mrb[13].mxu1 }
 0x120   : > { %v917_v29 = vadd.f32 %v911_v26, %v838_v24  ;;  %v1384_v30 = vpop.f32.mrb[15].mxu0  ;;  %v914_v31 = vpop.f32.mrb[14].mxu1 }
 0x121   : > { %v1396_v32 = vpop.f32.mrb[15].mxu1 }
 0x12d   : > { %v998_v33 = vpop.f32.mrb[16].mxu0 }
 0x12e   : > { %v1004_v35 = vadd.f32 %v998_v33, %v917_v29  ;;  %v1407_v36 = vpop.f32.mrb[17].mxu0 }
 0x12f   : > { %v1001_v37 = vpop.f32.mrb[18].mxu0 }
 0x130   : > { %v1012_v38 = vadd.f32 %v1253_v34, %v1004_v35  ;;  %v1408_v39 = vpop.f32.mrb[19].mxu0 }
 0x132   : > { %v1013_v40 = vmax.f32 %v1012_v38, 0.0 }
 0x134   : > { %1014 = vst [vmem:[%s272_s24] sm:$0x7f] %v1013_v40 }
 0x135 PF: > { %s14_s19 = sadd.s32 1, %s1529_s19   ;;  %s1816_s15 = smov %s1521_s17 }
 0x136   : > { %p11_p9 = scmp.ge.s32.totalorder %s14_s19, 16   ;;  %s1817_s16 = smov %s1525_s18 }
 0x137   : > { %s1818_s17 = smov %s1821_s20  ;;  %s1819_s18 = smov %s1825_s21 }
 0x138   :  { %13 = sbr.rel (!%p11_p9) target bundleno = 3 (0x3), region = 81 }

</bundles_post_ra>
